<compile_context>
chip_gen: v7x
topology: tpu7x:2x2x1
jax: 0.10.0
libtpu: 0.0.40
codegen_flags: <defaults>
</compile_context>

<pallas_src>
import jax
import jax.numpy as jnp
from jax.experimental import pallas as pl
from jax.experimental.pallas import tpu as pltpu

# ----------------------------- scaled-down config -----------------------------
BETA = 0.5
B = 2
IN_SIZE = 32
NUM_CLASSES = 10
NCPAD = 128                                         # lane-dense padded class dim
G = 64                                              # global_feature_dim (scaled down)
LAYER_DIMS = [[64, 32], [16, 64], [4, 128], [4, 128]]   # [num_tokens, channels]
NUM_LAYERS = len(LAYER_DIMS)
TOTAL_TOKENS = sum(l for l, _ in LAYER_DIMS)        # 88
NUM_SELECT = int(TOTAL_TOKENS * BETA)               # 44  (analog of int(3168 * BETA))
NUM_HEADS = 8
HEAD_DIM = G // NUM_HEADS                           # 8
GCN_SCALE = int(NUM_SELECT ** 0.5)                  # 6
GCN_POOLED = NUM_SELECT // GCN_SCALE                # 7

# per-layer channel / batch-folded row offsets (layer-major packing)
COFF, CSUM = [], 0
for _, _c in LAYER_DIMS:
    COFF.append(CSUM)
    CSUM += _c                                      # 352
ROFF, RSUM = [], 0
for _l, _ in LAYER_DIMS:
    ROFF.append(RSUM)
    RSUM += B * _l                                  # 176

_VMEM = pl.BlockSpec(memory_space=pltpu.MemorySpace.VMEM)


# ------------------------------- Pallas kernels -------------------------------
def _pyramid_kernel(tok_ref, pos_ref,
                    we_ref, be_ref, w1_0_ref, w1_1_ref, w1_2_ref, w1_3_ref,
                    b1_ref, w2_ref, b2_ref,
                    wu1_ref, bu1_ref, wu2_ref, bu2_ref,
                    cw1_ref, cb1_ref, cw2_ref, cb2_ref,
                    ng_ref, nb_ref, hw_ref, hb_ref,
                    feat_ref, logits_ref, ori_ref, closs_ref):
    """Embed-proj + FPN + combine + classifiers + ori + contrast (batch folded in M)."""
    w1_refs = (w1_0_ref, w1_1_ref, w1_2_ref, w1_3_ref)

    def mm(a, wm):
        # bf16 MXU operands, f32 accumulation
        return jnp.dot(a.astype(jnp.bfloat16), wm.astype(jnp.bfloat16),
                       preferred_element_type=jnp.float32)

    # ---- patch-embed projection stub + per-layer FPN MLP (batch folded into M) ----
    fpn = []
    for li, (L, C) in enumerate(LAYER_DIMS):
        r0, rn, c0 = ROFF[li], B * L, COFF[li]
        tok = tok_ref[r0:r0 + rn, :]                                 # [B*L, 3]
        we = we_ref[:, c0:c0 + C]                                    # [3, C]
        # K=3 embed as rank-1 VPU updates (frees the MXU for the real matmuls)
        e = (tok[:, 0:1] * we[0:1, :] + tok[:, 1:2] * we[1:2, :]
             + tok[:, 2:3] * we[2:3, :]) + be_ref[:, c0:c0 + C]
        h = jnp.maximum(mm(e, w1_refs[li][...]) + b1_ref[:, c0:c0 + C], 0.0)
        fpn.append(mm(h, w2_ref[c0:c0 + C, :]) + b2_ref[li])         # [B*L, G]

    # ---- FPN top-down combine (upsample == 1x1 Conv1d over the token axis) ----
    L1, L2 = LAYER_DIMS[1][0], LAYER_DIMS[2][0]
    n3 = fpn[3]
    n2 = fpn[2] + n3
    up2 = []
    for b in range(B):                                               # K=4: rank-1 VPU
        n2b = n2[b * L2:(b + 1) * L2, :]
        u = bu2_ref[...]
        for k2 in range(L2):
            u = u + wu2_ref[:, k2:k2 + 1] * n2b[k2:k2 + 1, :]
        up2.append(u)
    n1 = fpn[1] + jnp.concatenate(up2, axis=0)                       # [B*16, G]
    up1 = []
    for b in range(B):
        n1b = n1[b * L1:(b + 1) * L1, :]
        up1.append(jnp.dot(wu1_ref[...], n1b.astype(jnp.bfloat16),
                           preferred_element_type=jnp.float32) + bu1_ref[...])
    n0 = fpn[0] + jnp.concatenate(up1, axis=0)                       # [B*64, G]
    combined = (n0, n1, n2, n3)

    # ---- per-layer classifier (eval BN folded); lane-dense padded logit stores ----
    for li, (L, _) in enumerate(LAYER_DIMS):
        r0, rn = ROFF[li], B * L
        x = combined[li]
        feat_ref[r0:r0 + rn, :] = x.astype(feat_ref.dtype)
        h = jnp.maximum(mm(x, cw1_ref[li]) + cb1_ref[li], 0.0)
        logits_ref[r0:r0 + rn, :] = mm(h, cw2_ref[li]) + cb2_ref[li]  # [B*L, NCPAD]

    # ---- ori branch: LayerNorm(top layer) -> per-batch token mean-pool -> head ----
    L3 = LAYER_DIMS[3][0]
    mu = jnp.mean(n3, axis=-1, keepdims=True)
    xc = n3 - mu
    var = jnp.mean(xc * xc, axis=-1, keepdims=True)
    ox = xc * jax.lax.rsqrt(var + 1e-5) * ng_ref[...] + nb_ref[...]  # [B*L3, G]
    pooled = jnp.concatenate(
        [jnp.mean(ox[b * L3:(b + 1) * L3, :], axis=0, keepdims=True)
         for b in range(B)], axis=0)                                 # [B, G]
    ori_ref[...] = mm(pooled, hw_ref[...]) + hb_ref[...]             # [B, NCPAD]

    # ---- contrastive loss over all B*L3 layer-normed token rows ----
    inv_nrm = jax.lax.rsqrt(jnp.sum(ox * ox, axis=-1, keepdims=True) + 1e-24)
    f = ox * inv_nrm
    cos = jax.lax.dot_general(f, f, (((1,), (1,)), ((), ())),
                              preferred_element_type=jnp.float32)    # [M, M]
    pos = pos_ref[...]
    m = B * L3
    loss = (jnp.sum((1.0 - cos) * pos)
            + jnp.sum(jnp.maximum(cos - 0.4, 0.0) * (1.0 - pos))) / float(m * m)
    closs_ref[...] = jnp.reshape(loss, (1, 1))


def _gcn_kernel(sel_ref, wp_ref, bp_ref,
                n1g_ref, n1b_ref, wqkv_ref, wo_ref, pb_ref,
                n2g_ref, n2b_ref, wf1_ref, bf1_ref, wf2_ref, bf2_ref,
                wc_ref, bc_ref, out_ref):
    """GCNTest: token pooling + transformer Block (fused QKV / proj) + pool + cls."""
    JP = GCN_POOLED

    def mm(a, wm):
        return jnp.dot(a.astype(jnp.bfloat16), wm.astype(jnp.bfloat16),
                       preferred_element_type=jnp.float32)

    def ln(x, g, bb):
        mu = jnp.mean(x, axis=-1, keepdims=True)
        xc = x - mu
        var = jnp.mean(xc * xc, axis=-1, keepdims=True)
        return xc * jax.lax.rsqrt(var + 1e-5) * g + bb

    # token-axis pooling (Linear over joints) per batch, then batch-fold the rows
    x0 = jnp.concatenate(
        [jnp.dot(wp_ref[...], sel_ref[b], preferred_element_type=jnp.float32)
         + bp_ref[...] for b in range(B)], axis=0)                   # [B*JP, G]

    # --- attention: one fused QKV matmul; per-(batch, head) [JP,JP] scores; fused proj ---
    h = ln(x0, n1g_ref[...], n1b_ref[...])
    qkv = mm(h, wqkv_ref[...])                                       # [B*JP, 3G]
    scale = HEAD_DIM ** (-0.5)
    q = qkv[:, 0:G] * scale
    k = qkv[:, G:2 * G]
    v = qkv[:, 2 * G:3 * G]
    att_rows = []
    for b in range(B):
        r = slice(b * JP, (b + 1) * JP)
        qb, kb, vb = q[r], k[r], v[r]
        heads = []
        for hh in range(NUM_HEADS):
            c = slice(hh * HEAD_DIM, (hh + 1) * HEAD_DIM)
            s = jax.lax.dot_general(qb[:, c], kb[:, c], (((1,), (1,)), ((), ())),
                                    preferred_element_type=jnp.float32)
            s = s - jnp.max(s, axis=-1, keepdims=True)
            p = jnp.exp(s)
            p = p * pl.reciprocal(jnp.sum(p, axis=-1, keepdims=True), approx=True)
            heads.append(jnp.dot(p, vb[:, c], preferred_element_type=jnp.float32))
        att_rows.append(jnp.concatenate(heads, axis=1))              # [JP, G]
    ao = jnp.concatenate(att_rows, axis=0)                           # [B*JP, G]
    x1 = x0 + mm(ao, wo_ref[...]) + pb_ref[...]

    # --- MLP ---
    h2 = ln(x1, n2g_ref[...], n2b_ref[...])
    z = mm(h2, wf1_ref[...]) + bf1_ref[...]
    # TODO(synk): PyTorch nn.GELU default is exact erf-GELU; tanh approximation used.
    z = 0.5 * z * (1.0 + jnp.tanh(0.7978845608028654 * (z + 0.044715 * z * z * z)))
    x2 = x1 + mm(z, wf2_ref[...]) + bf2_ref[...]

    # --- per-batch token mean-pool + one fused classifier matmul (padded lanes) ---
    g = jnp.concatenate(
        [jnp.mean(x2[b * JP:(b + 1) * JP, :], axis=0, keepdims=True)
         for b in range(B)], axis=0)                                 # [B, G]
    out_ref[...] = mm(g, wc_ref[...]) + bc_ref[...]                  # [B, NCPAD]


# ------------------------------- kernel wrappers -------------------------------
def run_pyramid(p, tok_flat, pos_mask, cw1f, cb1f):
    out_shape = (
        jax.ShapeDtypeStruct((RSUM, G), jnp.bfloat16),               # features (layer-major)
        jax.ShapeDtypeStruct((RSUM, NCPAD), jnp.float32),            # padded token logits
        jax.ShapeDtypeStruct((B, NCPAD), jnp.float32),               # padded ori logits
        jax.ShapeDtypeStruct((1, 1), jnp.float32),                   # contrast loss
    )
    return pl.pallas_call(
        _pyramid_kernel,
        out_shape=out_shape,
        in_specs=[_VMEM] * 23,
        out_specs=tuple([_VMEM] * 4),
    )(tok_flat, pos_mask,
      p["we"], p["be"],
      p["w1_0"], p["w1_1"], p["w1_2"], p["w1_3"],
      p["b1"], p["w2"], p["b2"],
      p["wu1"], p["bu1"], p["wu2"], p["bu2"],
      cw1f, cb1f, p["cw2"], p["cb2"],
      p["norm_g"], p["norm_b"], p["head_w"], p["head_b"])


def run_gcn(p, sel_feat):
    return pl.pallas_call(
        _gcn_kernel,
        out_shape=jax.ShapeDtypeStruct((B, NCPAD), jnp.float32),
        in_specs=[_VMEM] * 16,
        out_specs=_VMEM,
    )(sel_feat, p["gcn_pool_w"], p["gcn_pool_b"],
      p["gcn_n1_g"], p["gcn_n1_b"],
      p["gcn_wqkv"], p["gcn_proj_w"], p["gcn_proj_b"],
      p["gcn_n2_g"], p["gcn_n2_b"],
      p["gcn_fc1_w"], p["gcn_fc1_b"], p["gcn_fc2_w"], p["gcn_fc2_b"],
      p["gcn_cls_w"], p["gcn_cls_b"])


# ------------------------------- parameter init --------------------------------
def init_params(key):
    keys = iter(jax.random.split(key, 64))

    def w(*shape):
        return 0.02 * jax.random.normal(next(keys), shape, jnp.float32)

    bf16 = jnp.bfloat16
    p = {}
    # embed stub + FPN MLP: per-layer channel widths concatenated along the channel axis
    p["we"] = jnp.concatenate([w(3, C) for _, C in LAYER_DIMS], axis=1)        # [3, 352] f32
    p["be"] = jnp.zeros((1, CSUM), jnp.float32)
    for i, (_, C) in enumerate(LAYER_DIMS):
        p[f"w1_{i}"] = w(C, C).astype(bf16)
    p["b1"] = jnp.zeros((1, CSUM), jnp.float32)
    p["w2"] = jnp.concatenate([w(C, G) for _, C in LAYER_DIMS], axis=0).astype(bf16)  # [352, G]
    p["b2"] = jnp.zeros((NUM_LAYERS, 1, G), jnp.float32)
    # upsample Conv1d (token axis): weight [L_{i-1}, L_i], bias per output token.
    p["wu1"] = w(LAYER_DIMS[0][0], LAYER_DIMS[1][0]).astype(bf16)              # [64, 16]
    p["bu1"] = jnp.zeros((LAYER_DIMS[0][0], 1), jnp.float32)
    p["wu2"] = w(LAYER_DIMS[1][0], LAYER_DIMS[2][0])                           # [16, 4] f32 (VPU)
    p["bu2"] = jnp.zeros((LAYER_DIMS[1][0], 1), jnp.float32)
    # per-layer classifiers: Conv2d(1x1) -> BN2d(eval) -> ReLU -> Conv2d(1x1), stacked.
    p["cw1"] = w(NUM_LAYERS, G, G)
    p["cb1"] = jnp.zeros((NUM_LAYERS, 1, G), jnp.float32)
    p["bn_g"] = jnp.ones((NUM_LAYERS, 1, G), jnp.float32)
    p["bn_b"] = jnp.zeros((NUM_LAYERS, 1, G), jnp.float32)
    p["bn_mean"] = jnp.zeros((NUM_LAYERS, 1, G), jnp.float32)
    p["bn_var"] = jnp.ones((NUM_LAYERS, 1, G), jnp.float32)
    cw2 = jnp.zeros((NUM_LAYERS, G, NCPAD), jnp.float32)
    cw2 = cw2.at[:, :, :NUM_CLASSES].set(w(NUM_LAYERS, G, NUM_CLASSES))
    p["cw2"] = cw2.astype(bf16)
    p["cb2"] = jnp.zeros((NUM_LAYERS, 1, NCPAD), jnp.float32)
    # extractor.norm + extractor.head (use_ori, not only_ori), class dim padded to 128
    p["norm_g"] = jnp.ones((1, G), jnp.float32)
    p["norm_b"] = jnp.zeros((1, G), jnp.float32)
    hw = jnp.zeros((G, NCPAD), jnp.float32).at[:, :NUM_CLASSES].set(w(G, NUM_CLASSES))
    p["head_w"] = hw.astype(bf16)
    p["head_b"] = jnp.zeros((1, NCPAD), jnp.float32)
    # GCNTest: merged QKV / proj weights (no per-head split), qkv_bias=False.
    p["gcn_pool_w"] = w(GCN_POOLED, NUM_SELECT).astype(bf16)                   # [7, 44]
    p["gcn_pool_b"] = jnp.zeros((GCN_POOLED, 1), jnp.float32)
    p["gcn_n1_g"] = jnp.ones((1, G), jnp.float32)
    p["gcn_n1_b"] = jnp.zeros((1, G), jnp.float32)
    p["gcn_wqkv"] = w(G, 3 * G).astype(bf16)
    p["gcn_proj_w"] = w(G, G).astype(bf16)
    p["gcn_proj_b"] = jnp.zeros((1, G), jnp.float32)
    p["gcn_n2_g"] = jnp.ones((1, G), jnp.float32)
    p["gcn_n2_b"] = jnp.zeros((1, G), jnp.float32)
    p["gcn_fc1_w"] = w(G, 4 * G).astype(bf16)
    p["gcn_fc1_b"] = jnp.zeros((1, 4 * G), jnp.float32)
    p["gcn_fc2_w"] = w(4 * G, G).astype(bf16)
    p["gcn_fc2_b"] = jnp.zeros((1, G), jnp.float32)
    cls = jnp.zeros((G, NCPAD), jnp.float32).at[:, :NUM_CLASSES].set(w(G, NUM_CLASSES))
    p["gcn_cls_w"] = cls.astype(bf16)
    p["gcn_cls_b"] = jnp.zeros((1, NCPAD), jnp.float32)
    return p


# ----------------------------------- losses ------------------------------------
def cross_entropy(logits, labels):
    logp = jax.nn.log_softmax(logits, axis=-1)
    return -jnp.mean(jnp.take_along_axis(logp, labels[:, None], axis=-1))


def accuracy(logits, labels):
    return jnp.mean((jnp.argmax(logits, axis=-1) == labels).astype(jnp.float32))


# --------------------------------- full forward ---------------------------------
def forward(p, x, labels):
    bsz = x.shape[0]
    losses, accs = {}, {}

    # extractor stub pooling (XLA reshape/mean glue only); per-layer token slabs with
    # batch folded into rows, packed layer-major into one [B*T, 3] slab.
    toks = []
    for (L, _) in LAYER_DIMS:
        S = int(L ** 0.5)
        kk = IN_SIZE // S
        pooled = x.reshape(bsz, 3, S, kk, S, kk).mean(axis=(3, 5))   # [B, 3, S, S]
        toks.append(jnp.transpose(pooled, (0, 2, 3, 1)).reshape(bsz * L, 3))
    tok_flat = jnp.concatenate(toks, axis=0)                         # [B*T, 3]

    # positive-pair mask for the contrastive loss (labels repeated per layer-3 token)
    L3 = LAYER_DIMS[3][0]
    rep = jnp.repeat(labels, L3)
    pos_mask = (rep[:, None] == rep[None, :]).astype(jnp.float32)    # [B*L3, B*L3]

    # fold eval-mode BatchNorm2d into the first 1x1 conv of each classifier (bf16 weights)
    scale = p["bn_g"] / jnp.sqrt(p["bn_var"] + 1e-5)
    cw1f = (p["cw1"] * scale).astype(jnp.bfloat16)
    cb1f = (p["cb1"] - p["bn_mean"]) * scale + p["bn_b"]

    # ---- fused pyramid kernel: embed + FPN + combine + classifiers + ori + contrast ----
    feat_flat, lg_flat, ori_pad, closs = run_pyramid(p, tok_flat, pos_mask, cw1f, cb1f)

    # unpack the layer-major [B*T, ...] slabs back to [B, T, ...]
    feats, logits_l = [], []
    for i, (L, _) in enumerate(LAYER_DIMS):
        r0 = ROFF[i]
        feats.append(feat_flat[r0:r0 + bsz * L].reshape(bsz, L, G))
        logits_l.append(lg_flat[r0:r0 + bsz * L, :NUM_CLASSES].reshape(bsz, L, NUM_CLASSES))
    feat = jnp.concatenate(feats, axis=1)                            # [B, T, G] bf16
    logits_bt = jnp.concatenate(logits_l, axis=1)                    # [B, T, NC] f32
    ori_logits = ori_pad[:, :NUM_CLASSES]

    # ---- token selection (_select_features): max softmax prob, computed in XLA ----
    mx = jnp.max(logits_bt, axis=-1)
    conf = 1.0 / jnp.sum(jnp.exp(logits_bt - mx[..., None]), axis=-1)  # [B, T]
    # TODO(synk): torch.sort(descending=True) tie-breaking may differ from argsort(-conf).
    ranks = jnp.argsort(-conf, axis=-1)
    sel_idx, nsel_idx = ranks[:, :NUM_SELECT], ranks[:, NUM_SELECT:]
    sel_feat = jnp.take_along_axis(feat, sel_idx[:, :, None], axis=1)      # [B, 44, G] bf16
    sel_logits = jnp.take_along_axis(logits_bt, sel_idx[:, :, None], axis=1)
    nsel_logits = jnp.take_along_axis(logits_bt, nsel_idx[:, :, None], axis=1)

    # ---- _select_loss ----
    losses["la_selected"] = jnp.float32(0.0)
    t = jnp.tanh(nsel_logits)
    losses["la_not_selected"] = 5.0 * jnp.mean((t + 1.0) ** 2)
    accs["la_selected"] = jnp.mean(
        (jnp.argmax(sel_logits, -1) == labels[:, None]).astype(jnp.float32))
    accs["la_not_selected"] = jnp.mean(
        (jnp.argmax(nsel_logits, -1) == labels[:, None]).astype(jnp.float32))

    # ---- ori branch (use_ori=True, use_contrast=True, not only_ori) ----
    losses["contrast"] = closs[0, 0]
    losses["ori"] = cross_entropy(ori_logits, labels)
    accs["ori"] = accuracy(ori_logits, labels)

    # ---- GCN branch (use_gcn=True) ----
    gcn_logits = run_gcn(p, sel_feat)[:, :NUM_CLASSES]
    losses["gcn"] = cross_entropy(gcn_logits, labels)
    accs["gcn"] = accuracy(gcn_logits, labels)

    # ---- per-layer losses (_loss with merge=True: token-mean of per-token logits) ----
    for i in range(NUM_LAYERS):
        mg = jnp.mean(logits_l[i], axis=1)                           # [B, NC]
        losses[f"l_{i}"] = 0.5 * cross_entropy(mg, labels)
        accs[f"l_{i}"] = accuracy(mg, labels)

    return losses, accs, {}


if __name__ == "__main__":
    key = jax.random.PRNGKey(0)
    kp, kx, kl = jax.random.split(key, 3)
    params = init_params(kp)
    x = jax.random.normal(kx, (B, 3, IN_SIZE, IN_SIZE), jnp.float32)
    labels = jax.random.randint(kl, (B,), 0, NUM_CLASSES)

    fwd = jax.jit(forward)
    losses, accs, logs = fwd(params, x, labels)
    jax.block_until_ready((losses, accs))
    print("KERNEL_OK")
</pallas_src>

<mosaic_0001>
module attributes {stable_mosaic.version = 11 : i64} {
  func.func @_pyramid_kernel(%arg0: memref<176x3xf32, #tpu.memory_space<vmem>>, %arg1: memref<8x8xf32, #tpu.memory_space<vmem>>, %arg2: memref<3x352xf32, #tpu.memory_space<vmem>>, %arg3: memref<1x352xf32, #tpu.memory_space<vmem>>, %arg4: memref<32x32xbf16, #tpu.memory_space<vmem>>, %arg5: memref<64x64xbf16, #tpu.memory_space<vmem>>, %arg6: memref<128x128xbf16, #tpu.memory_space<vmem>>, %arg7: memref<128x128xbf16, #tpu.memory_space<vmem>>, %arg8: memref<1x352xf32, #tpu.memory_space<vmem>>, %arg9: memref<352x64xbf16, #tpu.memory_space<vmem>>, %arg10: memref<4x1x64xf32, #tpu.memory_space<vmem>>, %arg11: memref<64x16xbf16, #tpu.memory_space<vmem>>, %arg12: memref<64x1xf32, #tpu.memory_space<vmem>>, %arg13: memref<16x4xf32, #tpu.memory_space<vmem>>, %arg14: memref<16x1xf32, #tpu.memory_space<vmem>>, %arg15: memref<4x64x64xbf16, #tpu.memory_space<vmem>>, %arg16: memref<4x1x64xf32, #tpu.memory_space<vmem>>, %arg17: memref<4x64x128xbf16, #tpu.memory_space<vmem>>, %arg18: memref<4x1x128xf32, #tpu.memory_space<vmem>>, %arg19: memref<1x64xf32, #tpu.memory_space<vmem>>, %arg20: memref<1x64xf32, #tpu.memory_space<vmem>>, %arg21: memref<64x128xbf16, #tpu.memory_space<vmem>>, %arg22: memref<1x128xf32, #tpu.memory_space<vmem>>, %arg23: memref<176x64xbf16, #tpu.memory_space<vmem>>, %arg24: memref<176x128xf32, #tpu.memory_space<vmem>>, %arg25: memref<2x128xf32, #tpu.memory_space<vmem>>, %arg26: memref<1x1xf32, #tpu.memory_space<vmem>>) attributes {dimension_semantics = [], scalar_prefetch = 0 : i64, scratch_operands = 0 : i64, tpu.core_type = #tpu.core_type<tc>} {
    %c0 = arith.constant 0 : index
    %c0_0 = arith.constant 0 : index
    %0 = vector.load %arg0[%c0, %c0_0] : memref<176x3xf32, #tpu.memory_space<vmem>>, vector<128x3xf32>
    %c0_1 = arith.constant 0 : index
    %c0_2 = arith.constant 0 : index
    %1 = vector.load %arg2[%c0_1, %c0_2] : memref<3x352xf32, #tpu.memory_space<vmem>>, vector<3x32xf32>
    %2 = vector.extract_strided_slice %0 {offsets = [0, 0], sizes = [128, 1], strides = [1, 1]} : vector<128x3xf32> to vector<128x1xf32>
    %3 = vector.extract_strided_slice %1 {offsets = [0, 0], sizes = [1, 32], strides = [1, 1]} : vector<3x32xf32> to vector<1x32xf32>
    %4 = vector.broadcast %2 : vector<128x1xf32> to vector<128x32xf32>
    %5 = vector.broadcast %3 : vector<1x32xf32> to vector<128x32xf32>
    %6 = arith.mulf %4, %5 : vector<128x32xf32>
    %7 = vector.extract_strided_slice %0 {offsets = [0, 1], sizes = [128, 1], strides = [1, 1]} : vector<128x3xf32> to vector<128x1xf32>
    %8 = vector.extract_strided_slice %1 {offsets = [1, 0], sizes = [1, 32], strides = [1, 1]} : vector<3x32xf32> to vector<1x32xf32>
    %9 = vector.broadcast %7 : vector<128x1xf32> to vector<128x32xf32>
    %10 = vector.broadcast %8 : vector<1x32xf32> to vector<128x32xf32>
    %11 = arith.mulf %9, %10 : vector<128x32xf32>
    %12 = arith.addf %6, %11 : vector<128x32xf32>
    %13 = vector.extract_strided_slice %0 {offsets = [0, 2], sizes = [128, 1], strides = [1, 1]} : vector<128x3xf32> to vector<128x1xf32>
    %14 = vector.extract_strided_slice %1 {offsets = [2, 0], sizes = [1, 32], strides = [1, 1]} : vector<3x32xf32> to vector<1x32xf32>
    %15 = vector.broadcast %13 : vector<128x1xf32> to vector<128x32xf32>
    %16 = vector.broadcast %14 : vector<1x32xf32> to vector<128x32xf32>
    %17 = arith.mulf %15, %16 : vector<128x32xf32>
    %18 = arith.addf %12, %17 : vector<128x32xf32>
    %c0_3 = arith.constant 0 : index
    %c0_4 = arith.constant 0 : index
    %19 = vector.load %arg3[%c0_3, %c0_4] : memref<1x352xf32, #tpu.memory_space<vmem>>, vector<1x32xf32>
    %20 = vector.broadcast %19 : vector<1x32xf32> to vector<128x32xf32>
    %21 = arith.addf %18, %20 : vector<128x32xf32>
    %c0_5 = arith.constant 0 : index
    %c0_6 = arith.constant 0 : index
    %22 = vector.load %arg4[%c0_5, %c0_6] : memref<32x32xbf16, #tpu.memory_space<vmem>>, vector<32x32xbf16>
    %23 = arith.truncf %21 : vector<128x32xf32> to vector<128x32xbf16>
    %cst = arith.constant dense<0.000000e+00> : vector<128x32xf32>
    %24 = tpu.matmul %23, %22, %cst {dimension_numbers = #tpu.dot_dimension_numbers<[1], [0], [0], [1], [0, 0, 1, 1], [], []>} : vector<128x32xbf16>, vector<32x32xbf16>, vector<128x32xf32> -> vector<128x32xf32>
    %c0_7 = arith.constant 0 : index
    %c0_8 = arith.constant 0 : index
    %25 = vector.load %arg8[%c0_7, %c0_8] : memref<1x352xf32, #tpu.memory_space<vmem>>, vector<1x32xf32>
    %26 = vector.broadcast %25 : vector<1x32xf32> to vector<128x32xf32>
    %27 = arith.addf %24, %26 : vector<128x32xf32>
    %cst_9 = arith.constant 0.000000e+00 : f32
    %28 = vector.broadcast %cst_9 : f32 to vector<128x32xf32>
    %29 = arith.maximumf %27, %28 : vector<128x32xf32>
    %c0_10 = arith.constant 0 : index
    %c0_11 = arith.constant 0 : index
    %30 = vector.load %arg9[%c0_10, %c0_11] : memref<352x64xbf16, #tpu.memory_space<vmem>>, vector<32x64xbf16>
    %31 = arith.truncf %29 : vector<128x32xf32> to vector<128x32xbf16>
    %cst_12 = arith.constant dense<0.000000e+00> : vector<128x64xf32>
    %32 = tpu.matmul %31, %30, %cst_12 {dimension_numbers = #tpu.dot_dimension_numbers<[1], [0], [0], [1], [0, 0, 1, 1], [], []>} : vector<128x32xbf16>, vector<32x64xbf16>, vector<128x64xf32> -> vector<128x64xf32>
    %c0_13 = arith.constant 0 : index
    %c0_14 = arith.constant 0 : index
    %c0_15 = arith.constant 0 : index
    %33 = vector.load %arg10[%c0_13, %c0_14, %c0_15] : memref<4x1x64xf32, #tpu.memory_space<vmem>>, vector<1x1x64xf32>
    %34 = vector.shape_cast %33 : vector<1x1x64xf32> to vector<1x64xf32>
    %35 = vector.broadcast %34 : vector<1x64xf32> to vector<128x64xf32>
    %36 = arith.addf %32, %35 : vector<128x64xf32>
    %c128 = arith.constant 128 : index
    %c0_16 = arith.constant 0 : index
    %37 = vector.load %arg0[%c128, %c0_16] : memref<176x3xf32, #tpu.memory_space<vmem>>, vector<32x3xf32>
    %c0_17 = arith.constant 0 : index
    %c32 = arith.constant 32 : index
    %38 = vector.load %arg2[%c0_17, %c32] : memref<3x352xf32, #tpu.memory_space<vmem>>, vector<3x64xf32>
    %39 = vector.extract_strided_slice %37 {offsets = [0, 0], sizes = [32, 1], strides = [1, 1]} : vector<32x3xf32> to vector<32x1xf32>
    %40 = vector.extract_strided_slice %38 {offsets = [0, 0], sizes = [1, 64], strides = [1, 1]} : vector<3x64xf32> to vector<1x64xf32>
    %41 = vector.broadcast %39 : vector<32x1xf32> to vector<32x64xf32>
    %42 = vector.broadcast %40 : vector<1x64xf32> to vector<32x64xf32>
    %43 = arith.mulf %41, %42 : vector<32x64xf32>
    %44 = vector.extract_strided_slice %37 {offsets = [0, 1], sizes = [32, 1], strides = [1, 1]} : vector<32x3xf32> to vector<32x1xf32>
    %45 = vector.extract_strided_slice %38 {offsets = [1, 0], sizes = [1, 64], strides = [1, 1]} : vector<3x64xf32> to vector<1x64xf32>
    %46 = vector.broadcast %44 : vector<32x1xf32> to vector<32x64xf32>
    %47 = vector.broadcast %45 : vector<1x64xf32> to vector<32x64xf32>
    %48 = arith.mulf %46, %47 : vector<32x64xf32>
    %49 = arith.addf %43, %48 : vector<32x64xf32>
    %50 = vector.extract_strided_slice %37 {offsets = [0, 2], sizes = [32, 1], strides = [1, 1]} : vector<32x3xf32> to vector<32x1xf32>
    %51 = vector.extract_strided_slice %38 {offsets = [2, 0], sizes = [1, 64], strides = [1, 1]} : vector<3x64xf32> to vector<1x64xf32>
    %52 = vector.broadcast %50 : vector<32x1xf32> to vector<32x64xf32>
    %53 = vector.broadcast %51 : vector<1x64xf32> to vector<32x64xf32>
    %54 = arith.mulf %52, %53 : vector<32x64xf32>
    %55 = arith.addf %49, %54 : vector<32x64xf32>
    %c0_18 = arith.constant 0 : index
    %c32_19 = arith.constant 32 : index
    %56 = vector.load %arg3[%c0_18, %c32_19] : memref<1x352xf32, #tpu.memory_space<vmem>>, vector<1x64xf32>
    %57 = vector.broadcast %56 : vector<1x64xf32> to vector<32x64xf32>
    %58 = arith.addf %55, %57 : vector<32x64xf32>
    %c0_20 = arith.constant 0 : index
    %c0_21 = arith.constant 0 : index
    %59 = vector.load %arg5[%c0_20, %c0_21] : memref<64x64xbf16, #tpu.memory_space<vmem>>, vector<64x64xbf16>
    %60 = arith.truncf %58 : vector<32x64xf32> to vector<32x64xbf16>
    %cst_22 = arith.constant dense<0.000000e+00> : vector<32x64xf32>
    %61 = tpu.matmul %60, %59, %cst_22 {dimension_numbers = #tpu.dot_dimension_numbers<[1], [0], [0], [1], [0, 0, 1, 1], [], []>} : vector<32x64xbf16>, vector<64x64xbf16>, vector<32x64xf32> -> vector<32x64xf32>
    %c0_23 = arith.constant 0 : index
    %c32_24 = arith.constant 32 : index
    %62 = vector.load %arg8[%c0_23, %c32_24] : memref<1x352xf32, #tpu.memory_space<vmem>>, vector<1x64xf32>
    %63 = vector.broadcast %62 : vector<1x64xf32> to vector<32x64xf32>
    %64 = arith.addf %61, %63 : vector<32x64xf32>
    %cst_25 = arith.constant 0.000000e+00 : f32
    %65 = vector.broadcast %cst_25 : f32 to vector<32x64xf32>
    %66 = arith.maximumf %64, %65 : vector<32x64xf32>
    %c32_26 = arith.constant 32 : index
    %c0_27 = arith.constant 0 : index
    %67 = vector.load %arg9[%c32_26, %c0_27] : memref<352x64xbf16, #tpu.memory_space<vmem>>, vector<64x64xbf16>
    %68 = arith.truncf %66 : vector<32x64xf32> to vector<32x64xbf16>
    %cst_28 = arith.constant dense<0.000000e+00> : vector<32x64xf32>
    %69 = tpu.matmul %68, %67, %cst_28 {dimension_numbers = #tpu.dot_dimension_numbers<[1], [0], [0], [1], [0, 0, 1, 1], [], []>} : vector<32x64xbf16>, vector<64x64xbf16>, vector<32x64xf32> -> vector<32x64xf32>
    %c1 = arith.constant 1 : index
    %c0_29 = arith.constant 0 : index
    %c0_30 = arith.constant 0 : index
    %70 = vector.load %arg10[%c1, %c0_29, %c0_30] : memref<4x1x64xf32, #tpu.memory_space<vmem>>, vector<1x1x64xf32>
    %71 = vector.shape_cast %70 : vector<1x1x64xf32> to vector<1x64xf32>
    %72 = vector.broadcast %71 : vector<1x64xf32> to vector<32x64xf32>
    %73 = arith.addf %69, %72 : vector<32x64xf32>
    %c160 = arith.constant 160 : index
    %c0_31 = arith.constant 0 : index
    %74 = vector.load %arg0[%c160, %c0_31] : memref<176x3xf32, #tpu.memory_space<vmem>>, vector<8x3xf32>
    %c0_32 = arith.constant 0 : index
    %c96 = arith.constant 96 : index
    %75 = vector.load %arg2[%c0_32, %c96] : memref<3x352xf32, #tpu.memory_space<vmem>>, vector<3x128xf32>
    %76 = vector.extract_strided_slice %74 {offsets = [0, 0], sizes = [8, 1], strides = [1, 1]} : vector<8x3xf32> to vector<8x1xf32>
    %77 = vector.extract_strided_slice %75 {offsets = [0, 0], sizes = [1, 128], strides = [1, 1]} : vector<3x128xf32> to vector<1x128xf32>
    %78 = vector.broadcast %76 : vector<8x1xf32> to vector<8x128xf32>
    %79 = vector.broadcast %77 : vector<1x128xf32> to vector<8x128xf32>
    %80 = arith.mulf %78, %79 : vector<8x128xf32>
    %81 = vector.extract_strided_slice %74 {offsets = [0, 1], sizes = [8, 1], strides = [1, 1]} : vector<8x3xf32> to vector<8x1xf32>
    %82 = vector.extract_strided_slice %75 {offsets = [1, 0], sizes = [1, 128], strides = [1, 1]} : vector<3x128xf32> to vector<1x128xf32>
    %83 = vector.broadcast %81 : vector<8x1xf32> to vector<8x128xf32>
    %84 = vector.broadcast %82 : vector<1x128xf32> to vector<8x128xf32>
    %85 = arith.mulf %83, %84 : vector<8x128xf32>
    %86 = arith.addf %80, %85 : vector<8x128xf32>
    %87 = vector.extract_strided_slice %74 {offsets = [0, 2], sizes = [8, 1], strides = [1, 1]} : vector<8x3xf32> to vector<8x1xf32>
    %88 = vector.extract_strided_slice %75 {offsets = [2, 0], sizes = [1, 128], strides = [1, 1]} : vector<3x128xf32> to vector<1x128xf32>
    %89 = vector.broadcast %87 : vector<8x1xf32> to vector<8x128xf32>
    %90 = vector.broadcast %88 : vector<1x128xf32> to vector<8x128xf32>
    %91 = arith.mulf %89, %90 : vector<8x128xf32>
    %92 = arith.addf %86, %91 : vector<8x128xf32>
    %c0_33 = arith.constant 0 : index
    %c96_34 = arith.constant 96 : index
    %93 = vector.load %arg3[%c0_33, %c96_34] : memref<1x352xf32, #tpu.memory_space<vmem>>, vector<1x128xf32>
    %94 = vector.broadcast %93 : vector<1x128xf32> to vector<8x128xf32>
    %95 = arith.addf %92, %94 : vector<8x128xf32>
    %c0_35 = arith.constant 0 : index
    %c0_36 = arith.constant 0 : index
    %96 = vector.load %arg6[%c0_35, %c0_36] : memref<128x128xbf16, #tpu.memory_space<vmem>>, vector<128x128xbf16>
    %97 = arith.truncf %95 : vector<8x128xf32> to vector<8x128xbf16>
    %cst_37 = arith.constant dense<0.000000e+00> : vector<8x128xf32>
    %98 = tpu.matmul %97, %96, %cst_37 {dimension_numbers = #tpu.dot_dimension_numbers<[1], [0], [0], [1], [0, 0, 1, 1], [], []>} : vector<8x128xbf16>, vector<128x128xbf16>, vector<8x128xf32> -> vector<8x128xf32>
    %c0_38 = arith.constant 0 : index
    %c96_39 = arith.constant 96 : index
    %99 = vector.load %arg8[%c0_38, %c96_39] : memref<1x352xf32, #tpu.memory_space<vmem>>, vector<1x128xf32>
    %100 = vector.broadcast %99 : vector<1x128xf32> to vector<8x128xf32>
    %101 = arith.addf %98, %100 : vector<8x128xf32>
    %cst_40 = arith.constant 0.000000e+00 : f32
    %102 = vector.broadcast %cst_40 : f32 to vector<8x128xf32>
    %103 = arith.maximumf %101, %102 : vector<8x128xf32>
    %c96_41 = arith.constant 96 : index
    %c0_42 = arith.constant 0 : index
    %104 = vector.load %arg9[%c96_41, %c0_42] : memref<352x64xbf16, #tpu.memory_space<vmem>>, vector<128x64xbf16>
    %105 = arith.truncf %103 : vector<8x128xf32> to vector<8x128xbf16>
    %cst_43 = arith.constant dense<0.000000e+00> : vector<8x64xf32>
    %106 = tpu.matmul %105, %104, %cst_43 {dimension_numbers = #tpu.dot_dimension_numbers<[1], [0], [0], [1], [0, 0, 1, 1], [], []>} : vector<8x128xbf16>, vector<128x64xbf16>, vector<8x64xf32> -> vector<8x64xf32>
    %c2 = arith.constant 2 : index
    %c0_44 = arith.constant 0 : index
    %c0_45 = arith.constant 0 : index
    %107 = vector.load %arg10[%c2, %c0_44, %c0_45] : memref<4x1x64xf32, #tpu.memory_space<vmem>>, vector<1x1x64xf32>
    %108 = vector.shape_cast %107 : vector<1x1x64xf32> to vector<1x64xf32>
    %109 = vector.broadcast %108 : vector<1x64xf32> to vector<8x64xf32>
    %110 = arith.addf %106, %109 : vector<8x64xf32>
    %c168 = arith.constant 168 : index
    %c0_46 = arith.constant 0 : index
    %111 = vector.load %arg0[%c168, %c0_46] : memref<176x3xf32, #tpu.memory_space<vmem>>, vector<8x3xf32>
    %c0_47 = arith.constant 0 : index
    %c224 = arith.constant 224 : index
    %112 = vector.load %arg2[%c0_47, %c224] : memref<3x352xf32, #tpu.memory_space<vmem>>, vector<3x128xf32>
    %113 = vector.extract_strided_slice %111 {offsets = [0, 0], sizes = [8, 1], strides = [1, 1]} : vector<8x3xf32> to vector<8x1xf32>
    %114 = vector.extract_strided_slice %112 {offsets = [0, 0], sizes = [1, 128], strides = [1, 1]} : vector<3x128xf32> to vector<1x128xf32>
    %115 = vector.broadcast %113 : vector<8x1xf32> to vector<8x128xf32>
    %116 = vector.broadcast %114 : vector<1x128xf32> to vector<8x128xf32>
    %117 = arith.mulf %115, %116 : vector<8x128xf32>
    %118 = vector.extract_strided_slice %111 {offsets = [0, 1], sizes = [8, 1], strides = [1, 1]} : vector<8x3xf32> to vector<8x1xf32>
    %119 = vector.extract_strided_slice %112 {offsets = [1, 0], sizes = [1, 128], strides = [1, 1]} : vector<3x128xf32> to vector<1x128xf32>
    %120 = vector.broadcast %118 : vector<8x1xf32> to vector<8x128xf32>
    %121 = vector.broadcast %119 : vector<1x128xf32> to vector<8x128xf32>
    %122 = arith.mulf %120, %121 : vector<8x128xf32>
    %123 = arith.addf %117, %122 : vector<8x128xf32>
    %124 = vector.extract_strided_slice %111 {offsets = [0, 2], sizes = [8, 1], strides = [1, 1]} : vector<8x3xf32> to vector<8x1xf32>
    %125 = vector.extract_strided_slice %112 {offsets = [2, 0], sizes = [1, 128], strides = [1, 1]} : vector<3x128xf32> to vector<1x128xf32>
    %126 = vector.broadcast %124 : vector<8x1xf32> to vector<8x128xf32>
    %127 = vector.broadcast %125 : vector<1x128xf32> to vector<8x128xf32>
    %128 = arith.mulf %126, %127 : vector<8x128xf32>
    %129 = arith.addf %123, %128 : vector<8x128xf32>
    %c0_48 = arith.constant 0 : index
    %c224_49 = arith.constant 224 : index
    %130 = vector.load %arg3[%c0_48, %c224_49] : memref<1x352xf32, #tpu.memory_space<vmem>>, vector<1x128xf32>
    %131 = vector.broadcast %130 : vector<1x128xf32> to vector<8x128xf32>
    %132 = arith.addf %129, %131 : vector<8x128xf32>
    %c0_50 = arith.constant 0 : index
    %c0_51 = arith.constant 0 : index
    %133 = vector.load %arg7[%c0_50, %c0_51] : memref<128x128xbf16, #tpu.memory_space<vmem>>, vector<128x128xbf16>
    %134 = arith.truncf %132 : vector<8x128xf32> to vector<8x128xbf16>
    %cst_52 = arith.constant dense<0.000000e+00> : vector<8x128xf32>
    %135 = tpu.matmul %134, %133, %cst_52 {dimension_numbers = #tpu.dot_dimension_numbers<[1], [0], [0], [1], [0, 0, 1, 1], [], []>} : vector<8x128xbf16>, vector<128x128xbf16>, vector<8x128xf32> -> vector<8x128xf32>
    %c0_53 = arith.constant 0 : index
    %c224_54 = arith.constant 224 : index
    %136 = vector.load %arg8[%c0_53, %c224_54] : memref<1x352xf32, #tpu.memory_space<vmem>>, vector<1x128xf32>
    %137 = vector.broadcast %136 : vector<1x128xf32> to vector<8x128xf32>
    %138 = arith.addf %135, %137 : vector<8x128xf32>
    %cst_55 = arith.constant 0.000000e+00 : f32
    %139 = vector.broadcast %cst_55 : f32 to vector<8x128xf32>
    %140 = arith.maximumf %138, %139 : vector<8x128xf32>
    %c224_56 = arith.constant 224 : index
    %c0_57 = arith.constant 0 : index
    %141 = vector.load %arg9[%c224_56, %c0_57] : memref<352x64xbf16, #tpu.memory_space<vmem>>, vector<128x64xbf16>
    %142 = arith.truncf %140 : vector<8x128xf32> to vector<8x128xbf16>
    %cst_58 = arith.constant dense<0.000000e+00> : vector<8x64xf32>
    %143 = tpu.matmul %142, %141, %cst_58 {dimension_numbers = #tpu.dot_dimension_numbers<[1], [0], [0], [1], [0, 0, 1, 1], [], []>} : vector<8x128xbf16>, vector<128x64xbf16>, vector<8x64xf32> -> vector<8x64xf32>
    %c3 = arith.constant 3 : index
    %c0_59 = arith.constant 0 : index
    %c0_60 = arith.constant 0 : index
    %144 = vector.load %arg10[%c3, %c0_59, %c0_60] : memref<4x1x64xf32, #tpu.memory_space<vmem>>, vector<1x1x64xf32>
    %145 = vector.shape_cast %144 : vector<1x1x64xf32> to vector<1x64xf32>
    %146 = vector.broadcast %145 : vector<1x64xf32> to vector<8x64xf32>
    %147 = arith.addf %143, %146 : vector<8x64xf32>
    %148 = arith.addf %110, %147 : vector<8x64xf32>
    %149 = vector.extract_strided_slice %148 {offsets = [0, 0], sizes = [4, 64], strides = [1, 1]} : vector<8x64xf32> to vector<4x64xf32>
    %c0_61 = arith.constant 0 : index
    %c0_62 = arith.constant 0 : index
    %150 = vector.load %arg14[%c0_61, %c0_62] : memref<16x1xf32, #tpu.memory_space<vmem>>, vector<16x1xf32>
    %c0_63 = arith.constant 0 : index
    %c0_64 = arith.constant 0 : index
    %151 = vector.load %arg13[%c0_63, %c0_64] : memref<16x4xf32, #tpu.memory_space<vmem>>, vector<16x1xf32>
    %152 = vector.extract_strided_slice %149 {offsets = [0, 0], sizes = [1, 64], strides = [1, 1]} : vector<4x64xf32> to vector<1x64xf32>
    %153 = vector.broadcast %151 : vector<16x1xf32> to vector<16x64xf32>
    %154 = vector.broadcast %152 : vector<1x64xf32> to vector<16x64xf32>
    %155 = arith.mulf %153, %154 : vector<16x64xf32>
    %156 = vector.broadcast %150 : vector<16x1xf32> to vector<16x64xf32>
    %157 = arith.addf %156, %155 : vector<16x64xf32>
    %c0_65 = arith.constant 0 : index
    %c1_66 = arith.constant 1 : index
    %158 = vector.load %arg13[%c0_65, %c1_66] : memref<16x4xf32, #tpu.memory_space<vmem>>, vector<16x1xf32>
    %159 = vector.extract_strided_slice %149 {offsets = [1, 0], sizes = [1, 64], strides = [1, 1]} : vector<4x64xf32> to vector<1x64xf32>
    %160 = vector.broadcast %158 : vector<16x1xf32> to vector<16x64xf32>
    %161 = vector.broadcast %159 : vector<1x64xf32> to vector<16x64xf32>
    %162 = arith.mulf %160, %161 : vector<16x64xf32>
    %163 = arith.addf %157, %162 : vector<16x64xf32>
    %c0_67 = arith.constant 0 : index
    %c2_68 = arith.constant 2 : index
    %164 = vector.load %arg13[%c0_67, %c2_68] : memref<16x4xf32, #tpu.memory_space<vmem>>, vector<16x1xf32>
    %165 = vector.extract_strided_slice %149 {offsets = [2, 0], sizes = [1, 64], strides = [1, 1]} : vector<4x64xf32> to vector<1x64xf32>
    %166 = vector.broadcast %164 : vector<16x1xf32> to vector<16x64xf32>
    %167 = vector.broadcast %165 : vector<1x64xf32> to vector<16x64xf32>
    %168 = arith.mulf %166, %167 : vector<16x64xf32>
    %169 = arith.addf %163, %168 : vector<16x64xf32>
    %c0_69 = arith.constant 0 : index
    %c3_70 = arith.constant 3 : index
    %170 = vector.load %arg13[%c0_69, %c3_70] : memref<16x4xf32, #tpu.memory_space<vmem>>, vector<16x1xf32>
    %171 = vector.extract_strided_slice %149 {offsets = [3, 0], sizes = [1, 64], strides = [1, 1]} : vector<4x64xf32> to vector<1x64xf32>
    %172 = vector.broadcast %170 : vector<16x1xf32> to vector<16x64xf32>
    %173 = vector.broadcast %171 : vector<1x64xf32> to vector<16x64xf32>
    %174 = arith.mulf %172, %173 : vector<16x64xf32>
    %175 = arith.addf %169, %174 : vector<16x64xf32>
    %176 = vector.extract_strided_slice %148 {offsets = [4, 0], sizes = [4, 64], strides = [1, 1]} : vector<8x64xf32> to vector<4x64xf32>
    %c0_71 = arith.constant 0 : index
    %c0_72 = arith.constant 0 : index
    %177 = vector.load %arg14[%c0_71, %c0_72] : memref<16x1xf32, #tpu.memory_space<vmem>>, vector<16x1xf32>
    %c0_73 = arith.constant 0 : index
    %c0_74 = arith.constant 0 : index
    %178 = vector.load %arg13[%c0_73, %c0_74] : memref<16x4xf32, #tpu.memory_space<vmem>>, vector<16x1xf32>
    %179 = vector.extract_strided_slice %176 {offsets = [0, 0], sizes = [1, 64], strides = [1, 1]} : vector<4x64xf32> to vector<1x64xf32>
    %180 = vector.broadcast %178 : vector<16x1xf32> to vector<16x64xf32>
    %181 = vector.broadcast %179 : vector<1x64xf32> to vector<16x64xf32>
    %182 = arith.mulf %180, %181 : vector<16x64xf32>
    %183 = vector.broadcast %177 : vector<16x1xf32> to vector<16x64xf32>
    %184 = arith.addf %183, %182 : vector<16x64xf32>
    %c0_75 = arith.constant 0 : index
    %c1_76 = arith.constant 1 : index
    %185 = vector.load %arg13[%c0_75, %c1_76] : memref<16x4xf32, #tpu.memory_space<vmem>>, vector<16x1xf32>
    %186 = vector.extract_strided_slice %176 {offsets = [1, 0], sizes = [1, 64], strides = [1, 1]} : vector<4x64xf32> to vector<1x64xf32>
    %187 = vector.broadcast %185 : vector<16x1xf32> to vector<16x64xf32>
    %188 = vector.broadcast %186 : vector<1x64xf32> to vector<16x64xf32>
    %189 = arith.mulf %187, %188 : vector<16x64xf32>
    %190 = arith.addf %184, %189 : vector<16x64xf32>
    %c0_77 = arith.constant 0 : index
    %c2_78 = arith.constant 2 : index
    %191 = vector.load %arg13[%c0_77, %c2_78] : memref<16x4xf32, #tpu.memory_space<vmem>>, vector<16x1xf32>
    %192 = vector.extract_strided_slice %176 {offsets = [2, 0], sizes = [1, 64], strides = [1, 1]} : vector<4x64xf32> to vector<1x64xf32>
    %193 = vector.broadcast %191 : vector<16x1xf32> to vector<16x64xf32>
    %194 = vector.broadcast %192 : vector<1x64xf32> to vector<16x64xf32>
    %195 = arith.mulf %193, %194 : vector<16x64xf32>
    %196 = arith.addf %190, %195 : vector<16x64xf32>
    %c0_79 = arith.constant 0 : index
    %c3_80 = arith.constant 3 : index
    %197 = vector.load %arg13[%c0_79, %c3_80] : memref<16x4xf32, #tpu.memory_space<vmem>>, vector<16x1xf32>
    %198 = vector.extract_strided_slice %176 {offsets = [3, 0], sizes = [1, 64], strides = [1, 1]} : vector<4x64xf32> to vector<1x64xf32>
    %199 = vector.broadcast %197 : vector<16x1xf32> to vector<16x64xf32>
    %200 = vector.broadcast %198 : vector<1x64xf32> to vector<16x64xf32>
    %201 = arith.mulf %199, %200 : vector<16x64xf32>
    %202 = arith.addf %196, %201 : vector<16x64xf32>
    %203 = tpu.concatenate %175, %202 in 0 : vector<16x64xf32>, vector<16x64xf32> -> vector<32x64xf32>
    %204 = arith.addf %73, %203 : vector<32x64xf32>
    %205 = vector.extract_strided_slice %204 {offsets = [0, 0], sizes = [16, 64], strides = [1, 1]} : vector<32x64xf32> to vector<16x64xf32>
    %c0_81 = arith.constant 0 : index
    %c0_82 = arith.constant 0 : index
    %206 = vector.load %arg11[%c0_81, %c0_82] : memref<64x16xbf16, #tpu.memory_space<vmem>>, vector<64x16xbf16>
    %207 = arith.truncf %205 : vector<16x64xf32> to vector<16x64xbf16>
    %cst_83 = arith.constant dense<0.000000e+00> : vector<64x64xf32>
    %208 = tpu.matmul %206, %207, %cst_83 {dimension_numbers = #tpu.dot_dimension_numbers<[1], [0], [0], [1], [0, 0, 1, 1], [], []>} : vector<64x16xbf16>, vector<16x64xbf16>, vector<64x64xf32> -> vector<64x64xf32>
    %c0_84 = arith.constant 0 : index
    %c0_85 = arith.constant 0 : index
    %209 = vector.load %arg12[%c0_84, %c0_85] : memref<64x1xf32, #tpu.memory_space<vmem>>, vector<64x1xf32>
    %210 = vector.broadcast %209 : vector<64x1xf32> to vector<64x64xf32>
    %211 = arith.addf %208, %210 : vector<64x64xf32>
    %212 = vector.extract_strided_slice %204 {offsets = [16, 0], sizes = [16, 64], strides = [1, 1]} : vector<32x64xf32> to vector<16x64xf32>
    %c0_86 = arith.constant 0 : index
    %c0_87 = arith.constant 0 : index
    %213 = vector.load %arg11[%c0_86, %c0_87] : memref<64x16xbf16, #tpu.memory_space<vmem>>, vector<64x16xbf16>
    %214 = arith.truncf %212 : vector<16x64xf32> to vector<16x64xbf16>
    %cst_88 = arith.constant dense<0.000000e+00> : vector<64x64xf32>
    %215 = tpu.matmul %213, %214, %cst_88 {dimension_numbers = #tpu.dot_dimension_numbers<[1], [0], [0], [1], [0, 0, 1, 1], [], []>} : vector<64x16xbf16>, vector<16x64xbf16>, vector<64x64xf32> -> vector<64x64xf32>
    %c0_89 = arith.constant 0 : index
    %c0_90 = arith.constant 0 : index
    %216 = vector.load %arg12[%c0_89, %c0_90] : memref<64x1xf32, #tpu.memory_space<vmem>>, vector<64x1xf32>
    %217 = vector.broadcast %216 : vector<64x1xf32> to vector<64x64xf32>
    %218 = arith.addf %215, %217 : vector<64x64xf32>
    %219 = tpu.concatenate %211, %218 in 0 : vector<64x64xf32>, vector<64x64xf32> -> vector<128x64xf32>
    %220 = arith.addf %36, %219 : vector<128x64xf32>
    %221 = arith.truncf %220 : vector<128x64xf32> to vector<128x64xbf16>
    %c0_91 = arith.constant 0 : index
    %c0_92 = arith.constant 0 : index
    %222 = vector.load %arg23[%c0_91, %c0_92] : memref<176x64xbf16, #tpu.memory_space<vmem>>, vector<128x64xbf16>
    tpu.vector_store %arg23[%c0_91, %c0_92], %221 {strides = array<i32>} : memref<176x64xbf16, #tpu.memory_space<vmem>>, vector<128x64xbf16>,
    %c0_93 = arith.constant 0 : index
    %c0_94 = arith.constant 0 : index
    %c0_95 = arith.constant 0 : index
    %223 = vector.load %arg15[%c0_93, %c0_94, %c0_95] : memref<4x64x64xbf16, #tpu.memory_space<vmem>>, vector<1x64x64xbf16>
    %224 = vector.shape_cast %223 : vector<1x64x64xbf16> to vector<64x64xbf16>
    %225 = arith.truncf %220 : vector<128x64xf32> to vector<128x64xbf16>
    %cst_96 = arith.constant dense<0.000000e+00> : vector<128x64xf32>
    %226 = tpu.matmul %225, %224, %cst_96 {dimension_numbers = #tpu.dot_dimension_numbers<[1], [0], [0], [1], [0, 0, 1, 1], [], []>} : vector<128x64xbf16>, vector<64x64xbf16>, vector<128x64xf32> -> vector<128x64xf32>
    %c0_97 = arith.constant 0 : index
    %c0_98 = arith.constant 0 : index
    %c0_99 = arith.constant 0 : index
    %227 = vector.load %arg16[%c0_97, %c0_98, %c0_99] : memref<4x1x64xf32, #tpu.memory_space<vmem>>, vector<1x1x64xf32>
    %228 = vector.shape_cast %227 : vector<1x1x64xf32> to vector<1x64xf32>
    %229 = vector.broadcast %228 : vector<1x64xf32> to vector<128x64xf32>
    %230 = arith.addf %226, %229 : vector<128x64xf32>
    %cst_100 = arith.constant 0.000000e+00 : f32
    %231 = vector.broadcast %cst_100 : f32 to vector<128x64xf32>
    %232 = arith.maximumf %230, %231 : vector<128x64xf32>
    %c0_101 = arith.constant 0 : index
    %c0_102 = arith.constant 0 : index
    %c0_103 = arith.constant 0 : index
    %233 = vector.load %arg17[%c0_101, %c0_102, %c0_103] : memref<4x64x128xbf16, #tpu.memory_space<vmem>>, vector<1x64x128xbf16>
    %234 = vector.shape_cast %233 : vector<1x64x128xbf16> to vector<64x128xbf16>
    %235 = arith.truncf %232 : vector<128x64xf32> to vector<128x64xbf16>
    %cst_104 = arith.constant dense<0.000000e+00> : vector<128x128xf32>
    %236 = tpu.matmul %235, %234, %cst_104 {dimension_numbers = #tpu.dot_dimension_numbers<[1], [0], [0], [1], [0, 0, 1, 1], [], []>} : vector<128x64xbf16>, vector<64x128xbf16>, vector<128x128xf32> -> vector<128x128xf32>
    %c0_105 = arith.constant 0 : index
    %c0_106 = arith.constant 0 : index
    %c0_107 = arith.constant 0 : index
    %237 = vector.load %arg18[%c0_105, %c0_106, %c0_107] : memref<4x1x128xf32, #tpu.memory_space<vmem>>, vector<1x1x128xf32>
    %238 = vector.shape_cast %237 : vector<1x1x128xf32> to vector<1x128xf32>
    %239 = vector.broadcast %238 : vector<1x128xf32> to vector<128x128xf32>
    %240 = arith.addf %236, %239 : vector<128x128xf32>
    %c0_108 = arith.constant 0 : index
    %c0_109 = arith.constant 0 : index
    %241 = vector.load %arg24[%c0_108, %c0_109] : memref<176x128xf32, #tpu.memory_space<vmem>>, vector<128x128xf32>
    tpu.vector_store %arg24[%c0_108, %c0_109], %240 {strides = array<i32>} : memref<176x128xf32, #tpu.memory_space<vmem>>, vector<128x128xf32>,
    %242 = arith.truncf %204 : vector<32x64xf32> to vector<32x64xbf16>
    %c128_110 = arith.constant 128 : index
    %c0_111 = arith.constant 0 : index
    %243 = vector.load %arg23[%c128_110, %c0_111] : memref<176x64xbf16, #tpu.memory_space<vmem>>, vector<32x64xbf16>
    tpu.vector_store %arg23[%c128_110, %c0_111], %242 {strides = array<i32>} : memref<176x64xbf16, #tpu.memory_space<vmem>>, vector<32x64xbf16>,
    %c1_112 = arith.constant 1 : index
    %c0_113 = arith.constant 0 : index
    %c0_114 = arith.constant 0 : index
    %244 = vector.load %arg15[%c1_112, %c0_113, %c0_114] : memref<4x64x64xbf16, #tpu.memory_space<vmem>>, vector<1x64x64xbf16>
    %245 = vector.shape_cast %244 : vector<1x64x64xbf16> to vector<64x64xbf16>
    %246 = arith.truncf %204 : vector<32x64xf32> to vector<32x64xbf16>
    %cst_115 = arith.constant dense<0.000000e+00> : vector<32x64xf32>
    %247 = tpu.matmul %246, %245, %cst_115 {dimension_numbers = #tpu.dot_dimension_numbers<[1], [0], [0], [1], [0, 0, 1, 1], [], []>} : vector<32x64xbf16>, vector<64x64xbf16>, vector<32x64xf32> -> vector<32x64xf32>
    %c1_116 = arith.constant 1 : index
    %c0_117 = arith.constant 0 : index
    %c0_118 = arith.constant 0 : index
    %248 = vector.load %arg16[%c1_116, %c0_117, %c0_118] : memref<4x1x64xf32, #tpu.memory_space<vmem>>, vector<1x1x64xf32>
    %249 = vector.shape_cast %248 : vector<1x1x64xf32> to vector<1x64xf32>
    %250 = vector.broadcast %249 : vector<1x64xf32> to vector<32x64xf32>
    %251 = arith.addf %247, %250 : vector<32x64xf32>
    %cst_119 = arith.constant 0.000000e+00 : f32
    %252 = vector.broadcast %cst_119 : f32 to vector<32x64xf32>
    %253 = arith.maximumf %251, %252 : vector<32x64xf32>
    %c1_120 = arith.constant 1 : index
    %c0_121 = arith.constant 0 : index
    %c0_122 = arith.constant 0 : index
    %254 = vector.load %arg17[%c1_120, %c0_121, %c0_122] : memref<4x64x128xbf16, #tpu.memory_space<vmem>>, vector<1x64x128xbf16>
    %255 = vector.shape_cast %254 : vector<1x64x128xbf16> to vector<64x128xbf16>
    %256 = arith.truncf %253 : vector<32x64xf32> to vector<32x64xbf16>
    %cst_123 = arith.constant dense<0.000000e+00> : vector<32x128xf32>
    %257 = tpu.matmul %256, %255, %cst_123 {dimension_numbers = #tpu.dot_dimension_numbers<[1], [0], [0], [1], [0, 0, 1, 1], [], []>} : vector<32x64xbf16>, vector<64x128xbf16>, vector<32x128xf32> -> vector<32x128xf32>
    %c1_124 = arith.constant 1 : index
    %c0_125 = arith.constant 0 : index
    %c0_126 = arith.constant 0 : index
    %258 = vector.load %arg18[%c1_124, %c0_125, %c0_126] : memref<4x1x128xf32, #tpu.memory_space<vmem>>, vector<1x1x128xf32>
    %259 = vector.shape_cast %258 : vector<1x1x128xf32> to vector<1x128xf32>
    %260 = vector.broadcast %259 : vector<1x128xf32> to vector<32x128xf32>
    %261 = arith.addf %257, %260 : vector<32x128xf32>
    %c128_127 = arith.constant 128 : index
    %c0_128 = arith.constant 0 : index
    %262 = vector.load %arg24[%c128_127, %c0_128] : memref<176x128xf32, #tpu.memory_space<vmem>>, vector<32x128xf32>
    tpu.vector_store %arg24[%c128_127, %c0_128], %261 {strides = array<i32>} : memref<176x128xf32, #tpu.memory_space<vmem>>, vector<32x128xf32>,
    %263 = arith.truncf %148 : vector<8x64xf32> to vector<8x64xbf16>
    %c160_129 = arith.constant 160 : index
    %c0_130 = arith.constant 0 : index
    %264 = vector.load %arg23[%c160_129, %c0_130] : memref<176x64xbf16, #tpu.memory_space<vmem>>, vector<8x64xbf16>
    tpu.vector_store %arg23[%c160_129, %c0_130], %263 {strides = array<i32>} : memref<176x64xbf16, #tpu.memory_space<vmem>>, vector<8x64xbf16>,
    %c2_131 = arith.constant 2 : index
    %c0_132 = arith.constant 0 : index
    %c0_133 = arith.constant 0 : index
    %265 = vector.load %arg15[%c2_131, %c0_132, %c0_133] : memref<4x64x64xbf16, #tpu.memory_space<vmem>>, vector<1x64x64xbf16>
    %266 = vector.shape_cast %265 : vector<1x64x64xbf16> to vector<64x64xbf16>
    %267 = arith.truncf %148 : vector<8x64xf32> to vector<8x64xbf16>
    %cst_134 = arith.constant dense<0.000000e+00> : vector<8x64xf32>
    %268 = tpu.matmul %267, %266, %cst_134 {dimension_numbers = #tpu.dot_dimension_numbers<[1], [0], [0], [1], [0, 0, 1, 1], [], []>} : vector<8x64xbf16>, vector<64x64xbf16>, vector<8x64xf32> -> vector<8x64xf32>
    %c2_135 = arith.constant 2 : index
    %c0_136 = arith.constant 0 : index
    %c0_137 = arith.constant 0 : index
    %269 = vector.load %arg16[%c2_135, %c0_136, %c0_137] : memref<4x1x64xf32, #tpu.memory_space<vmem>>, vector<1x1x64xf32>
    %270 = vector.shape_cast %269 : vector<1x1x64xf32> to vector<1x64xf32>
    %271 = vector.broadcast %270 : vector<1x64xf32> to vector<8x64xf32>
    %272 = arith.addf %268, %271 : vector<8x64xf32>
    %cst_138 = arith.constant 0.000000e+00 : f32
    %273 = vector.broadcast %cst_138 : f32 to vector<8x64xf32>
    %274 = arith.maximumf %272, %273 : vector<8x64xf32>
    %c2_139 = arith.constant 2 : index
    %c0_140 = arith.constant 0 : index
    %c0_141 = arith.constant 0 : index
    %275 = vector.load %arg17[%c2_139, %c0_140, %c0_141] : memref<4x64x128xbf16, #tpu.memory_space<vmem>>, vector<1x64x128xbf16>
    %276 = vector.shape_cast %275 : vector<1x64x128xbf16> to vector<64x128xbf16>
    %277 = arith.truncf %274 : vector<8x64xf32> to vector<8x64xbf16>
    %cst_142 = arith.constant dense<0.000000e+00> : vector<8x128xf32>
    %278 = tpu.matmul %277, %276, %cst_142 {dimension_numbers = #tpu.dot_dimension_numbers<[1], [0], [0], [1], [0, 0, 1, 1], [], []>} : vector<8x64xbf16>, vector<64x128xbf16>, vector<8x128xf32> -> vector<8x128xf32>
    %c2_143 = arith.constant 2 : index
    %c0_144 = arith.constant 0 : index
    %c0_145 = arith.constant 0 : index
    %279 = vector.load %arg18[%c2_143, %c0_144, %c0_145] : memref<4x1x128xf32, #tpu.memory_space<vmem>>, vector<1x1x128xf32>
    %280 = vector.shape_cast %279 : vector<1x1x128xf32> to vector<1x128xf32>
    %281 = vector.broadcast %280 : vector<1x128xf32> to vector<8x128xf32>
    %282 = arith.addf %278, %281 : vector<8x128xf32>
    %c160_146 = arith.constant 160 : index
    %c0_147 = arith.constant 0 : index
    %283 = vector.load %arg24[%c160_146, %c0_147] : memref<176x128xf32, #tpu.memory_space<vmem>>, vector<8x128xf32>
    tpu.vector_store %arg24[%c160_146, %c0_147], %282 {strides = array<i32>} : memref<176x128xf32, #tpu.memory_space<vmem>>, vector<8x128xf32>,
    %284 = arith.truncf %147 : vector<8x64xf32> to vector<8x64xbf16>
    %c168_148 = arith.constant 168 : index
    %c0_149 = arith.constant 0 : index
    %285 = vector.load %arg23[%c168_148, %c0_149] : memref<176x64xbf16, #tpu.memory_space<vmem>>, vector<8x64xbf16>
    tpu.vector_store %arg23[%c168_148, %c0_149], %284 {strides = array<i32>} : memref<176x64xbf16, #tpu.memory_space<vmem>>, vector<8x64xbf16>,
    %c3_150 = arith.constant 3 : index
    %c0_151 = arith.constant 0 : index
    %c0_152 = arith.constant 0 : index
    %286 = vector.load %arg15[%c3_150, %c0_151, %c0_152] : memref<4x64x64xbf16, #tpu.memory_space<vmem>>, vector<1x64x64xbf16>
    %287 = vector.shape_cast %286 : vector<1x64x64xbf16> to vector<64x64xbf16>
    %288 = arith.truncf %147 : vector<8x64xf32> to vector<8x64xbf16>
    %cst_153 = arith.constant dense<0.000000e+00> : vector<8x64xf32>
    %289 = tpu.matmul %288, %287, %cst_153 {dimension_numbers = #tpu.dot_dimension_numbers<[1], [0], [0], [1], [0, 0, 1, 1], [], []>} : vector<8x64xbf16>, vector<64x64xbf16>, vector<8x64xf32> -> vector<8x64xf32>
    %c3_154 = arith.constant 3 : index
    %c0_155 = arith.constant 0 : index
    %c0_156 = arith.constant 0 : index
    %290 = vector.load %arg16[%c3_154, %c0_155, %c0_156] : memref<4x1x64xf32, #tpu.memory_space<vmem>>, vector<1x1x64xf32>
    %291 = vector.shape_cast %290 : vector<1x1x64xf32> to vector<1x64xf32>
    %292 = vector.broadcast %291 : vector<1x64xf32> to vector<8x64xf32>
    %293 = arith.addf %289, %292 : vector<8x64xf32>
    %cst_157 = arith.constant 0.000000e+00 : f32
    %294 = vector.broadcast %cst_157 : f32 to vector<8x64xf32>
    %295 = arith.maximumf %293, %294 : vector<8x64xf32>
    %c3_158 = arith.constant 3 : index
    %c0_159 = arith.constant 0 : index
    %c0_160 = arith.constant 0 : index
    %296 = vector.load %arg17[%c3_158, %c0_159, %c0_160] : memref<4x64x128xbf16, #tpu.memory_space<vmem>>, vector<1x64x128xbf16>
    %297 = vector.shape_cast %296 : vector<1x64x128xbf16> to vector<64x128xbf16>
    %298 = arith.truncf %295 : vector<8x64xf32> to vector<8x64xbf16>
    %cst_161 = arith.constant dense<0.000000e+00> : vector<8x128xf32>
    %299 = tpu.matmul %298, %297, %cst_161 {dimension_numbers = #tpu.dot_dimension_numbers<[1], [0], [0], [1], [0, 0, 1, 1], [], []>} : vector<8x64xbf16>, vector<64x128xbf16>, vector<8x128xf32> -> vector<8x128xf32>
    %c3_162 = arith.constant 3 : index
    %c0_163 = arith.constant 0 : index
    %c0_164 = arith.constant 0 : index
    %300 = vector.load %arg18[%c3_162, %c0_163, %c0_164] : memref<4x1x128xf32, #tpu.memory_space<vmem>>, vector<1x1x128xf32>
    %301 = vector.shape_cast %300 : vector<1x1x128xf32> to vector<1x128xf32>
    %302 = vector.broadcast %301 : vector<1x128xf32> to vector<8x128xf32>
    %303 = arith.addf %299, %302 : vector<8x128xf32>
    %c168_165 = arith.constant 168 : index
    %c0_166 = arith.constant 0 : index
    %304 = vector.load %arg24[%c168_165, %c0_166] : memref<176x128xf32, #tpu.memory_space<vmem>>, vector<8x128xf32>
    tpu.vector_store %arg24[%c168_165, %c0_166], %303 {strides = array<i32>} : memref<176x128xf32, #tpu.memory_space<vmem>>, vector<8x128xf32>,
    %cst_167 = arith.constant dense<0.000000e+00> : vector<8xf32>
    %305 = vector.multi_reduction <add>, %147, %cst_167 [1] : vector<8x64xf32> to vector<8xf32>
    %306 = vector.shape_cast %305 : vector<8xf32> to vector<8x1xf32>
    %cst_168 = arith.constant 6.400000e+01 : f32
    %307 = vector.broadcast %cst_168 : f32 to vector<8x1xf32>
    %308 = arith.divf %306, %307 : vector<8x1xf32>
    %309 = vector.broadcast %308 : vector<8x1xf32> to vector<8x64xf32>
    %310 = arith.subf %147, %309 : vector<8x64xf32>
    %311 = arith.mulf %310, %310 : vector<8x64xf32>
    %cst_169 = arith.constant dense<0.000000e+00> : vector<8xf32>
    %312 = vector.multi_reduction <add>, %311, %cst_169 [1] : vector<8x64xf32> to vector<8xf32>
    %313 = vector.shape_cast %312 : vector<8xf32> to vector<8x1xf32>
    %cst_170 = arith.constant 6.400000e+01 : f32
    %314 = vector.broadcast %cst_170 : f32 to vector<8x1xf32>
    %315 = arith.divf %313, %314 : vector<8x1xf32>
    %cst_171 = arith.constant 9.99999974E-6 : f32
    %316 = vector.broadcast %cst_171 : f32 to vector<8x1xf32>
    %317 = arith.addf %315, %316 : vector<8x1xf32>
    %318 = math.rsqrt %317 : vector<8x1xf32>
    %319 = vector.broadcast %318 : vector<8x1xf32> to vector<8x64xf32>
    %320 = arith.mulf %310, %319 : vector<8x64xf32>
    %c0_172 = arith.constant 0 : index
    %c0_173 = arith.constant 0 : index
    %321 = vector.load %arg19[%c0_172, %c0_173] : memref<1x64xf32, #tpu.memory_space<vmem>>, vector<1x64xf32>
    %322 = vector.broadcast %321 : vector<1x64xf32> to vector<8x64xf32>
    %323 = arith.mulf %320, %322 : vector<8x64xf32>
    %c0_174 = arith.constant 0 : index
    %c0_175 = arith.constant 0 : index
    %324 = vector.load %arg20[%c0_174, %c0_175] : memref<1x64xf32, #tpu.memory_space<vmem>>, vector<1x64xf32>
    %325 = vector.broadcast %324 : vector<1x64xf32> to vector<8x64xf32>
    %326 = arith.addf %323, %325 : vector<8x64xf32>
    %327 = vector.extract_strided_slice %326 {offsets = [0, 0], sizes = [4, 64], strides = [1, 1]} : vector<8x64xf32> to vector<4x64xf32>
    %cst_176 = arith.constant dense<0.000000e+00> : vector<64xf32>
    %328 = vector.multi_reduction <add>, %327, %cst_176 [0] : vector<4x64xf32> to vector<64xf32>
    %329 = vector.shape_cast %328 : vector<64xf32> to vector<1x64xf32>
    %cst_177 = arith.constant 4.000000e+00 : f32
    %330 = vector.broadcast %cst_177 : f32 to vector<1x64xf32>
    %331 = arith.divf %329, %330 : vector<1x64xf32>
    %332 = vector.extract_strided_slice %326 {offsets = [4, 0], sizes = [4, 64], strides = [1, 1]} : vector<8x64xf32> to vector<4x64xf32>
    %cst_178 = arith.constant dense<0.000000e+00> : vector<64xf32>
    %333 = vector.multi_reduction <add>, %332, %cst_178 [0] : vector<4x64xf32> to vector<64xf32>
    %334 = vector.shape_cast %333 : vector<64xf32> to vector<1x64xf32>
    %cst_179 = arith.constant 4.000000e+00 : f32
    %335 = vector.broadcast %cst_179 : f32 to vector<1x64xf32>
    %336 = arith.divf %334, %335 : vector<1x64xf32>
    %337 = tpu.concatenate %331, %336 in 0 : vector<1x64xf32>, vector<1x64xf32> -> vector<2x64xf32>
    %c0_180 = arith.constant 0 : index
    %c0_181 = arith.constant 0 : index
    %338 = vector.load %arg21[%c0_180, %c0_181] : memref<64x128xbf16, #tpu.memory_space<vmem>>, vector<64x128xbf16>
    %339 = arith.truncf %337 : vector<2x64xf32> to vector<2x64xbf16>
    %cst_182 = arith.constant dense<0.000000e+00> : vector<2x128xf32>
    %340 = tpu.matmul %339, %338, %cst_182 {dimension_numbers = #tpu.dot_dimension_numbers<[1], [0], [0], [1], [0, 0, 1, 1], [], []>} : vector<2x64xbf16>, vector<64x128xbf16>, vector<2x128xf32> -> vector<2x128xf32>
    %c0_183 = arith.constant 0 : index
    %c0_184 = arith.constant 0 : index
    %341 = vector.load %arg22[%c0_183, %c0_184] : memref<1x128xf32, #tpu.memory_space<vmem>>, vector<1x128xf32>
    %342 = vector.broadcast %341 : vector<1x128xf32> to vector<2x128xf32>
    %343 = arith.addf %340, %342 : vector<2x128xf32>
    %c0_185 = arith.constant 0 : index
    %c0_186 = arith.constant 0 : index
    %344 = vector.load %arg25[%c0_185, %c0_186] : memref<2x128xf32, #tpu.memory_space<vmem>>, vector<2x128xf32>
    tpu.vector_store %arg25[%c0_185, %c0_186], %343 {strides = array<i32>} : memref<2x128xf32, #tpu.memory_space<vmem>>, vector<2x128xf32>,
    %345 = arith.mulf %326, %326 : vector<8x64xf32>
    %cst_187 = arith.constant dense<0.000000e+00> : vector<8xf32>
    %346 = vector.multi_reduction <add>, %345, %cst_187 [1] : vector<8x64xf32> to vector<8xf32>
    %347 = vector.shape_cast %346 : vector<8xf32> to vector<8x1xf32>
    %cst_188 = arith.constant 1.000000e-24 : f32
    %348 = vector.broadcast %cst_188 : f32 to vector<8x1xf32>
    %349 = arith.addf %347, %348 : vector<8x1xf32>
    %350 = math.rsqrt %349 : vector<8x1xf32>
    %351 = vector.broadcast %350 : vector<8x1xf32> to vector<8x64xf32>
    %352 = arith.mulf %326, %351 : vector<8x64xf32>
    %cst_189 = arith.constant dense<0.000000e+00> : vector<8x8xf32>
    %353 = tpu.matmul %352, %352, %cst_189 {dimension_numbers = #tpu.dot_dimension_numbers<[1], [1], [0], [0], [0, 0, 1, 0], [], []>} : vector<8x64xf32>, vector<8x64xf32>, vector<8x8xf32> -> vector<8x8xf32>
    %c0_190 = arith.constant 0 : index
    %c0_191 = arith.constant 0 : index
    %354 = vector.load %arg1[%c0_190, %c0_191] : memref<8x8xf32, #tpu.memory_space<vmem>>, vector<8x8xf32>
    %cst_192 = arith.constant 1.000000e+00 : f32
    %355 = vector.broadcast %cst_192 : f32 to vector<8x8xf32>
    %356 = arith.subf %355, %353 : vector<8x8xf32>
    %357 = arith.mulf %356, %354 : vector<8x8xf32>
    %358 = vector.shape_cast %357 : vector<8x8xf32> to vector<1x8x8xf32>
    %cst_193 = arith.constant dense<0.000000e+00> : vector<1xf32>
    %359 = vector.multi_reduction <add>, %358, %cst_193 [1, 2] : vector<1x8x8xf32> to vector<1xf32>
    %360 = vector.shape_cast %359 : vector<1xf32> to vector<1x1x1xf32>
    %361 = vector.extract %360[0, 0, 0] : f32 from vector<1x1x1xf32>
    %cst_194 = arith.constant 4.000000e-01 : f32
    %362 = vector.broadcast %cst_194 : f32 to vector<8x8xf32>
    %363 = arith.subf %353, %362 : vector<8x8xf32>
    %cst_195 = arith.constant 0.000000e+00 : f32
    %364 = vector.broadcast %cst_195 : f32 to vector<8x8xf32>
    %365 = arith.maximumf %363, %364 : vector<8x8xf32>
    %cst_196 = arith.constant 1.000000e+00 : f32
    %366 = vector.broadcast %cst_196 : f32 to vector<8x8xf32>
    %367 = arith.subf %366, %354 : vector<8x8xf32>
    %368 = arith.mulf %365, %367 : vector<8x8xf32>
    %369 = vector.shape_cast %368 : vector<8x8xf32> to vector<1x8x8xf32>
    %cst_197 = arith.constant dense<0.000000e+00> : vector<1xf32>
    %370 = vector.multi_reduction <add>, %369, %cst_197 [1, 2] : vector<1x8x8xf32> to vector<1xf32>
    %371 = vector.shape_cast %370 : vector<1xf32> to vector<1x1x1xf32>
    %372 = vector.extract %371[0, 0, 0] : f32 from vector<1x1x1xf32>
    %373 = arith.addf %361, %372 : f32
    %cst_198 = arith.constant 6.400000e+01 : f32
    %374 = arith.divf %373, %cst_198 : f32
    %375 = vector.broadcast %374 : f32 to vector<1x1xf32>
    %c0_199 = arith.constant 0 : index
    %c0_200 = arith.constant 0 : index
    %376 = vector.load %arg26[%c0_199, %c0_200] : memref<1x1xf32, #tpu.memory_space<vmem>>, vector<1x1xf32>
    tpu.vector_store %arg26[%c0_199, %c0_200], %375 {strides = array<i32>} : memref<1x1xf32, #tpu.memory_space<vmem>>, vector<1x1xf32>,
    return
  }
}

module attributes {stable_mosaic.version = 11 : i64} {
  func.func @_gcn_kernel(%arg0: memref<2x44x64xbf16, #tpu.memory_space<vmem>>, %arg1: memref<7x44xbf16, #tpu.memory_space<vmem>>, %arg2: memref<7x1xf32, #tpu.memory_space<vmem>>, %arg3: memref<1x64xf32, #tpu.memory_space<vmem>>, %arg4: memref<1x64xf32, #tpu.memory_space<vmem>>, %arg5: memref<64x192xbf16, #tpu.memory_space<vmem>>, %arg6: memref<64x64xbf16, #tpu.memory_space<vmem>>, %arg7: memref<1x64xf32, #tpu.memory_space<vmem>>, %arg8: memref<1x64xf32, #tpu.memory_space<vmem>>, %arg9: memref<1x64xf32, #tpu.memory_space<vmem>>, %arg10: memref<64x256xbf16, #tpu.memory_space<vmem>>, %arg11: memref<1x256xf32, #tpu.memory_space<vmem>>, %arg12: memref<256x64xbf16, #tpu.memory_space<vmem>>, %arg13: memref<1x64xf32, #tpu.memory_space<vmem>>, %arg14: memref<64x128xbf16, #tpu.memory_space<vmem>>, %arg15: memref<1x128xf32, #tpu.memory_space<vmem>>, %arg16: memref<2x128xf32, #tpu.memory_space<vmem>>) attributes {dimension_semantics = [], scalar_prefetch = 0 : i64, scratch_operands = 0 : i64, tpu.core_type = #tpu.core_type<tc>} {
    %c0 = arith.constant 0 : index
    %c0_0 = arith.constant 0 : index
    %0 = vector.load %arg1[%c0, %c0_0] : memref<7x44xbf16, #tpu.memory_space<vmem>>, vector<7x44xbf16>
    %c0_1 = arith.constant 0 : index
    %c0_2 = arith.constant 0 : index
    %c0_3 = arith.constant 0 : index
    %1 = vector.load %arg0[%c0_1, %c0_2, %c0_3] : memref<2x44x64xbf16, #tpu.memory_space<vmem>>, vector<1x44x64xbf16>
    %2 = vector.shape_cast %1 : vector<1x44x64xbf16> to vector<44x64xbf16>
    %cst = arith.constant dense<0.000000e+00> : vector<7x64xf32>
    %3 = tpu.matmul %0, %2, %cst {dimension_numbers = #tpu.dot_dimension_numbers<[1], [0], [0], [1], [0, 0, 1, 1], [], []>} : vector<7x44xbf16>, vector<44x64xbf16>, vector<7x64xf32> -> vector<7x64xf32>
    %c0_4 = arith.constant 0 : index
    %c0_5 = arith.constant 0 : index
    %4 = vector.load %arg2[%c0_4, %c0_5] : memref<7x1xf32, #tpu.memory_space<vmem>>, vector<7x1xf32>
    %5 = vector.broadcast %4 : vector<7x1xf32> to vector<7x64xf32>
    %6 = arith.addf %3, %5 : vector<7x64xf32>
    %c0_6 = arith.constant 0 : index
    %c0_7 = arith.constant 0 : index
    %7 = vector.load %arg1[%c0_6, %c0_7] : memref<7x44xbf16, #tpu.memory_space<vmem>>, vector<7x44xbf16>
    %c1 = arith.constant 1 : index
    %c0_8 = arith.constant 0 : index
    %c0_9 = arith.constant 0 : index
    %8 = vector.load %arg0[%c1, %c0_8, %c0_9] : memref<2x44x64xbf16, #tpu.memory_space<vmem>>, vector<1x44x64xbf16>
    %9 = vector.shape_cast %8 : vector<1x44x64xbf16> to vector<44x64xbf16>
    %cst_10 = arith.constant dense<0.000000e+00> : vector<7x64xf32>
    %10 = tpu.matmul %7, %9, %cst_10 {dimension_numbers = #tpu.dot_dimension_numbers<[1], [0], [0], [1], [0, 0, 1, 1], [], []>} : vector<7x44xbf16>, vector<44x64xbf16>, vector<7x64xf32> -> vector<7x64xf32>
    %c0_11 = arith.constant 0 : index
    %c0_12 = arith.constant 0 : index
    %11 = vector.load %arg2[%c0_11, %c0_12] : memref<7x1xf32, #tpu.memory_space<vmem>>, vector<7x1xf32>
    %12 = vector.broadcast %11 : vector<7x1xf32> to vector<7x64xf32>
    %13 = arith.addf %10, %12 : vector<7x64xf32>
    %14 = tpu.concatenate %6, %13 in 0 : vector<7x64xf32>, vector<7x64xf32> -> vector<14x64xf32>
    %c0_13 = arith.constant 0 : index
    %c0_14 = arith.constant 0 : index
    %15 = vector.load %arg3[%c0_13, %c0_14] : memref<1x64xf32, #tpu.memory_space<vmem>>, vector<1x64xf32>
    %c0_15 = arith.constant 0 : index
    %c0_16 = arith.constant 0 : index
    %16 = vector.load %arg4[%c0_15, %c0_16] : memref<1x64xf32, #tpu.memory_space<vmem>>, vector<1x64xf32>
    %cst_17 = arith.constant dense<0.000000e+00> : vector<14xf32>
    %17 = vector.multi_reduction <add>, %14, %cst_17 [1] : vector<14x64xf32> to vector<14xf32>
    %18 = vector.shape_cast %17 : vector<14xf32> to vector<14x1xf32>
    %cst_18 = arith.constant 6.400000e+01 : f32
    %19 = vector.broadcast %cst_18 : f32 to vector<14x1xf32>
    %20 = arith.divf %18, %19 : vector<14x1xf32>
    %21 = vector.broadcast %20 : vector<14x1xf32> to vector<14x64xf32>
    %22 = arith.subf %14, %21 : vector<14x64xf32>
    %23 = arith.mulf %22, %22 : vector<14x64xf32>
    %cst_19 = arith.constant dense<0.000000e+00> : vector<14xf32>
    %24 = vector.multi_reduction <add>, %23, %cst_19 [1] : vector<14x64xf32> to vector<14xf32>
    %25 = vector.shape_cast %24 : vector<14xf32> to vector<14x1xf32>
    %cst_20 = arith.constant 6.400000e+01 : f32
    %26 = vector.broadcast %cst_20 : f32 to vector<14x1xf32>
    %27 = arith.divf %25, %26 : vector<14x1xf32>
    %cst_21 = arith.constant 9.99999974E-6 : f32
    %28 = vector.broadcast %cst_21 : f32 to vector<14x1xf32>
    %29 = arith.addf %27, %28 : vector<14x1xf32>
    %30 = math.rsqrt %29 : vector<14x1xf32>
    %31 = vector.broadcast %30 : vector<14x1xf32> to vector<14x64xf32>
    %32 = arith.mulf %22, %31 : vector<14x64xf32>
    %33 = vector.broadcast %15 : vector<1x64xf32> to vector<14x64xf32>
    %34 = arith.mulf %32, %33 : vector<14x64xf32>
    %35 = vector.broadcast %16 : vector<1x64xf32> to vector<14x64xf32>
    %36 = arith.addf %34, %35 : vector<14x64xf32>
    %c0_22 = arith.constant 0 : index
    %c0_23 = arith.constant 0 : index
    %37 = vector.load %arg5[%c0_22, %c0_23] : memref<64x192xbf16, #tpu.memory_space<vmem>>, vector<64x192xbf16>
    %38 = arith.truncf %36 : vector<14x64xf32> to vector<14x64xbf16>
    %cst_24 = arith.constant dense<0.000000e+00> : vector<14x192xf32>
    %39 = tpu.matmul %38, %37, %cst_24 {dimension_numbers = #tpu.dot_dimension_numbers<[1], [0], [0], [1], [0, 0, 1, 1], [], []>} : vector<14x64xbf16>, vector<64x192xbf16>, vector<14x192xf32> -> vector<14x192xf32>
    %40 = vector.extract_strided_slice %39 {offsets = [0, 0], sizes = [14, 64], strides = [1, 1]} : vector<14x192xf32> to vector<14x64xf32>
    %cst_25 = arith.constant 0.353553385 : f32
    %41 = vector.broadcast %cst_25 : f32 to vector<14x64xf32>
    %42 = arith.mulf %40, %41 : vector<14x64xf32>
    %43 = vector.extract_strided_slice %39 {offsets = [0, 64], sizes = [14, 64], strides = [1, 1]} : vector<14x192xf32> to vector<14x64xf32>
    %44 = vector.extract_strided_slice %39 {offsets = [0, 128], sizes = [14, 64], strides = [1, 1]} : vector<14x192xf32> to vector<14x64xf32>
    %45 = vector.extract_strided_slice %42 {offsets = [0, 0], sizes = [7, 64], strides = [1, 1]} : vector<14x64xf32> to vector<7x64xf32>
    %46 = vector.extract_strided_slice %43 {offsets = [0, 0], sizes = [7, 64], strides = [1, 1]} : vector<14x64xf32> to vector<7x64xf32>
    %47 = vector.extract_strided_slice %44 {offsets = [0, 0], sizes = [7, 64], strides = [1, 1]} : vector<14x64xf32> to vector<7x64xf32>
    %48 = vector.extract_strided_slice %45 {offsets = [0, 0], sizes = [7, 8], strides = [1, 1]} : vector<7x64xf32> to vector<7x8xf32>
    %49 = vector.extract_strided_slice %46 {offsets = [0, 0], sizes = [7, 8], strides = [1, 1]} : vector<7x64xf32> to vector<7x8xf32>
    %cst_26 = arith.constant dense<0.000000e+00> : vector<7x7xf32>
    %50 = tpu.matmul %48, %49, %cst_26 {dimension_numbers = #tpu.dot_dimension_numbers<[1], [1], [0], [0], [0, 0, 1, 0], [], []>} : vector<7x8xf32>, vector<7x8xf32>, vector<7x7xf32> -> vector<7x7xf32>
    %cst_27 = arith.constant dense<0xFF800000> : vector<7xf32>
    %51 = vector.multi_reduction <maximumf>, %50, %cst_27 [1] : vector<7x7xf32> to vector<7xf32>
    %52 = vector.shape_cast %51 : vector<7xf32> to vector<7x1xf32>
    %53 = vector.broadcast %52 : vector<7x1xf32> to vector<7x7xf32>
    %54 = arith.subf %50, %53 : vector<7x7xf32>
    %55 = math.exp %54 : vector<7x7xf32>
    %cst_28 = arith.constant dense<0.000000e+00> : vector<7xf32>
    %56 = vector.multi_reduction <add>, %55, %cst_28 [1] : vector<7x7xf32> to vector<7xf32>
    %57 = vector.shape_cast %56 : vector<7xf32> to vector<7x1xf32>
    %58 = tpu.reciprocal %57 {approx = true} : vector<7x1xf32> -> vector<7x1xf32>
    %59 = vector.broadcast %58 : vector<7x1xf32> to vector<7x7xf32>
    %60 = arith.mulf %55, %59 : vector<7x7xf32>
    %61 = vector.extract_strided_slice %47 {offsets = [0, 0], sizes = [7, 8], strides = [1, 1]} : vector<7x64xf32> to vector<7x8xf32>
    %cst_29 = arith.constant dense<0.000000e+00> : vector<7x8xf32>
    %62 = tpu.matmul %60, %61, %cst_29 {dimension_numbers = #tpu.dot_dimension_numbers<[1], [0], [0], [1], [0, 0, 1, 1], [], []>} : vector<7x7xf32>, vector<7x8xf32>, vector<7x8xf32> -> vector<7x8xf32>
    %63 = vector.extract_strided_slice %45 {offsets = [0, 8], sizes = [7, 8], strides = [1, 1]} : vector<7x64xf32> to vector<7x8xf32>
    %64 = vector.extract_strided_slice %46 {offsets = [0, 8], sizes = [7, 8], strides = [1, 1]} : vector<7x64xf32> to vector<7x8xf32>
    %cst_30 = arith.constant dense<0.000000e+00> : vector<7x7xf32>
    %65 = tpu.matmul %63, %64, %cst_30 {dimension_numbers = #tpu.dot_dimension_numbers<[1], [1], [0], [0], [0, 0, 1, 0], [], []>} : vector<7x8xf32>, vector<7x8xf32>, vector<7x7xf32> -> vector<7x7xf32>
    %cst_31 = arith.constant dense<0xFF800000> : vector<7xf32>
    %66 = vector.multi_reduction <maximumf>, %65, %cst_31 [1] : vector<7x7xf32> to vector<7xf32>
    %67 = vector.shape_cast %66 : vector<7xf32> to vector<7x1xf32>
    %68 = vector.broadcast %67 : vector<7x1xf32> to vector<7x7xf32>
    %69 = arith.subf %65, %68 : vector<7x7xf32>
    %70 = math.exp %69 : vector<7x7xf32>
    %cst_32 = arith.constant dense<0.000000e+00> : vector<7xf32>
    %71 = vector.multi_reduction <add>, %70, %cst_32 [1] : vector<7x7xf32> to vector<7xf32>
    %72 = vector.shape_cast %71 : vector<7xf32> to vector<7x1xf32>
    %73 = tpu.reciprocal %72 {approx = true} : vector<7x1xf32> -> vector<7x1xf32>
    %74 = vector.broadcast %73 : vector<7x1xf32> to vector<7x7xf32>
    %75 = arith.mulf %70, %74 : vector<7x7xf32>
    %76 = vector.extract_strided_slice %47 {offsets = [0, 8], sizes = [7, 8], strides = [1, 1]} : vector<7x64xf32> to vector<7x8xf32>
    %cst_33 = arith.constant dense<0.000000e+00> : vector<7x8xf32>
    %77 = tpu.matmul %75, %76, %cst_33 {dimension_numbers = #tpu.dot_dimension_numbers<[1], [0], [0], [1], [0, 0, 1, 1], [], []>} : vector<7x7xf32>, vector<7x8xf32>, vector<7x8xf32> -> vector<7x8xf32>
    %78 = vector.extract_strided_slice %45 {offsets = [0, 16], sizes = [7, 8], strides = [1, 1]} : vector<7x64xf32> to vector<7x8xf32>
    %79 = vector.extract_strided_slice %46 {offsets = [0, 16], sizes = [7, 8], strides = [1, 1]} : vector<7x64xf32> to vector<7x8xf32>
    %cst_34 = arith.constant dense<0.000000e+00> : vector<7x7xf32>
    %80 = tpu.matmul %78, %79, %cst_34 {dimension_numbers = #tpu.dot_dimension_numbers<[1], [1], [0], [0], [0, 0, 1, 0], [], []>} : vector<7x8xf32>, vector<7x8xf32>, vector<7x7xf32> -> vector<7x7xf32>
    %cst_35 = arith.constant dense<0xFF800000> : vector<7xf32>
    %81 = vector.multi_reduction <maximumf>, %80, %cst_35 [1] : vector<7x7xf32> to vector<7xf32>
    %82 = vector.shape_cast %81 : vector<7xf32> to vector<7x1xf32>
    %83 = vector.broadcast %82 : vector<7x1xf32> to vector<7x7xf32>
    %84 = arith.subf %80, %83 : vector<7x7xf32>
    %85 = math.exp %84 : vector<7x7xf32>
    %cst_36 = arith.constant dense<0.000000e+00> : vector<7xf32>
    %86 = vector.multi_reduction <add>, %85, %cst_36 [1] : vector<7x7xf32> to vector<7xf32>
    %87 = vector.shape_cast %86 : vector<7xf32> to vector<7x1xf32>
    %88 = tpu.reciprocal %87 {approx = true} : vector<7x1xf32> -> vector<7x1xf32>
    %89 = vector.broadcast %88 : vector<7x1xf32> to vector<7x7xf32>
    %90 = arith.mulf %85, %89 : vector<7x7xf32>
    %91 = vector.extract_strided_slice %47 {offsets = [0, 16], sizes = [7, 8], strides = [1, 1]} : vector<7x64xf32> to vector<7x8xf32>
    %cst_37 = arith.constant dense<0.000000e+00> : vector<7x8xf32>
    %92 = tpu.matmul %90, %91, %cst_37 {dimension_numbers = #tpu.dot_dimension_numbers<[1], [0], [0], [1], [0, 0, 1, 1], [], []>} : vector<7x7xf32>, vector<7x8xf32>, vector<7x8xf32> -> vector<7x8xf32>
    %93 = vector.extract_strided_slice %45 {offsets = [0, 24], sizes = [7, 8], strides = [1, 1]} : vector<7x64xf32> to vector<7x8xf32>
    %94 = vector.extract_strided_slice %46 {offsets = [0, 24], sizes = [7, 8], strides = [1, 1]} : vector<7x64xf32> to vector<7x8xf32>
    %cst_38 = arith.constant dense<0.000000e+00> : vector<7x7xf32>
    %95 = tpu.matmul %93, %94, %cst_38 {dimension_numbers = #tpu.dot_dimension_numbers<[1], [1], [0], [0], [0, 0, 1, 0], [], []>} : vector<7x8xf32>, vector<7x8xf32>, vector<7x7xf32> -> vector<7x7xf32>
    %cst_39 = arith.constant dense<0xFF800000> : vector<7xf32>
    %96 = vector.multi_reduction <maximumf>, %95, %cst_39 [1] : vector<7x7xf32> to vector<7xf32>
    %97 = vector.shape_cast %96 : vector<7xf32> to vector<7x1xf32>
    %98 = vector.broadcast %97 : vector<7x1xf32> to vector<7x7xf32>
    %99 = arith.subf %95, %98 : vector<7x7xf32>
    %100 = math.exp %99 : vector<7x7xf32>
    %cst_40 = arith.constant dense<0.000000e+00> : vector<7xf32>
    %101 = vector.multi_reduction <add>, %100, %cst_40 [1] : vector<7x7xf32> to vector<7xf32>
    %102 = vector.shape_cast %101 : vector<7xf32> to vector<7x1xf32>
    %103 = tpu.reciprocal %102 {approx = true} : vector<7x1xf32> -> vector<7x1xf32>
    %104 = vector.broadcast %103 : vector<7x1xf32> to vector<7x7xf32>
    %105 = arith.mulf %100, %104 : vector<7x7xf32>
    %106 = vector.extract_strided_slice %47 {offsets = [0, 24], sizes = [7, 8], strides = [1, 1]} : vector<7x64xf32> to vector<7x8xf32>
    %cst_41 = arith.constant dense<0.000000e+00> : vector<7x8xf32>
    %107 = tpu.matmul %105, %106, %cst_41 {dimension_numbers = #tpu.dot_dimension_numbers<[1], [0], [0], [1], [0, 0, 1, 1], [], []>} : vector<7x7xf32>, vector<7x8xf32>, vector<7x8xf32> -> vector<7x8xf32>
    %108 = vector.extract_strided_slice %45 {offsets = [0, 32], sizes = [7, 8], strides = [1, 1]} : vector<7x64xf32> to vector<7x8xf32>
    %109 = vector.extract_strided_slice %46 {offsets = [0, 32], sizes = [7, 8], strides = [1, 1]} : vector<7x64xf32> to vector<7x8xf32>
    %cst_42 = arith.constant dense<0.000000e+00> : vector<7x7xf32>
    %110 = tpu.matmul %108, %109, %cst_42 {dimension_numbers = #tpu.dot_dimension_numbers<[1], [1], [0], [0], [0, 0, 1, 0], [], []>} : vector<7x8xf32>, vector<7x8xf32>, vector<7x7xf32> -> vector<7x7xf32>
    %cst_43 = arith.constant dense<0xFF800000> : vector<7xf32>
    %111 = vector.multi_reduction <maximumf>, %110, %cst_43 [1] : vector<7x7xf32> to vector<7xf32>
    %112 = vector.shape_cast %111 : vector<7xf32> to vector<7x1xf32>
    %113 = vector.broadcast %112 : vector<7x1xf32> to vector<7x7xf32>
    %114 = arith.subf %110, %113 : vector<7x7xf32>
    %115 = math.exp %114 : vector<7x7xf32>
    %cst_44 = arith.constant dense<0.000000e+00> : vector<7xf32>
    %116 = vector.multi_reduction <add>, %115, %cst_44 [1] : vector<7x7xf32> to vector<7xf32>
    %117 = vector.shape_cast %116 : vector<7xf32> to vector<7x1xf32>
    %118 = tpu.reciprocal %117 {approx = true} : vector<7x1xf32> -> vector<7x1xf32>
    %119 = vector.broadcast %118 : vector<7x1xf32> to vector<7x7xf32>
    %120 = arith.mulf %115, %119 : vector<7x7xf32>
    %121 = vector.extract_strided_slice %47 {offsets = [0, 32], sizes = [7, 8], strides = [1, 1]} : vector<7x64xf32> to vector<7x8xf32>
    %cst_45 = arith.constant dense<0.000000e+00> : vector<7x8xf32>
    %122 = tpu.matmul %120, %121, %cst_45 {dimension_numbers = #tpu.dot_dimension_numbers<[1], [0], [0], [1], [0, 0, 1, 1], [], []>} : vector<7x7xf32>, vector<7x8xf32>, vector<7x8xf32> -> vector<7x8xf32>
    %123 = vector.extract_strided_slice %45 {offsets = [0, 40], sizes = [7, 8], strides = [1, 1]} : vector<7x64xf32> to vector<7x8xf32>
    %124 = vector.extract_strided_slice %46 {offsets = [0, 40], sizes = [7, 8], strides = [1, 1]} : vector<7x64xf32> to vector<7x8xf32>
    %cst_46 = arith.constant dense<0.000000e+00> : vector<7x7xf32>
    %125 = tpu.matmul %123, %124, %cst_46 {dimension_numbers = #tpu.dot_dimension_numbers<[1], [1], [0], [0], [0, 0, 1, 0], [], []>} : vector<7x8xf32>, vector<7x8xf32>, vector<7x7xf32> -> vector<7x7xf32>
    %cst_47 = arith.constant dense<0xFF800000> : vector<7xf32>
    %126 = vector.multi_reduction <maximumf>, %125, %cst_47 [1] : vector<7x7xf32> to vector<7xf32>
    %127 = vector.shape_cast %126 : vector<7xf32> to vector<7x1xf32>
    %128 = vector.broadcast %127 : vector<7x1xf32> to vector<7x7xf32>
    %129 = arith.subf %125, %128 : vector<7x7xf32>
    %130 = math.exp %129 : vector<7x7xf32>
    %cst_48 = arith.constant dense<0.000000e+00> : vector<7xf32>
    %131 = vector.multi_reduction <add>, %130, %cst_48 [1] : vector<7x7xf32> to vector<7xf32>
    %132 = vector.shape_cast %131 : vector<7xf32> to vector<7x1xf32>
    %133 = tpu.reciprocal %132 {approx = true} : vector<7x1xf32> -> vector<7x1xf32>
    %134 = vector.broadcast %133 : vector<7x1xf32> to vector<7x7xf32>
    %135 = arith.mulf %130, %134 : vector<7x7xf32>
    %136 = vector.extract_strided_slice %47 {offsets = [0, 40], sizes = [7, 8], strides = [1, 1]} : vector<7x64xf32> to vector<7x8xf32>
    %cst_49 = arith.constant dense<0.000000e+00> : vector<7x8xf32>
    %137 = tpu.matmul %135, %136, %cst_49 {dimension_numbers = #tpu.dot_dimension_numbers<[1], [0], [0], [1], [0, 0, 1, 1], [], []>} : vector<7x7xf32>, vector<7x8xf32>, vector<7x8xf32> -> vector<7x8xf32>
    %138 = vector.extract_strided_slice %45 {offsets = [0, 48], sizes = [7, 8], strides = [1, 1]} : vector<7x64xf32> to vector<7x8xf32>
    %139 = vector.extract_strided_slice %46 {offsets = [0, 48], sizes = [7, 8], strides = [1, 1]} : vector<7x64xf32> to vector<7x8xf32>
    %cst_50 = arith.constant dense<0.000000e+00> : vector<7x7xf32>
    %140 = tpu.matmul %138, %139, %cst_50 {dimension_numbers = #tpu.dot_dimension_numbers<[1], [1], [0], [0], [0, 0, 1, 0], [], []>} : vector<7x8xf32>, vector<7x8xf32>, vector<7x7xf32> -> vector<7x7xf32>
    %cst_51 = arith.constant dense<0xFF800000> : vector<7xf32>
    %141 = vector.multi_reduction <maximumf>, %140, %cst_51 [1] : vector<7x7xf32> to vector<7xf32>
    %142 = vector.shape_cast %141 : vector<7xf32> to vector<7x1xf32>
    %143 = vector.broadcast %142 : vector<7x1xf32> to vector<7x7xf32>
    %144 = arith.subf %140, %143 : vector<7x7xf32>
    %145 = math.exp %144 : vector<7x7xf32>
    %cst_52 = arith.constant dense<0.000000e+00> : vector<7xf32>
    %146 = vector.multi_reduction <add>, %145, %cst_52 [1] : vector<7x7xf32> to vector<7xf32>
    %147 = vector.shape_cast %146 : vector<7xf32> to vector<7x1xf32>
    %148 = tpu.reciprocal %147 {approx = true} : vector<7x1xf32> -> vector<7x1xf32>
    %149 = vector.broadcast %148 : vector<7x1xf32> to vector<7x7xf32>
    %150 = arith.mulf %145, %149 : vector<7x7xf32>
    %151 = vector.extract_strided_slice %47 {offsets = [0, 48], sizes = [7, 8], strides = [1, 1]} : vector<7x64xf32> to vector<7x8xf32>
    %cst_53 = arith.constant dense<0.000000e+00> : vector<7x8xf32>
    %152 = tpu.matmul %150, %151, %cst_53 {dimension_numbers = #tpu.dot_dimension_numbers<[1], [0], [0], [1], [0, 0, 1, 1], [], []>} : vector<7x7xf32>, vector<7x8xf32>, vector<7x8xf32> -> vector<7x8xf32>
    %153 = vector.extract_strided_slice %45 {offsets = [0, 56], sizes = [7, 8], strides = [1, 1]} : vector<7x64xf32> to vector<7x8xf32>
    %154 = vector.extract_strided_slice %46 {offsets = [0, 56], sizes = [7, 8], strides = [1, 1]} : vector<7x64xf32> to vector<7x8xf32>
    %cst_54 = arith.constant dense<0.000000e+00> : vector<7x7xf32>
    %155 = tpu.matmul %153, %154, %cst_54 {dimension_numbers = #tpu.dot_dimension_numbers<[1], [1], [0], [0], [0, 0, 1, 0], [], []>} : vector<7x8xf32>, vector<7x8xf32>, vector<7x7xf32> -> vector<7x7xf32>
    %cst_55 = arith.constant dense<0xFF800000> : vector<7xf32>
    %156 = vector.multi_reduction <maximumf>, %155, %cst_55 [1] : vector<7x7xf32> to vector<7xf32>
    %157 = vector.shape_cast %156 : vector<7xf32> to vector<7x1xf32>
    %158 = vector.broadcast %157 : vector<7x1xf32> to vector<7x7xf32>
    %159 = arith.subf %155, %158 : vector<7x7xf32>
    %160 = math.exp %159 : vector<7x7xf32>
    %cst_56 = arith.constant dense<0.000000e+00> : vector<7xf32>
    %161 = vector.multi_reduction <add>, %160, %cst_56 [1] : vector<7x7xf32> to vector<7xf32>
    %162 = vector.shape_cast %161 : vector<7xf32> to vector<7x1xf32>
    %163 = tpu.reciprocal %162 {approx = true} : vector<7x1xf32> -> vector<7x1xf32>
    %164 = vector.broadcast %163 : vector<7x1xf32> to vector<7x7xf32>
    %165 = arith.mulf %160, %164 : vector<7x7xf32>
    %166 = vector.extract_strided_slice %47 {offsets = [0, 56], sizes = [7, 8], strides = [1, 1]} : vector<7x64xf32> to vector<7x8xf32>
    %cst_57 = arith.constant dense<0.000000e+00> : vector<7x8xf32>
    %167 = tpu.matmul %165, %166, %cst_57 {dimension_numbers = #tpu.dot_dimension_numbers<[1], [0], [0], [1], [0, 0, 1, 1], [], []>} : vector<7x7xf32>, vector<7x8xf32>, vector<7x8xf32> -> vector<7x8xf32>
    %168 = tpu.concatenate %62, %77, %92, %107, %122, %137, %152, %167 in 1 : vector<7x8xf32>, vector<7x8xf32>, vector<7x8xf32>, vector<7x8xf32>, vector<7x8xf32>, vector<7x8xf32>, vector<7x8xf32>, vector<7x8xf32> -> vector<7x64xf32>
    %169 = vector.extract_strided_slice %42 {offsets = [7, 0], sizes = [7, 64], strides = [1, 1]} : vector<14x64xf32> to vector<7x64xf32>
    %170 = vector.extract_strided_slice %43 {offsets = [7, 0], sizes = [7, 64], strides = [1, 1]} : vector<14x64xf32> to vector<7x64xf32>
    %171 = vector.extract_strided_slice %44 {offsets = [7, 0], sizes = [7, 64], strides = [1, 1]} : vector<14x64xf32> to vector<7x64xf32>
    %172 = vector.extract_strided_slice %169 {offsets = [0, 0], sizes = [7, 8], strides = [1, 1]} : vector<7x64xf32> to vector<7x8xf32>
    %173 = vector.extract_strided_slice %170 {offsets = [0, 0], sizes = [7, 8], strides = [1, 1]} : vector<7x64xf32> to vector<7x8xf32>
    %cst_58 = arith.constant dense<0.000000e+00> : vector<7x7xf32>
    %174 = tpu.matmul %172, %173, %cst_58 {dimension_numbers = #tpu.dot_dimension_numbers<[1], [1], [0], [0], [0, 0, 1, 0], [], []>} : vector<7x8xf32>, vector<7x8xf32>, vector<7x7xf32> -> vector<7x7xf32>
    %cst_59 = arith.constant dense<0xFF800000> : vector<7xf32>
    %175 = vector.multi_reduction <maximumf>, %174, %cst_59 [1] : vector<7x7xf32> to vector<7xf32>
    %176 = vector.shape_cast %175 : vector<7xf32> to vector<7x1xf32>
    %177 = vector.broadcast %176 : vector<7x1xf32> to vector<7x7xf32>
    %178 = arith.subf %174, %177 : vector<7x7xf32>
    %179 = math.exp %178 : vector<7x7xf32>
    %cst_60 = arith.constant dense<0.000000e+00> : vector<7xf32>
    %180 = vector.multi_reduction <add>, %179, %cst_60 [1] : vector<7x7xf32> to vector<7xf32>
    %181 = vector.shape_cast %180 : vector<7xf32> to vector<7x1xf32>
    %182 = tpu.reciprocal %181 {approx = true} : vector<7x1xf32> -> vector<7x1xf32>
    %183 = vector.broadcast %182 : vector<7x1xf32> to vector<7x7xf32>
    %184 = arith.mulf %179, %183 : vector<7x7xf32>
    %185 = vector.extract_strided_slice %171 {offsets = [0, 0], sizes = [7, 8], strides = [1, 1]} : vector<7x64xf32> to vector<7x8xf32>
    %cst_61 = arith.constant dense<0.000000e+00> : vector<7x8xf32>
    %186 = tpu.matmul %184, %185, %cst_61 {dimension_numbers = #tpu.dot_dimension_numbers<[1], [0], [0], [1], [0, 0, 1, 1], [], []>} : vector<7x7xf32>, vector<7x8xf32>, vector<7x8xf32> -> vector<7x8xf32>
    %187 = vector.extract_strided_slice %169 {offsets = [0, 8], sizes = [7, 8], strides = [1, 1]} : vector<7x64xf32> to vector<7x8xf32>
    %188 = vector.extract_strided_slice %170 {offsets = [0, 8], sizes = [7, 8], strides = [1, 1]} : vector<7x64xf32> to vector<7x8xf32>
    %cst_62 = arith.constant dense<0.000000e+00> : vector<7x7xf32>
    %189 = tpu.matmul %187, %188, %cst_62 {dimension_numbers = #tpu.dot_dimension_numbers<[1], [1], [0], [0], [0, 0, 1, 0], [], []>} : vector<7x8xf32>, vector<7x8xf32>, vector<7x7xf32> -> vector<7x7xf32>
    %cst_63 = arith.constant dense<0xFF800000> : vector<7xf32>
    %190 = vector.multi_reduction <maximumf>, %189, %cst_63 [1] : vector<7x7xf32> to vector<7xf32>
    %191 = vector.shape_cast %190 : vector<7xf32> to vector<7x1xf32>
    %192 = vector.broadcast %191 : vector<7x1xf32> to vector<7x7xf32>
    %193 = arith.subf %189, %192 : vector<7x7xf32>
    %194 = math.exp %193 : vector<7x7xf32>
    %cst_64 = arith.constant dense<0.000000e+00> : vector<7xf32>
    %195 = vector.multi_reduction <add>, %194, %cst_64 [1] : vector<7x7xf32> to vector<7xf32>
    %196 = vector.shape_cast %195 : vector<7xf32> to vector<7x1xf32>
    %197 = tpu.reciprocal %196 {approx = true} : vector<7x1xf32> -> vector<7x1xf32>
    %198 = vector.broadcast %197 : vector<7x1xf32> to vector<7x7xf32>
    %199 = arith.mulf %194, %198 : vector<7x7xf32>
    %200 = vector.extract_strided_slice %171 {offsets = [0, 8], sizes = [7, 8], strides = [1, 1]} : vector<7x64xf32> to vector<7x8xf32>
    %cst_65 = arith.constant dense<0.000000e+00> : vector<7x8xf32>
    %201 = tpu.matmul %199, %200, %cst_65 {dimension_numbers = #tpu.dot_dimension_numbers<[1], [0], [0], [1], [0, 0, 1, 1], [], []>} : vector<7x7xf32>, vector<7x8xf32>, vector<7x8xf32> -> vector<7x8xf32>
    %202 = vector.extract_strided_slice %169 {offsets = [0, 16], sizes = [7, 8], strides = [1, 1]} : vector<7x64xf32> to vector<7x8xf32>
    %203 = vector.extract_strided_slice %170 {offsets = [0, 16], sizes = [7, 8], strides = [1, 1]} : vector<7x64xf32> to vector<7x8xf32>
    %cst_66 = arith.constant dense<0.000000e+00> : vector<7x7xf32>
    %204 = tpu.matmul %202, %203, %cst_66 {dimension_numbers = #tpu.dot_dimension_numbers<[1], [1], [0], [0], [0, 0, 1, 0], [], []>} : vector<7x8xf32>, vector<7x8xf32>, vector<7x7xf32> -> vector<7x7xf32>
    %cst_67 = arith.constant dense<0xFF800000> : vector<7xf32>
    %205 = vector.multi_reduction <maximumf>, %204, %cst_67 [1] : vector<7x7xf32> to vector<7xf32>
    %206 = vector.shape_cast %205 : vector<7xf32> to vector<7x1xf32>
    %207 = vector.broadcast %206 : vector<7x1xf32> to vector<7x7xf32>
    %208 = arith.subf %204, %207 : vector<7x7xf32>
    %209 = math.exp %208 : vector<7x7xf32>
    %cst_68 = arith.constant dense<0.000000e+00> : vector<7xf32>
    %210 = vector.multi_reduction <add>, %209, %cst_68 [1] : vector<7x7xf32> to vector<7xf32>
    %211 = vector.shape_cast %210 : vector<7xf32> to vector<7x1xf32>
    %212 = tpu.reciprocal %211 {approx = true} : vector<7x1xf32> -> vector<7x1xf32>
    %213 = vector.broadcast %212 : vector<7x1xf32> to vector<7x7xf32>
    %214 = arith.mulf %209, %213 : vector<7x7xf32>
    %215 = vector.extract_strided_slice %171 {offsets = [0, 16], sizes = [7, 8], strides = [1, 1]} : vector<7x64xf32> to vector<7x8xf32>
    %cst_69 = arith.constant dense<0.000000e+00> : vector<7x8xf32>
    %216 = tpu.matmul %214, %215, %cst_69 {dimension_numbers = #tpu.dot_dimension_numbers<[1], [0], [0], [1], [0, 0, 1, 1], [], []>} : vector<7x7xf32>, vector<7x8xf32>, vector<7x8xf32> -> vector<7x8xf32>
    %217 = vector.extract_strided_slice %169 {offsets = [0, 24], sizes = [7, 8], strides = [1, 1]} : vector<7x64xf32> to vector<7x8xf32>
    %218 = vector.extract_strided_slice %170 {offsets = [0, 24], sizes = [7, 8], strides = [1, 1]} : vector<7x64xf32> to vector<7x8xf32>
    %cst_70 = arith.constant dense<0.000000e+00> : vector<7x7xf32>
    %219 = tpu.matmul %217, %218, %cst_70 {dimension_numbers = #tpu.dot_dimension_numbers<[1], [1], [0], [0], [0, 0, 1, 0], [], []>} : vector<7x8xf32>, vector<7x8xf32>, vector<7x7xf32> -> vector<7x7xf32>
    %cst_71 = arith.constant dense<0xFF800000> : vector<7xf32>
    %220 = vector.multi_reduction <maximumf>, %219, %cst_71 [1] : vector<7x7xf32> to vector<7xf32>
    %221 = vector.shape_cast %220 : vector<7xf32> to vector<7x1xf32>
    %222 = vector.broadcast %221 : vector<7x1xf32> to vector<7x7xf32>
    %223 = arith.subf %219, %222 : vector<7x7xf32>
    %224 = math.exp %223 : vector<7x7xf32>
    %cst_72 = arith.constant dense<0.000000e+00> : vector<7xf32>
    %225 = vector.multi_reduction <add>, %224, %cst_72 [1] : vector<7x7xf32> to vector<7xf32>
    %226 = vector.shape_cast %225 : vector<7xf32> to vector<7x1xf32>
    %227 = tpu.reciprocal %226 {approx = true} : vector<7x1xf32> -> vector<7x1xf32>
    %228 = vector.broadcast %227 : vector<7x1xf32> to vector<7x7xf32>
    %229 = arith.mulf %224, %228 : vector<7x7xf32>
    %230 = vector.extract_strided_slice %171 {offsets = [0, 24], sizes = [7, 8], strides = [1, 1]} : vector<7x64xf32> to vector<7x8xf32>
    %cst_73 = arith.constant dense<0.000000e+00> : vector<7x8xf32>
    %231 = tpu.matmul %229, %230, %cst_73 {dimension_numbers = #tpu.dot_dimension_numbers<[1], [0], [0], [1], [0, 0, 1, 1], [], []>} : vector<7x7xf32>, vector<7x8xf32>, vector<7x8xf32> -> vector<7x8xf32>
    %232 = vector.extract_strided_slice %169 {offsets = [0, 32], sizes = [7, 8], strides = [1, 1]} : vector<7x64xf32> to vector<7x8xf32>
    %233 = vector.extract_strided_slice %170 {offsets = [0, 32], sizes = [7, 8], strides = [1, 1]} : vector<7x64xf32> to vector<7x8xf32>
    %cst_74 = arith.constant dense<0.000000e+00> : vector<7x7xf32>
    %234 = tpu.matmul %232, %233, %cst_74 {dimension_numbers = #tpu.dot_dimension_numbers<[1], [1], [0], [0], [0, 0, 1, 0], [], []>} : vector<7x8xf32>, vector<7x8xf32>, vector<7x7xf32> -> vector<7x7xf32>
    %cst_75 = arith.constant dense<0xFF800000> : vector<7xf32>
    %235 = vector.multi_reduction <maximumf>, %234, %cst_75 [1] : vector<7x7xf32> to vector<7xf32>
    %236 = vector.shape_cast %235 : vector<7xf32> to vector<7x1xf32>
    %237 = vector.broadcast %236 : vector<7x1xf32> to vector<7x7xf32>
    %238 = arith.subf %234, %237 : vector<7x7xf32>
    %239 = math.exp %238 : vector<7x7xf32>
    %cst_76 = arith.constant dense<0.000000e+00> : vector<7xf32>
    %240 = vector.multi_reduction <add>, %239, %cst_76 [1] : vector<7x7xf32> to vector<7xf32>
    %241 = vector.shape_cast %240 : vector<7xf32> to vector<7x1xf32>
    %242 = tpu.reciprocal %241 {approx = true} : vector<7x1xf32> -> vector<7x1xf32>
    %243 = vector.broadcast %242 : vector<7x1xf32> to vector<7x7xf32>
    %244 = arith.mulf %239, %243 : vector<7x7xf32>
    %245 = vector.extract_strided_slice %171 {offsets = [0, 32], sizes = [7, 8], strides = [1, 1]} : vector<7x64xf32> to vector<7x8xf32>
    %cst_77 = arith.constant dense<0.000000e+00> : vector<7x8xf32>
    %246 = tpu.matmul %244, %245, %cst_77 {dimension_numbers = #tpu.dot_dimension_numbers<[1], [0], [0], [1], [0, 0, 1, 1], [], []>} : vector<7x7xf32>, vector<7x8xf32>, vector<7x8xf32> -> vector<7x8xf32>
    %247 = vector.extract_strided_slice %169 {offsets = [0, 40], sizes = [7, 8], strides = [1, 1]} : vector<7x64xf32> to vector<7x8xf32>
    %248 = vector.extract_strided_slice %170 {offsets = [0, 40], sizes = [7, 8], strides = [1, 1]} : vector<7x64xf32> to vector<7x8xf32>
    %cst_78 = arith.constant dense<0.000000e+00> : vector<7x7xf32>
    %249 = tpu.matmul %247, %248, %cst_78 {dimension_numbers = #tpu.dot_dimension_numbers<[1], [1], [0], [0], [0, 0, 1, 0], [], []>} : vector<7x8xf32>, vector<7x8xf32>, vector<7x7xf32> -> vector<7x7xf32>
    %cst_79 = arith.constant dense<0xFF800000> : vector<7xf32>
    %250 = vector.multi_reduction <maximumf>, %249, %cst_79 [1] : vector<7x7xf32> to vector<7xf32>
    %251 = vector.shape_cast %250 : vector<7xf32> to vector<7x1xf32>
    %252 = vector.broadcast %251 : vector<7x1xf32> to vector<7x7xf32>
    %253 = arith.subf %249, %252 : vector<7x7xf32>
    %254 = math.exp %253 : vector<7x7xf32>
    %cst_80 = arith.constant dense<0.000000e+00> : vector<7xf32>
    %255 = vector.multi_reduction <add>, %254, %cst_80 [1] : vector<7x7xf32> to vector<7xf32>
    %256 = vector.shape_cast %255 : vector<7xf32> to vector<7x1xf32>
    %257 = tpu.reciprocal %256 {approx = true} : vector<7x1xf32> -> vector<7x1xf32>
    %258 = vector.broadcast %257 : vector<7x1xf32> to vector<7x7xf32>
    %259 = arith.mulf %254, %258 : vector<7x7xf32>
    %260 = vector.extract_strided_slice %171 {offsets = [0, 40], sizes = [7, 8], strides = [1, 1]} : vector<7x64xf32> to vector<7x8xf32>
    %cst_81 = arith.constant dense<0.000000e+00> : vector<7x8xf32>
    %261 = tpu.matmul %259, %260, %cst_81 {dimension_numbers = #tpu.dot_dimension_numbers<[1], [0], [0], [1], [0, 0, 1, 1], [], []>} : vector<7x7xf32>, vector<7x8xf32>, vector<7x8xf32> -> vector<7x8xf32>
    %262 = vector.extract_strided_slice %169 {offsets = [0, 48], sizes = [7, 8], strides = [1, 1]} : vector<7x64xf32> to vector<7x8xf32>
    %263 = vector.extract_strided_slice %170 {offsets = [0, 48], sizes = [7, 8], strides = [1, 1]} : vector<7x64xf32> to vector<7x8xf32>
    %cst_82 = arith.constant dense<0.000000e+00> : vector<7x7xf32>
    %264 = tpu.matmul %262, %263, %cst_82 {dimension_numbers = #tpu.dot_dimension_numbers<[1], [1], [0], [0], [0, 0, 1, 0], [], []>} : vector<7x8xf32>, vector<7x8xf32>, vector<7x7xf32> -> vector<7x7xf32>
    %cst_83 = arith.constant dense<0xFF800000> : vector<7xf32>
    %265 = vector.multi_reduction <maximumf>, %264, %cst_83 [1] : vector<7x7xf32> to vector<7xf32>
    %266 = vector.shape_cast %265 : vector<7xf32> to vector<7x1xf32>
    %267 = vector.broadcast %266 : vector<7x1xf32> to vector<7x7xf32>
    %268 = arith.subf %264, %267 : vector<7x7xf32>
    %269 = math.exp %268 : vector<7x7xf32>
    %cst_84 = arith.constant dense<0.000000e+00> : vector<7xf32>
    %270 = vector.multi_reduction <add>, %269, %cst_84 [1] : vector<7x7xf32> to vector<7xf32>
    %271 = vector.shape_cast %270 : vector<7xf32> to vector<7x1xf32>
    %272 = tpu.reciprocal %271 {approx = true} : vector<7x1xf32> -> vector<7x1xf32>
    %273 = vector.broadcast %272 : vector<7x1xf32> to vector<7x7xf32>
    %274 = arith.mulf %269, %273 : vector<7x7xf32>
    %275 = vector.extract_strided_slice %171 {offsets = [0, 48], sizes = [7, 8], strides = [1, 1]} : vector<7x64xf32> to vector<7x8xf32>
    %cst_85 = arith.constant dense<0.000000e+00> : vector<7x8xf32>
    %276 = tpu.matmul %274, %275, %cst_85 {dimension_numbers = #tpu.dot_dimension_numbers<[1], [0], [0], [1], [0, 0, 1, 1], [], []>} : vector<7x7xf32>, vector<7x8xf32>, vector<7x8xf32> -> vector<7x8xf32>
    %277 = vector.extract_strided_slice %169 {offsets = [0, 56], sizes = [7, 8], strides = [1, 1]} : vector<7x64xf32> to vector<7x8xf32>
    %278 = vector.extract_strided_slice %170 {offsets = [0, 56], sizes = [7, 8], strides = [1, 1]} : vector<7x64xf32> to vector<7x8xf32>
    %cst_86 = arith.constant dense<0.000000e+00> : vector<7x7xf32>
    %279 = tpu.matmul %277, %278, %cst_86 {dimension_numbers = #tpu.dot_dimension_numbers<[1], [1], [0], [0], [0, 0, 1, 0], [], []>} : vector<7x8xf32>, vector<7x8xf32>, vector<7x7xf32> -> vector<7x7xf32>
    %cst_87 = arith.constant dense<0xFF800000> : vector<7xf32>
    %280 = vector.multi_reduction <maximumf>, %279, %cst_87 [1] : vector<7x7xf32> to vector<7xf32>
    %281 = vector.shape_cast %280 : vector<7xf32> to vector<7x1xf32>
    %282 = vector.broadcast %281 : vector<7x1xf32> to vector<7x7xf32>
    %283 = arith.subf %279, %282 : vector<7x7xf32>
    %284 = math.exp %283 : vector<7x7xf32>
    %cst_88 = arith.constant dense<0.000000e+00> : vector<7xf32>
    %285 = vector.multi_reduction <add>, %284, %cst_88 [1] : vector<7x7xf32> to vector<7xf32>
    %286 = vector.shape_cast %285 : vector<7xf32> to vector<7x1xf32>
    %287 = tpu.reciprocal %286 {approx = true} : vector<7x1xf32> -> vector<7x1xf32>
    %288 = vector.broadcast %287 : vector<7x1xf32> to vector<7x7xf32>
    %289 = arith.mulf %284, %288 : vector<7x7xf32>
    %290 = vector.extract_strided_slice %171 {offsets = [0, 56], sizes = [7, 8], strides = [1, 1]} : vector<7x64xf32> to vector<7x8xf32>
    %cst_89 = arith.constant dense<0.000000e+00> : vector<7x8xf32>
    %291 = tpu.matmul %289, %290, %cst_89 {dimension_numbers = #tpu.dot_dimension_numbers<[1], [0], [0], [1], [0, 0, 1, 1], [], []>} : vector<7x7xf32>, vector<7x8xf32>, vector<7x8xf32> -> vector<7x8xf32>
    %292 = tpu.concatenate %186, %201, %216, %231, %246, %261, %276, %291 in 1 : vector<7x8xf32>, vector<7x8xf32>, vector<7x8xf32>, vector<7x8xf32>, vector<7x8xf32>, vector<7x8xf32>, vector<7x8xf32>, vector<7x8xf32> -> vector<7x64xf32>
    %293 = tpu.concatenate %168, %292 in 0 : vector<7x64xf32>, vector<7x64xf32> -> vector<14x64xf32>
    %c0_90 = arith.constant 0 : index
    %c0_91 = arith.constant 0 : index
    %294 = vector.load %arg6[%c0_90, %c0_91] : memref<64x64xbf16, #tpu.memory_space<vmem>>, vector<64x64xbf16>
    %295 = arith.truncf %293 : vector<14x64xf32> to vector<14x64xbf16>
    %cst_92 = arith.constant dense<0.000000e+00> : vector<14x64xf32>
    %296 = tpu.matmul %295, %294, %cst_92 {dimension_numbers = #tpu.dot_dimension_numbers<[1], [0], [0], [1], [0, 0, 1, 1], [], []>} : vector<14x64xbf16>, vector<64x64xbf16>, vector<14x64xf32> -> vector<14x64xf32>
    %297 = arith.addf %14, %296 : vector<14x64xf32>
    %c0_93 = arith.constant 0 : index
    %c0_94 = arith.constant 0 : index
    %298 = vector.load %arg7[%c0_93, %c0_94] : memref<1x64xf32, #tpu.memory_space<vmem>>, vector<1x64xf32>
    %299 = vector.broadcast %298 : vector<1x64xf32> to vector<14x64xf32>
    %300 = arith.addf %297, %299 : vector<14x64xf32>
    %c0_95 = arith.constant 0 : index
    %c0_96 = arith.constant 0 : index
    %301 = vector.load %arg8[%c0_95, %c0_96] : memref<1x64xf32, #tpu.memory_space<vmem>>, vector<1x64xf32>
    %c0_97 = arith.constant 0 : index
    %c0_98 = arith.constant 0 : index
    %302 = vector.load %arg9[%c0_97, %c0_98] : memref<1x64xf32, #tpu.memory_space<vmem>>, vector<1x64xf32>
    %cst_99 = arith.constant dense<0.000000e+00> : vector<14xf32>
    %303 = vector.multi_reduction <add>, %300, %cst_99 [1] : vector<14x64xf32> to vector<14xf32>
    %304 = vector.shape_cast %303 : vector<14xf32> to vector<14x1xf32>
    %cst_100 = arith.constant 6.400000e+01 : f32
    %305 = vector.broadcast %cst_100 : f32 to vector<14x1xf32>
    %306 = arith.divf %304, %305 : vector<14x1xf32>
    %307 = vector.broadcast %306 : vector<14x1xf32> to vector<14x64xf32>
    %308 = arith.subf %300, %307 : vector<14x64xf32>
    %309 = arith.mulf %308, %308 : vector<14x64xf32>
    %cst_101 = arith.constant dense<0.000000e+00> : vector<14xf32>
    %310 = vector.multi_reduction <add>, %309, %cst_101 [1] : vector<14x64xf32> to vector<14xf32>
    %311 = vector.shape_cast %310 : vector<14xf32> to vector<14x1xf32>
    %cst_102 = arith.constant 6.400000e+01 : f32
    %312 = vector.broadcast %cst_102 : f32 to vector<14x1xf32>
    %313 = arith.divf %311, %312 : vector<14x1xf32>
    %cst_103 = arith.constant 9.99999974E-6 : f32
    %314 = vector.broadcast %cst_103 : f32 to vector<14x1xf32>
    %315 = arith.addf %313, %314 : vector<14x1xf32>
    %316 = math.rsqrt %315 : vector<14x1xf32>
    %317 = vector.broadcast %316 : vector<14x1xf32> to vector<14x64xf32>
    %318 = arith.mulf %308, %317 : vector<14x64xf32>
    %319 = vector.broadcast %301 : vector<1x64xf32> to vector<14x64xf32>
    %320 = arith.mulf %318, %319 : vector<14x64xf32>
    %321 = vector.broadcast %302 : vector<1x64xf32> to vector<14x64xf32>
    %322 = arith.addf %320, %321 : vector<14x64xf32>
    %c0_104 = arith.constant 0 : index
    %c0_105 = arith.constant 0 : index
    %323 = vector.load %arg10[%c0_104, %c0_105] : memref<64x256xbf16, #tpu.memory_space<vmem>>, vector<64x256xbf16>
    %324 = arith.truncf %322 : vector<14x64xf32> to vector<14x64xbf16>
    %cst_106 = arith.constant dense<0.000000e+00> : vector<14x256xf32>
    %325 = tpu.matmul %324, %323, %cst_106 {dimension_numbers = #tpu.dot_dimension_numbers<[1], [0], [0], [1], [0, 0, 1, 1], [], []>} : vector<14x64xbf16>, vector<64x256xbf16>, vector<14x256xf32> -> vector<14x256xf32>
    %c0_107 = arith.constant 0 : index
    %c0_108 = arith.constant 0 : index
    %326 = vector.load %arg11[%c0_107, %c0_108] : memref<1x256xf32, #tpu.memory_space<vmem>>, vector<1x256xf32>
    %327 = vector.broadcast %326 : vector<1x256xf32> to vector<14x256xf32>
    %328 = arith.addf %325, %327 : vector<14x256xf32>
    %cst_109 = arith.constant 5.000000e-01 : f32
    %329 = vector.broadcast %cst_109 : f32 to vector<14x256xf32>
    %330 = arith.mulf %329, %328 : vector<14x256xf32>
    %cst_110 = arith.constant 4.471500e-02 : f32
    %331 = vector.broadcast %cst_110 : f32 to vector<14x256xf32>
    %332 = arith.mulf %331, %328 : vector<14x256xf32>
    %333 = arith.mulf %332, %328 : vector<14x256xf32>
    %334 = arith.mulf %333, %328 : vector<14x256xf32>
    %335 = arith.addf %328, %334 : vector<14x256xf32>
    %cst_111 = arith.constant 0.797884583 : f32
    %336 = vector.broadcast %cst_111 : f32 to vector<14x256xf32>
    %337 = arith.mulf %336, %335 : vector<14x256xf32>
    %338 = math.tanh %337 : vector<14x256xf32>
    %cst_112 = arith.constant 1.000000e+00 : f32
    %339 = vector.broadcast %cst_112 : f32 to vector<14x256xf32>
    %340 = arith.addf %339, %338 : vector<14x256xf32>
    %341 = arith.mulf %330, %340 : vector<14x256xf32>
    %c0_113 = arith.constant 0 : index
    %c0_114 = arith.constant 0 : index
    %342 = vector.load %arg12[%c0_113, %c0_114] : memref<256x64xbf16, #tpu.memory_space<vmem>>, vector<256x64xbf16>
    %343 = arith.truncf %341 : vector<14x256xf32> to vector<14x256xbf16>
    %cst_115 = arith.constant dense<0.000000e+00> : vector<14x64xf32>
    %344 = tpu.matmul %343, %342, %cst_115 {dimension_numbers = #tpu.dot_dimension_numbers<[1], [0], [0], [1], [0, 0, 1, 1], [], []>} : vector<14x256xbf16>, vector<256x64xbf16>, vector<14x64xf32> -> vector<14x64xf32>
    %345 = arith.addf %300, %344 : vector<14x64xf32>
    %c0_116 = arith.constant 0 : index
    %c0_117 = arith.constant 0 : index
    %346 = vector.load %arg13[%c0_116, %c0_117] : memref<1x64xf32, #tpu.memory_space<vmem>>, vector<1x64xf32>
    %347 = vector.broadcast %346 : vector<1x64xf32> to vector<14x64xf32>
    %348 = arith.addf %345, %347 : vector<14x64xf32>
    %349 = vector.extract_strided_slice %348 {offsets = [0, 0], sizes = [7, 64], strides = [1, 1]} : vector<14x64xf32> to vector<7x64xf32>
    %cst_118 = arith.constant dense<0.000000e+00> : vector<64xf32>
    %350 = vector.multi_reduction <add>, %349, %cst_118 [0] : vector<7x64xf32> to vector<64xf32>
    %351 = vector.shape_cast %350 : vector<64xf32> to vector<1x64xf32>
    %cst_119 = arith.constant 7.000000e+00 : f32
    %352 = vector.broadcast %cst_119 : f32 to vector<1x64xf32>
    %353 = arith.divf %351, %352 : vector<1x64xf32>
    %354 = vector.extract_strided_slice %348 {offsets = [7, 0], sizes = [7, 64], strides = [1, 1]} : vector<14x64xf32> to vector<7x64xf32>
    %cst_120 = arith.constant dense<0.000000e+00> : vector<64xf32>
    %355 = vector.multi_reduction <add>, %354, %cst_120 [0] : vector<7x64xf32> to vector<64xf32>
    %356 = vector.shape_cast %355 : vector<64xf32> to vector<1x64xf32>
    %cst_121 = arith.constant 7.000000e+00 : f32
    %357 = vector.broadcast %cst_121 : f32 to vector<1x64xf32>
    %358 = arith.divf %356, %357 : vector<1x64xf32>
    %359 = tpu.concatenate %353, %358 in 0 : vector<1x64xf32>, vector<1x64xf32> -> vector<2x64xf32>
    %c0_122 = arith.constant 0 : index
    %c0_123 = arith.constant 0 : index
    %360 = vector.load %arg14[%c0_122, %c0_123] : memref<64x128xbf16, #tpu.memory_space<vmem>>, vector<64x128xbf16>
    %361 = arith.truncf %359 : vector<2x64xf32> to vector<2x64xbf16>
    %cst_124 = arith.constant dense<0.000000e+00> : vector<2x128xf32>
    %362 = tpu.matmul %361, %360, %cst_124 {dimension_numbers = #tpu.dot_dimension_numbers<[1], [0], [0], [1], [0, 0, 1, 1], [], []>} : vector<2x64xbf16>, vector<64x128xbf16>, vector<2x128xf32> -> vector<2x128xf32>
    %c0_125 = arith.constant 0 : index
    %c0_126 = arith.constant 0 : index
    %363 = vector.load %arg15[%c0_125, %c0_126] : memref<1x128xf32, #tpu.memory_space<vmem>>, vector<1x128xf32>
    %364 = vector.broadcast %363 : vector<1x128xf32> to vector<2x128xf32>
    %365 = arith.addf %362, %364 : vector<2x128xf32>
    %c0_127 = arith.constant 0 : index
    %c0_128 = arith.constant 0 : index
    %366 = vector.load %arg16[%c0_127, %c0_128] : memref<2x128xf32, #tpu.memory_space<vmem>>, vector<2x128xf32>
    tpu.vector_store %arg16[%c0_127, %c0_128], %365 {strides = array<i32>} : memref<2x128xf32, #tpu.memory_space<vmem>>, vector<2x128xf32>,
    return
  }
}

</mosaic_0001>

<bundles_post_ra>
// kernel: eq.30
= control target key start
LH: loop header
LB: loop body
LE: loop exit
PB: predicated region body
PF: predicated region fallthrough
CT: control target
= control target key end

     0   :  { %vm7_vm0 = vcmask 31744   ;;  %vm13_vm1 = vcmask 64544   ;;  %s39_s0 = inlined_call_operand.vmem [shape: s32[2,4], index: 0, kind: input, shape index: {}]   ;;  %s40_s1 = inlined_call_operand.vmem [shape: s32[8], index: 1, kind: output, shape index: {}]  }
   0x1   :  { %v4_v0 = vld [vmem:[%s39_s0] sm:$0x3]  ;;  %s22_s0 = smov 4  }
   0x2   :  { %5 = vst [vmem:[#allocation1] sm:$0x3] %v4_v0 }
   0x9   :  { %v10_v1 = vld [vmem:[#allocation1 + $0x1] sm:$0x1]   ;;  %v6_v2 = vld [vmem:[#allocation1] sm:$0x1]  }
   0xa   :  { %11 = vrot.lane.b32.xlu0 %v10_v1, %s22_s0  ;;  %8 = vst.msk [vmem:[#allocation0] sm:$0x1] %vm7_vm0, %v6_v2  }
  0x7c   :  { %v12_v3 = vpop.permute.xlu0 %11  }
  0x7d   :  { %14 = vst.msk [vmem:[#allocation0] sm:$0x1] %vm13_vm1, %v12_v3  }
  0x84   :  { %v18_v4 = vld [vmem:[#allocation0] sm:$0x1] }
  0x85   :  { %20 = vst [vmem:[%s40_s1] sm:$0x1] %v18_v4 }

// kernel: forward.2
= control target key start
LH: loop header
LB: loop body
LE: loop exit
PB: predicated region body
PF: predicated region fallthrough
CT: control target
= control target key end

     0   :  { %s5508_s0 = inlined_call_operand.vmem [shape: f32[176,3], index: 0, kind: input, shape index: {}]   ;;  %s5509_s1 = inlined_call_operand.vmem [shape: f32[8,8], index: 1, kind: input, shape index: {}]   ;;  %s5510_s2 = inlined_call_operand.vmem [shape: f32[3,352], index: 2, kind: input, shape index: {}]   ;;  %s5511_s3 = inlined_call_operand.vmem [shape: f32[1,352], index: 3, kind: input, shape index: {}]   ;;  %s5512_s4 = inlined_call_operand.vmem [shape: bf16[32,32], index: 4, kind: input, shape index: {}]   ;;  %s5513_s5 = inlined_call_operand.vmem [shape: bf16[64,64], index: 5, kind: input, shape index: {}]   ;;  %s5514_s6 = inlined_call_operand.vmem [shape: bf16[128,128], index: 6, kind: input, shape index: {}]   ;;  %s5515_s7 = inlined_call_operand.vmem [shape: bf16[128,128], index: 7, kind: input, shape index: {}]   ;;  %s5516_s8 = inlined_call_operand.vmem [shape: f32[1,352], index: 8, kind: input, shape index: {}]   ;;  %s5517_s9 = inlined_call_operand.vmem [shape: bf16[352,64], index: 9, kind: input, shape index: {}]   ;;  %s5518_s10 = inlined_call_operand.vmem [shape: f32[4,1,64], index: 10, kind: input, shape index: {}]   ;;  %s5519_s11 = inlined_call_operand.vmem [shape: bf16[64,16], index: 11, kind: input, shape index: {}]   ;;  %s5520_s12 = inlined_call_operand.vmem [shape: f32[64,1], index: 12, kind: input, shape index: {}]   ;;  %s5521_s13 = inlined_call_operand.vmem [shape: f32[16,4], index: 13, kind: input, shape index: {}]   ;;  %s5522_s14 = inlined_call_operand.vmem [shape: f32[16,1], index: 14, kind: input, shape index: {}]   ;;  %s5523_s15 = inlined_call_operand.vmem [shape: bf16[4,64,64], index: 15, kind: input, shape index: {}]   ;;  %s5524_s16 = inlined_call_operand.vmem [shape: f32[4,1,64], index: 16, kind: input, shape index: {}]   ;;  %s5525_s17 = inlined_call_operand.vmem [shape: bf16[4,64,128], index: 17, kind: input, shape index: {}]   ;;  %s5526_s18 = inlined_call_operand.vmem [shape: f32[4,1,128], index: 18, kind: input, shape index: {}]   ;;  %s5527_s19 = inlined_call_operand.vmem [shape: f32[1,64], index: 19, kind: input, shape index: {}]   ;;  %s5528_s20 = inlined_call_operand.vmem [shape: f32[1,64], index: 20, kind: input, shape index: {}]   ;;  %s5529_s21 = inlined_call_operand.vmem [shape: bf16[64,128], index: 21, kind: input, shape index: {}]   ;;  %s5530_s22 = inlined_call_operand.vmem [shape: f32[1,128], index: 22, kind: input, shape index: {}]   ;;  %s5531_s23 = inlined_call_operand.vmem [shape: bf16[176,64], index: 23, kind: output, shape index: {0}]   ;;  %s5532_s24 = inlined_call_operand.vmem [shape: f32[176,128], index: 24, kind: output, shape index: {1}]   ;;  %s5533_s25 = inlined_call_operand.vmem [shape: f32[2,128], index: 25, kind: output, shape index: {2}]   ;;  %s5534_s26 = inlined_call_operand.hbm [shape: f32[1,1], index: 26, kind: output, shape index: {3}]  }
   0x1   :  { %5545 = sst [smem:[#allocation5_spill]] %s5508_s0 }
   0x2   :  { %5546 = sst [smem:[#allocation6_spill]] %s5509_s1 }
   0x3   :  { %5547 = sst [smem:[#allocation7_spill]] %s5510_s2 }
   0x4   :  { %5548 = sst [smem:[#allocation8_spill]] %s5511_s3 }
   0x5   :  { %5549 = sst [smem:[#allocation9_spill]] %s5512_s4 }
   0x6   :  { %5550 = sst [smem:[#allocation10_spill]] %s5513_s5 }
   0x7   :  { %5551 = sst [smem:[#allocation11_spill]] %s5514_s6 }
   0x8   :  { %5552 = sst [smem:[#allocation12_spill]] %s5515_s7 }
   0x9   :  { %5553 = sst [smem:[#allocation13_spill]] %s5516_s8 }
   0xa   :  { %5554 = sst [smem:[#allocation14_spill]] %s5517_s9 }
   0xb   :  { %5555 = sst [smem:[#allocation15_spill]] %s5518_s10 }
   0xc   :  { %s5556_s7 = sld [smem:[#allocation5_spill]]  ;;  %v4249_v2 = vmov 1   ;;  %v4250_v4 = vmov 2   ;;  %v4251_v7 = vmov 0  }
   0xd   :  { %4095 = vset.pattern.permute.xlu0 %v4249_v2  ;;  %4093 = vset.pattern.permute.xlu1 %v4249_v2 }
  0x12   :  { %v743_v0 = vld [vmem:[%s5556_s7 + $0x90] sm:$0xff]  ;;  %v741_v1 = vld [vmem:[%s5556_s7 + $0x80] sm:$0xff]  ;;  %v742_v3 = vld [vmem:[%s5556_s7 + $0x88] sm:$0xff] }
  0x13   :  { %778 = vperm.xlu0 %4095, %v743_v0   ;;  %770 = vperm.xlu1 %4093, %v741_v1   ;;  %v744_v5 = vld [vmem:[%s5556_s7 + $0x98] sm:$0xff]  ;;  %v80_v6 = vld [vmem:[%s5556_s7] sm:$0xff]  ;;  %v85_v9 = vld [vmem:[%s5556_s7 + $0x28] sm:$0xff] }
  0x14   :  { %v83_v8 = vld [vmem:[%s5556_s7 + $0x18] sm:$0xff]  ;;  %v86_v10 = vld [vmem:[%s5556_s7 + $0x30] sm:$0xff]  ;;  %v4426_v11 = vld [vmem:[%s5556_s7 + $0xa0] sm:$0xff] }
  0x15   :  { %v4432_v12 = vld [vmem:[%s5556_s7 + $0x48] sm:$0xff]  ;;  %v82_v14 = vld [vmem:[%s5556_s7 + $0x10] sm:$0xff]  ;;  %v84_v16 = vld [vmem:[%s5556_s7 + $0x20] sm:$0xff] }
  0x16   :  { %v81_v13 = vld [vmem:[%s5556_s7 + $0x8] sm:$0xff]  ;;  %v4450_v15 = vld [vmem:[%s5556_s7 + $0x50] sm:$0xff]  ;;  %v4459_v17 = vld [vmem:[%s5556_s7 + $0x60] sm:$0xff] }
  0x17   :  { %4098 = vset.pattern.permute.xlu0 %v4250_v4  ;;  %774 = vperm.xlu1 %4093, %v742_v3  }
  0x18   :  { %798 = vperm.xlu0 %4098, %v742_v3  }
  0x1b   :  { %4094 = vset.pattern.permute.xlu1 %v4251_v7 }
  0x1c   :  { %762 = vperm.xlu1 %4094, %v744_v5   ;;  %298 = vperm.xlu0 %4098, %v80_v6  }
  0x20   :  { %4096 = vset.pattern.permute.xlu1 %v4249_v2  ;;  %310 = vperm.xlu0 %4098, %v83_v8  }
  0x21   :  { %782 = vperm.xlu1 %4096, %v744_v5  }
  0x24   :  { %318 = vperm.xlu0 %4098, %v85_v9  }
  0x25   :  { %4097 = vset.pattern.permute.xlu1 %v4250_v4 }
  0x26   :  { %794 = vperm.xlu1 %4097, %v741_v1  }
  0x28   :  { %322 = vperm.xlu0 %4098, %v86_v10  }
  0x2a   :  { %802 = vperm.xlu1 %4097, %v743_v0  }
  0x2c   :  { %1076 = vperm.xlu0 %4098, %v4426_v11  }
  0x2e   :  { %806 = vperm.xlu1 %4097, %v744_v5  }
  0x30   :  { %334 = vperm.xlu0 %4098, %v4432_v12  }
  0x32   :  { %4099 = vset.pattern.permute.xlu1 %v4251_v7 }
  0x33   :  { %104 = vperm.xlu1 %4099, %v81_v13  }
  0x34   :  { %4117 = vset.pattern.permute.xlu0 %v4251_v7 }
  0x35   :  { %747 = vperm.xlu0 %4117, %v741_v1  }
  0x37   :  { %4100 = vset.pattern.permute.xlu1 %v4249_v2 }
  0x38   :  { %198 = vperm.xlu1 %4100, %v80_v6  }
  0x39   :  { %752 = vperm.xlu0 %4117, %v742_v3  }
  0x3c   :  { %4101 = vset.pattern.permute.xlu1 %v4251_v7 }
  0x3d   :  { %757 = vperm.xlu0 %4117, %v743_v0   ;;  %109 = vperm.xlu1 %4101, %v82_v14  }
  0x41   :  { %99 = vperm.xlu0 %4117, %v80_v6   ;;  %114 = vperm.xlu1 %4101, %v83_v8  }
  0x45   :  { %124 = vperm.xlu0 %4117, %v85_v9   ;;  %4102 = vset.pattern.permute.xlu1 %v4249_v2 }
  0x46   :  { %210 = vperm.xlu1 %4102, %v83_v8  }
  0x49   :  { %129 = vperm.xlu0 %4117, %v86_v10  }
  0x4a   :  { %4103 = vset.pattern.permute.xlu1 %v4250_v4 }
  0x4b   :  { %302 = vperm.xlu1 %4103, %v81_v13  }
  0x4d   :  { %144 = vperm.xlu0 %4117, %v4432_v12  }
  0x4f   :  { %306 = vperm.xlu1 %4103, %v82_v14  }
  0x51   :  { %149 = vperm.xlu0 %4117, %v4450_v15  }
  0x52   :  { %32 = vsyncpa [#allocation3], 0  ;;  %s5557_s4 = sld [smem:[#allocation9_spill]]  ;;  %v87_v19 = vld [vmem:[%s5556_s7 + $0x38] sm:$0xff]  ;;  %v4481_v21 = vld [vmem:[%s5556_s7 + $0x68] sm:$0xff]  ;;  %v177_v39 = vlaneseq  ;;  %s5558_s30 = sld [smem:[#allocation7_spill]] }
  0x53   :  { %4104 = vset.pattern.permute.xlu1 %v4251_v7  ;;  %v4488_v22 = vld [vmem:[%s5556_s7 + $0x70] sm:$0xff]  ;;  %v95_v23 = vld [vmem:[%s5556_s7 + $0x78] sm:$0xff]  ;;  %v4503_v24 = vld [vmem:[%s5556_s7 + $0xa8] sm:$0xff]  ;;  %s5559_s10 = sld [smem:[#allocation10_spill]]  ;;  %s5560_s27 = sld [smem:[#allocation8_spill]]  ;;  %vm451_vm0 = vcmask 261120  }
  0x54   :  { %119 = vperm.xlu1 %4104, %v84_v16   ;;  %v88_v25 = vld [vmem:[%s5556_s7 + $0x40] sm:$0xff]  ;;  %v91_v26 = vld [vmem:[%s5556_s7 + $0x58] sm:$0xff]  ;;  %v4539_v42 = vshrl.u32 %v177_v39, 7  ;;  %s4252_s3 = smov 96   ;;  %s4254_s6 = smov 32   ;;  %vm864_vm1 = vcmask 523264  }
  0x55   :  { %159 = vperm.xlu0 %4117, %v4459_v17   ;;  %s5561_s29 = sld [smem:[#allocation14_spill]]  ;;  %s5563_s28 = sld [smem:[#allocation13_spill]]  ;;  %vm4255_vm2 = vmmov 0   ;;  %vm1892_vm3 = vcmask 130048   ;;  %vm2116_vm4 = vcmask 519168   ;;  %vm3109_vm5 = vcmask 1040384  }
  0x56   :  { %v4547_v45 = vsub.s32 1, %v4539_v42  ;;  %v4550_v46 = vsub.s32 0, %v4539_v42  ;;  %v4556_v49 = vsub.s32 2, %v4539_v42  ;;  %s5564_s5 = sld [smem:[#allocation12_spill]]  ;;  %vm3278_vm6 = vcmask 64512  }
  0x57   :  { %vm3308_vm7 = vcmask 0  }
  0x58   :  { %4105 = vset.pattern.permute.xlu1 %v4249_v2  ;;  %v4137_v18 = vld [vmem:[%s5557_s4] sm:$0xff]   ;;  %v4138_v20 = vld [vmem:[%s5557_s4 + $0x8] sm:$0xff]  }
  0x59   :  { %4118 = vset.pattern.permute.xlu0 %v4249_v2  ;;  %214 = vperm.xlu1 %4105, %v84_v16   ;;  %v96_v47 = vld [vmem:[%s5558_s30] sm:$0x7] }
  0x5a   :  { %202 = vperm.xlu0 %4118, %v81_v13   ;;  %3731 = vmatprep.subr.bf16.mxu0 %v4137_v18  ;;  %v4559_v50 = vrot.slane %v96_v47, %v4547_v45  ;;  %v4562_v51 = vrot.slane %v96_v47, %v4550_v46  ;;  %v4566_v54 = vrot.slane %v96_v47, %v4556_v49  ;;  %v4584_v8 = vld [vmem:[%s5559_s10] sm:$0xff]  }
  0x5b   :  { %3732 = vmatpush3.bf16.msra.mxu0 %v4137_v18 }
  0x5c   :  { %3733 = vmatprep.subr.bf16.mxu0 %v4138_v20 }
  0x5d   :  { %218 = vperm.xlu1 %4105, %v85_v9   ;;  %v4589_v9 = vld [vmem:[%s5560_s27] ss:$0 sm:$0xff] }
  0x5e   :  { %206 = vperm.xlu0 %4118, %v82_v14  }
  0x5f   :  { %3734 = vmatpush3.bf16.msra.mxu0 %v4138_v20 }
  0x60   :  { %3771 = vmatprep.subr.bf16.mxu0 %v4584_v8 }
  0x61   :  { %4106 = vset.pattern.permute.xlu1 %v4251_v7 }
  0x62   :  { %222 = vperm.xlu0 %4118, %v86_v10   ;;  %134 = vperm.xlu1 %4106, %v87_v19  }
  0x66   :  { %4107 = vset.pattern.permute.xlu1 %v4249_v2  ;;  %238 = vperm.xlu0 %4118, %v4450_v15  }
  0x67   :  { %226 = vperm.xlu1 %4107, %v87_v19  }
  0x6a   :  { %250 = vperm.xlu0 %4118, %v4481_v21  }
  0x6b   :  { %4108 = vset.pattern.permute.xlu1 %v4250_v4 }
  0x6c   :  { %314 = vperm.xlu1 %4108, %v84_v16  }
  0x6e   :  { %254 = vperm.xlu0 %4118, %v4488_v22  }
  0x70   :  { %4109 = vset.pattern.permute.xlu1 %v4251_v7 }
  0x71   :  { %1025 = vperm.xlu1 %4109, %v4426_v11  }
  0x72   :  { %4123 = vset.pattern.permute.xlu0 %v4250_v4 }
  0x73   :  { %346 = vperm.xlu0 %4123, %v4459_v17  }
  0x75   :  { %4110 = vset.pattern.permute.xlu1 %v4249_v2 }
  0x76   :  { %1050 = vperm.xlu1 %4110, %v4426_v11  }
  0x77   :  { %358 = vperm.xlu0 %4123, %v95_v23  }
  0x7a   :  { %4111 = vset.pattern.permute.xlu1 %v4250_v4 }
  0x7b   :  { %326 = vperm.xlu1 %4111, %v87_v19   ;;  %4126 = vset.pattern.permute.xlu0 %v4249_v2 }
  0x7c   :  { %1389 = vperm.xlu0 %4126, %v4503_v24  }
  0x7f   :  { %4112 = vset.pattern.permute.xlu1 %v4251_v7 }
  0x80   :  { %139 = vperm.xlu1 %4112, %v88_v25   ;;  %4128 = vset.pattern.permute.xlu0 %v4251_v7 }
  0x84   :  { %4113 = vset.pattern.permute.xlu1 %v4249_v2 }
  0x85   :  { %230 = vperm.xlu1 %4113, %v88_v25  }
  0x89   :  { %234 = vperm.xlu1 %4113, %v4432_v12  }
  0x8d   :  { %4114 = vset.pattern.permute.xlu1 %v4251_v7 }
  0x8e   :  { %154 = vperm.xlu1 %4114, %v91_v26  }
  0x92   :  { %v4519_v27 = vpop.permute.xlu1 %770  ;;  %4115 = vset.pattern.permute.xlu1 %v4249_v2  ;;  %v779_v28 = vpop.permute.xlu0 %778 }
  0x93   :  { %242 = vperm.xlu1 %4115, %v91_v26   ;;  %v787_v56 = vmul.f32 %v779_v28, %v4559_v50  ;;  %v785_v12 = vmul.f32 %v4519_v27, %v4559_v50 }
  0x96   :  { %v775_v29 = vpop.permute.xlu1 %774 }
  0x97   :  { %4116 = vset.pattern.permute.xlu1 %v4250_v4  ;;  %v799_v30 = vpop.permute.xlu0 %798  ;;  %v786_v0 = vmul.f32 %v775_v29, %v4559_v50 }
  0x98   :  { %330 = vperm.xlu1 %4116, %v88_v25   ;;  %v810_v13 = vmul.f32 %v799_v30, %v4566_v54 }
  0x9b   :  { %v763_v31 = vpop.permute.xlu1 %762  ;;  %v4523_v32 = vpop.permute.xlu0 %298 }
  0x9c   :  { %338 = vperm.xlu1 %4116, %v4450_v15   ;;  %v768_v57 = vmul.f32 %v763_v31, %v4562_v51 }
  0x9f   :  { %v4526_v33 = vpop.permute.xlu0 %310 }
  0xa0   :  { %v783_v34 = vpop.permute.xlu1 %782  ;;  %342 = vperm.xlu1 %4116, %v91_v26  }
  0xa1   :  { %v788_v55 = vmul.f32 %v783_v34, %v4559_v50 }
  0xa3   :  { %v4528_v35 = vpop.permute.xlu0 %318  ;;  %v792_v61 = vadd.f32 %v788_v55, %v768_v57 }
  0xa4   :  { %4119 = vset.pattern.permute.xlu1 %v4251_v7 }
  0xa5   :  { %v795_v36 = vpop.permute.xlu1 %794  ;;  %164 = vperm.xlu1 %4119, %v4481_v21  }
  0xa6   :  { %v809_v20 = vmul.f32 %v795_v36, %v4566_v54 }
  0xa7   :  { %v4532_v37 = vpop.permute.xlu0 %322 }
  0xa9   :  { %v803_v38 = vpop.permute.xlu1 %802  ;;  %4120 = vset.pattern.permute.xlu1 %v4249_v2 }
  0xaa   :  { %246 = vperm.xlu1 %4120, %v4459_v17   ;;  %v811_v1 = vmul.f32 %v803_v38, %v4566_v54 }
  0xab   :  { %v4536_v40 = vpop.permute.xlu0 %1076 }
  0xad   :  { %v807_v41 = vpop.permute.xlu1 %806 }
  0xae   :  { %4121 = vset.pattern.permute.xlu1 %v4251_v7  ;;  %v812_v58 = vmul.f32 %v807_v41, %v4566_v54 }
  0xaf   :  { %169 = vperm.xlu1 %4121, %v4488_v22   ;;  %v4542_v43 = vpop.permute.xlu0 %334 }
  0xb0   :  { %v816_v3 = vadd.f32 %v812_v58, %v792_v61 }
  0xb2   :  { %v4544_v44 = vpop.permute.xlu1 %104  ;;  %v820_v16 = vadd.f32 %v4589_v9, %v816_v3 }
  0xb3   :  { %174 = vperm.xlu1 %4121, %v95_v23   ;;  %v182_v57 = vmul.f32 %v4562_v51, %v4544_v44 }
  0xb4   :  { %v748_v48 = vpop.permute.xlu0 %747 }
  0xb5   :  { %v765_v5 = vmul.f32 %v748_v48, %v4562_v51 }
  0xb7   :  { %4122 = vset.pattern.permute.xlu1 %v4249_v2  ;;  %v199_v52 = vpop.permute.xlu1 %198  ;;  %v789_v17 = vadd.f32 %v785_v12, %v765_v5 }
  0xb8   :  { %v753_v53 = vpop.permute.xlu0 %752  ;;  %258 = vperm.xlu1 %4122, %v95_v23   ;;  %v265_v47 = vmul.f32 %v4559_v50, %v199_v52 }
  0xb9   :  { %v766_v62 = vmul.f32 %v753_v53, %v4562_v51  ;;  %v813_v26 = vadd.f32 %v809_v20, %v789_v17 }
  0xbb   :  { %v790_v14 = vadd.f32 %v786_v0, %v766_v62  ;;  %v817_v29 = vadd.f32 %v4589_v9, %v813_v26  ;;  %v368_v62 = vmul.f32 %v4566_v54, %v4526_v33 }
  0xbc   :  { %v758_v59 = vpop.permute.xlu0 %757  ;;  %4124 = vset.pattern.permute.xlu1 %v4250_v4  ;;  %v4573_v60 = vpop.permute.xlu1 %109 }
  0xbd   :  { %v767_v63 = vmul.f32 %v758_v59, %v4562_v51  ;;  %350 = vperm.xlu1 %4124, %v4481_v21   ;;  %v814_v21 = vadd.f32 %v810_v13, %v790_v14  ;;  %v183_v3 = vmul.f32 %v4562_v51, %v4573_v60 }
  0xbf   :  { %v791_v6 = vadd.f32 %v787_v56, %v767_v63  ;;  %v818_v27 = vadd.f32 %v4589_v9, %v814_v21 }
  0xc0   :  { %v100_v10 = vpop.permute.xlu0 %99  ;;  %v115_v11 = vpop.permute.xlu1 %114 }
  0xc1   :  { %v815_v15 = vadd.f32 %v811_v1, %v791_v6  ;;  %354 = vperm.xlu1 %4124, %v4488_v22   ;;  %v829_v31 = vpack.c.bf16 %v818_v27, %v817_v29  ;;  %v181_v38 = vmul.f32 %v4562_v51, %v100_v10  ;;  %v184_v58 = vmul.f32 %v4562_v51, %v115_v11 }
  0xc2   :  { %v4654_v29 = vsub.s32 5, %v4539_v42 }
  0xc3   :  { %v819_v18 = vadd.f32 %v4589_v9, %v815_v15  ;;  %v281_v48 = vadd.f32 %v265_v47, %v181_v38 }
  0xc4   :  { %v125_v19 = vpop.permute.xlu0 %124 }
  0xc5   :  { %4125 = vset.pattern.permute.xlu1 %v4251_v7  ;;  %v211_v23 = vpop.permute.xlu1 %210  ;;  %v830_v25 = vpack.c.bf16 %v820_v16, %v819_v18  ;;  %v186_v16 = vmul.f32 %v4562_v51, %v125_v19 }
  0xc6   :  { %1364 = vperm.xlu1 %4125, %v4503_v24   ;;  %v268_v53 = vmul.f32 %v4559_v50, %v211_v23  ;;  %v4140_v23 = vld [vmem:[%s5559_s10 + $0x8] sm:$0xff]  }
  0xc7   :  { %835 = vrot.lane.b32.xlu0 %v830_v25, %s4252_s3  ;;  %v370_v25 = vmul.f32 %v4566_v54, %v4528_v35  ;;  %v4141_v35 = vld [vmem:[%s5559_s10 + $0x10] sm:$0xff]  }
  0xc8   :  { %v4602_v22 = vpop.permute.xlu0 %129  ;;  %v284_v52 = vadd.f32 %v268_v53, %v184_v58 }
  0xca   :  { %4127 = vset.pattern.permute.xlu1 %v4250_v4  ;;  %v303_v28 = vpop.permute.xlu1 %302  ;;  %v384_v10 = vadd.f32 %v368_v62, %v284_v52 }
  0xcb   :  { %1415 = vperm.xlu1 %4127, %v4503_v24   ;;  %v365_v24 = vmul.f32 %v4566_v54, %v4523_v32  ;;  %v366_v63 = vmul.f32 %v4566_v54, %v303_v28  ;;  %v4651_v28 = vsub.s32 4, %v4539_v42 }
  0xcc   :  { %v4608_v30 = vpop.permute.xlu0 %144  ;;  %v407_v60 = vadd.f32 %v4589_v9, %v384_v10 }
  0xcd   :  { %v381_v61 = vadd.f32 %v365_v24, %v281_v48 }
  0xce   :  { %v307_v34 = vpop.permute.xlu1 %306 }
  0xcf   :  { %833 = vrot.lane.b32.xlu1 %v829_v31, %s4252_s3  ;;  %v404_v6 = vadd.f32 %v4589_v9, %v381_v61  ;;  %v367_v11 = vmul.f32 %v4566_v54, %v307_v34  ;;  %v1022_v34 = vld [vmem:[%s5558_s30] sm:$0x77] }
  0xd0   :  { %v4611_v36 = vpop.permute.xlu0 %149  ;;  %4129 = vset.pattern.permute.xlu1 %v4251_v7  ;;  %v1032_v24 = vrot.slane %v1022_v34, %v4550_v46  ;;  %v1036_v53 = vrot.slane %v1022_v34, %v4651_v28  ;;  %v1082_v58 = vrot.slane %v1022_v34, %v4556_v49 }
  0xd2   :  { %v1092_v10 = vrot.slane %v1082_v58, %v4556_v49 }
  0xd3   :  { %v120_v39 = vpop.permute.xlu1 %119 }
  0xd4   :  { %v4615_v41 = vpop.permute.xlu0 %159  ;;  %v185_v27 = vmul.f32 %v4562_v51, %v120_v39 }
  0xd8   :  { %v215_v55 = vpop.permute.xlu1 %214 }
  0xd9   :  { %v203_v56 = vpop.permute.xlu0 %202  ;;  %v269_v26 = vmul.f32 %v4559_v50, %v215_v55  ;;  %v1056_v55 = vrot.slane %v1022_v34, %v4547_v45 }
  0xda   :  { %v266_v59 = vmul.f32 %v4559_v50, %v203_v56  ;;  %v1060_v56 = vrot.slane %v1022_v34, %v4654_v29 }
  0xdb   :  { %v285_v38 = vadd.f32 %v269_v26, %v185_v27 }
  0xdc   :  { %v282_v32 = vadd.f32 %v266_v59, %v182_v57  ;;  %v219_v0 = vpop.permute.xlu1 %218  ;;  %v4142_v57 = vld [vmem:[%s5559_s10 + $0x18] sm:$0xff]   ;;  %s5562_s10 = sld [smem:[#allocation11_spill]] }
  0xdd   :  { %v207_v1 = vpop.permute.xlu0 %206  ;;  %v270_v17 = vmul.f32 %v4559_v50, %v219_v0 }
  0xde   :  { %v382_v5 = vadd.f32 %v366_v63, %v282_v32  ;;  %v267_v44 = vmul.f32 %v4559_v50, %v207_v1  ;;  %v1042_v32 = vrot.slane %v1032_v24, %v4550_v46  ;;  %v1046_v1 = vrot.slane %v1036_v53, %v4550_v46 }
  0xdf   :  { %v286_v19 = vadd.f32 %v270_v17, %v186_v16  ;;  %v4253_v17 = vmov 0.0  }
  0xe0   :  { %v283_v12 = vadd.f32 %v267_v44, %v183_v3  ;;  %v405_v33 = vadd.f32 %v4589_v9, %v382_v5  ;;  %v1066_v3 = vrot.slane %v1056_v55, %v4547_v45  ;;  %v1070_v5 = vrot.slane %v1060_v56, %v4547_v45 }
  0xe1   :  { %v4634_v13 = vpop.permute.xlu1 %134  ;;  %v386_v39 = vadd.f32 %v370_v25, %v286_v19  ;;  %v223_v62 = vpop.permute.xlu0 %222  ;;  %v187_v44 = vmul.f32 %v4562_v51, %v4602_v22  ;;  %v1097_v25 = vmul.f32 %v1092_v10, %v4536_v40 }
  0xe2   :  { %v383_v14 = vadd.f32 %v367_v11, %v283_v12  ;;  %v424_v15 = vpack.c.bf16 %v405_v33, %v404_v6  ;;  %v271_v6 = vmul.f32 %v4559_v50, %v223_v62  ;;  %v1101_v12 = vld [vmem:[%s5560_s27] sm:$0x3]  ;;  %v190_v62 = vmul.f32 %v4562_v51, %v4608_v30 }
  0xe3   :  { %v409_v61 = vadd.f32 %v4589_v9, %v386_v39  ;;  %v191_v30 = vmul.f32 %v4562_v51, %v4611_v36 }
  0xe4   :  { %v406_v18 = vadd.f32 %v4589_v9, %v383_v14  ;;  %3735 = vmatprep.mubr.msk.bf16.mxu0 %vm451_vm0, %v424_v15  ;;  %v287_v22 = vadd.f32 %v271_v6, %v187_v44 }
  0xe5   :  { %v239_v6 = vpop.permute.xlu0 %238 }
  0xe6   :  { %v227_v20 = vpop.permute.xlu1 %226  ;;  %v425_v21 = vpack.c.bf16 %v407_v60, %v406_v18 }
  0xe7   :  { %v272_v18 = vmul.f32 %v4559_v50, %v227_v20 }
  0xe8   :  { %3736 = vmatmul.mubr.msk.bf16.vlgmr.msra.gmra.mrb[0].mxu0 %vm451_vm0, %v425_v21  ;;  %v1110_v21 = vrot.slane %v1101_v12, %v4547_v45 }
  0xe9   :  { %3772 = vmatpush3.bf16.msra.mxu0 %v4584_v8  ;;  %v4663_v8 = vsub.s32 6, %v4539_v42 }
  0xea   :  { %3773 = vmatprep.subr.bf16.mxu0 %v4140_v23 }
  0xeb   :  { %v315_v31 = vpop.permute.xlu1 %314  ;;  %v1086_v59 = vrot.slane %v1022_v34, %v4663_v8 }
  0xec   :  { %v369_v47 = vmul.f32 %v4566_v54, %v315_v31  ;;  %v188_v31 = vmul.f32 %v4562_v51, %v4634_v13 }
  0xed   :  { %3774 = vmatpush3.bf16.msra.mxu0 %v4140_v23  ;;  %v1096_v11 = vrot.slane %v1086_v59, %v4556_v49  ;;  %v1106_v23 = vrot.slane %v1101_v12, %v4550_v46 }
  0xee   :  { %v385_v48 = vadd.f32 %v369_v47, %v285_v38  ;;  %3775 = vmatprep.subr.bf16.mxu0 %v4141_v35  ;;  %v288_v47 = vadd.f32 %v272_v18, %v188_v31 }
  0xef   :  { %v1098_v26 = vmul.f32 %v1096_v11, %v4536_v40 }
  0xf0   :  { %v408_v52 = vadd.f32 %v4589_v9, %v385_v48  ;;  %v1026_v63 = vpop.permute.xlu1 %1025 }
  0xf1   :  { %3776 = vmatpush3.bf16.msra.mxu0 %v4141_v35  ;;  %v1047_v14 = vmul.f32 %v1042_v32, %v1026_v63  ;;  %v1048_v15 = vmul.f32 %v1046_v1, %v1026_v63  ;;  %v371_v35 = vmul.f32 %v4566_v54, %v4532_v37  ;;  %v374_v63 = vmul.f32 %v4566_v54, %v4542_v43 }
  0xf2   :  { %v426_v0 = vpack.c.bf16 %v409_v61, %v408_v52  ;;  %3777 = vmatprep.subr.bf16.mxu0 %v4142_v57 }
  0xf3   :  { %v387_v20 = vadd.f32 %v371_v35, %v287_v22 }
  0xf4   :  { %3739 = vmatprep.mubr.msk.bf16.mxu0 %vm451_vm0, %v426_v0 }
  0xf5   :  { %v1051_v33 = vpop.permute.xlu1 %1050  ;;  %3778 = vmatpush3.bf16.msra.mxu0 %v4142_v57  ;;  %v410_v57 = vadd.f32 %v4589_v9, %v387_v20 }
  0xf6   :  { %v1071_v16 = vmul.f32 %v1066_v3, %v1051_v33  ;;  %v1072_v60 = vmul.f32 %v1070_v5, %v1051_v33  ;;  %3795 = vmatprep.subr.bf16.mxu0 %v4253_v17  ;;  %v275_v33 = vmul.f32 %v4559_v50, %v239_v6 }
  0xf8   :  { %v1073_v19 = vadd.f32 %v1071_v16, %v1047_v14  ;;  %v1074_v27 = vadd.f32 %v1072_v60, %v1048_v15  ;;  %v291_v18 = vadd.f32 %v275_v33, %v191_v30 }
  0xfa   :  { %v1099_v34 = vadd.f32 %v1097_v25, %v1073_v19  ;;  %v1100_v38 = vadd.f32 %v1098_v26, %v1074_v27  ;;  %v327_v39 = vpop.permute.xlu1 %326 }
  0xfb   :  { %v372_v24 = vmul.f32 %v4566_v54, %v327_v39  ;;  %v251_v39 = vpop.permute.xlu0 %250 }
  0xfc   :  { %v1114_v48 = vadd.f32 %v1110_v21, %v1100_v38  ;;  %v1113_v53 = vadd.f32 %v1106_v23, %v1099_v34 }
  0xfd   :  { %v388_v55 = vadd.f32 %v372_v24, %v288_v47 }
  0xfe   :  { %v1132_v56 = vpack.c.bf16 %v1114_v48, %v1114_v48  ;;  %v1131_v40 = vpack.c.bf16 %v1113_v53, %v1113_v53 }
  0xff   :  { %v411_v58 = vadd.f32 %v4589_v9, %v388_v55  ;;  %v140_v37 = vpop.permute.xlu1 %139  ;;  %v255_v24 = vpop.permute.xlu0 %254 }
 0x100   :  { %1147 = vrot.lane.b32.xlu0 %v1132_v56, %s4254_s6  ;;  %1145 = vrot.lane.b32.xlu1 %v1131_v40, %s4254_s6  ;;  %v189_v44 = vmul.f32 %v4562_v51, %v140_v37  ;;  %v193_v56 = vmul.f32 %v4562_v51, %v4615_v41  ;;  %v278_v37 = vmul.f32 %v4559_v50, %v251_v39 }
 0x101   :  { %v427_v13 = vpack.c.bf16 %v411_v58, %v410_v57 }
 0x103   :  { %3740 = vmatmul.mubr.msk.bf16.gmra.mrb[4].mxu0 %vm451_vm0, %v427_v13  ;;  %v347_v55 = vpop.permute.xlu0 %346 }
 0x104   :  { %v231_v59 = vpop.permute.xlu1 %230  ;;  %v377_v58 = vmul.f32 %v4566_v54, %v347_v55 }
 0x105   :  { %v273_v5 = vmul.f32 %v4559_v50, %v231_v59 }
 0x107   :  { %v289_v11 = vadd.f32 %v273_v5, %v189_v44 }
 0x108   :  { %v235_v61 = vpop.permute.xlu1 %234 }
 0x109   :  { %v274_v52 = vmul.f32 %v4559_v50, %v235_v61  ;;  %v359_v61 = vpop.permute.xlu0 %358 }
 0x10a   :  { %v380_v41 = vmul.f32 %v4566_v54, %v359_v61 }
 0x10b   :  { %v290_v32 = vadd.f32 %v274_v52, %v190_v62  ;;  %v1361_v52 = vld [vmem:[%s5558_s30 + $0x4] sm:$0x77] }
 0x10c   :  { %v1395_v6 = vrot.slane %v1361_v52, %v4547_v45  ;;  %v1371_v30 = vrot.slane %v1361_v52, %v4550_v46  ;;  %v1375_v33 = vrot.slane %v1361_v52, %v4651_v28 }
 0x10d   :  { %v390_v0 = vadd.f32 %v374_v63, %v290_v32  ;;  %v155_v1 = vpop.permute.xlu1 %154 }
 0x10e   :  { %v192_v21 = vmul.f32 %v4562_v51, %v155_v1 }
 0x10f   :  { %v413_v15 = vadd.f32 %v4589_v9, %v390_v0  ;;  %v4157_v0 = vld [vmem:[%s5561_s29] sm:$0xff]  }
 0x110   :  { %3751 = vmatprep.subr.bf16.mxu1 %v4157_v0 }
 0x111   :  { %3752 = vmatpush3.bf16.msra.mxu1 %v4157_v0 }
 0x112   :  { %v243_v3 = vpop.permute.xlu1 %242 }
 0x113   :  { %v276_v16 = vmul.f32 %v4559_v50, %v243_v3 }
 0x115   :  { %v292_v26 = vadd.f32 %v276_v16, %v192_v21  ;;  %v1421_v21 = vrot.slane %v1361_v52, %v4556_v49 }
 0x117   :  { %v331_v10 = vpop.permute.xlu1 %330 }
 0x118   :  { %v373_v12 = vmul.f32 %v4566_v54, %v331_v10  ;;  %v1399_v10 = vrot.slane %v1361_v52, %v4654_v29 }
 0x11a   :  { %v389_v14 = vadd.f32 %v373_v12, %v289_v11  ;;  %v279_v11 = vmul.f32 %v4559_v50, %v255_v24 }
 0x11b   :  { %v339_v43 = vpop.permute.xlu1 %338 }
 0x11c   :  { %v412_v60 = vadd.f32 %v4589_v9, %v389_v14  ;;  %v375_v22 = vmul.f32 %v4566_v54, %v339_v43 }
 0x11e   :  { %v428_v23 = vpack.c.bf16 %v413_v15, %v412_v60  ;;  %v391_v19 = vadd.f32 %v375_v22, %v291_v18  ;;  %v1409_v18 = vrot.slane %v1399_v10, %v4547_v45 }
 0x11f   :  { %v343_v25 = vpop.permute.xlu1 %342 }
 0x120   :  { %v376_v36 = vmul.f32 %v4566_v54, %v343_v25  ;;  %3743 = vmatprep.mubr.msk.bf16.mxu0 %vm451_vm0, %v428_v23  ;;  %v414_v35 = vadd.f32 %v4589_v9, %v391_v19  ;;  %v1425_v23 = vrot.slane %v1361_v52, %v4663_v8  ;;  %v1381_v19 = vrot.slane %v1371_v30, %v4550_v46  ;;  %v4148_v30 = vld [vmem:[%s5562_s10 + $0x28] sm:$0xff]  }
 0x122   :  { %v392_v27 = vadd.f32 %v376_v36, %v292_v26  ;;  %v1385_v36 = vrot.slane %v1375_v33, %v4550_v46  ;;  %v1435_v39 = vrot.slane %v1425_v23, %v4556_v49  ;;  %v4149_v33 = vld [vmem:[%s5562_s10 + $0x30] sm:$0xff]  }
 0x123   :  { %v4158_v23 = vld [vmem:[%s5564_s5 + $0x30] sm:$0xff]  }
 0x124   :  { %v415_v31 = vadd.f32 %v4589_v9, %v392_v27  ;;  %v165_v34 = vpop.permute.xlu1 %164  ;;  %v1390_v27 = vpop.permute.xlu0 %1389 }
 0x125   :  { %v194_v13 = vmul.f32 %v4562_v51, %v165_v34 }
 0x126   :  { %v429_v38 = vpack.c.bf16 %v415_v31, %v414_v35 }
 0x127   :  { %v294_v1 = vadd.f32 %v278_v37, %v194_v13 }
 0x128   :  { %3744 = vmatmul.mubr.msk.bf16.gmra.mrb[8].mxu0 %vm451_vm0, %v429_v38  ;;  %v1431_v38 = vrot.slane %v1421_v21, %v4556_v49  ;;  %v4156_v21 = vld [vmem:[%s5564_s5 + $0x28] sm:$0xff]  }
 0x129   :  { %v247_v20 = vpop.permute.xlu1 %246 }
 0x12a   :  { %v277_v53 = vmul.f32 %v4559_v50, %v247_v20  ;;  %v1411_v20 = vmul.f32 %v1409_v18, %v1390_v27  ;;  %v4155_v18 = vld [vmem:[%s5564_s5 + $0x20] sm:$0xff]  }
 0x12c   :  { %v293_v57 = vadd.f32 %v277_v53, %v193_v56  ;;  %v1440_v53 = vld [vmem:[%s5560_s27 + $0x1] sm:$0x3] }
 0x12d   :  { %v1445_v56 = vrot.slane %v1440_v53, %v4550_v46 }
 0x12e   :  { %v170_v47 = vpop.permute.xlu1 %169  ;;  %v393_v63 = vadd.f32 %v377_v58, %v293_v57 }
 0x12f   :  { %v195_v3 = vmul.f32 %v4562_v51, %v170_v47 }
 0x130   :  { %v416_v14 = vadd.f32 %v4589_v9, %v393_v63 }
 0x131   :  { %v295_v15 = vadd.f32 %v279_v11, %v195_v3  ;;  %v4144_v3 = vld [vmem:[%s5562_s10 + $0x8] sm:$0xff]   ;;  %v4146_v11 = vld [vmem:[%s5562_s10 + $0x18] sm:$0xff]  }
 0x132   :  { %v175_v48 = vpop.permute.xlu1 %174 }
 0x133   :  { %v196_v62 = vmul.f32 %v4562_v51, %v175_v48  ;;  %v4159_v51 = vld [vmem:[%s5561_s29 + $0x8] sm:$0xff]  }
 0x134   :  { %3753 = vmatprep.subr.bf16.mxu1 %v4159_v51 }
 0x135   :  { %3754 = vmatpush3.bf16.msra.mxu1 %v4159_v51 }
 0x137   :  { %v259_v40 = vpop.permute.xlu1 %258 }
 0x138   :  { %v280_v59 = vmul.f32 %v4559_v50, %v259_v40  ;;  %v1405_v50 = vrot.slane %v1395_v6, %v4547_v45  ;;  %v4145_v6 = vld [vmem:[%s5562_s10 + $0x10] sm:$0xff]  }
 0x13a   :  { %v296_v5 = vadd.f32 %v280_v59, %v196_v62  ;;  %v1410_v34 = vmul.f32 %v1405_v50, %v1390_v27  ;;  %v4143_v62 = vld [vmem:[%s5562_s10] sm:$0xff]   ;;  %v4154_v50 = vld [vmem:[%s5564_s5 + $0x18] sm:$0xff]  }
 0x13c   :  { %v351_v32 = vpop.permute.xlu1 %350  ;;  %v396_v16 = vadd.f32 %v380_v41, %v296_v5  ;;  %v836_v41 = vpop.permute.xlu0 %835  ;;  %v4791_v5 = vld [vmem:[%s5563_s28] ss:$0 sm:$0xff] }
 0x13d   :  { %v378_v44 = vmul.f32 %v4566_v54, %v351_v32 }
 0x13e   :  { %v419_v35 = vadd.f32 %v4589_v9, %v396_v16 }
 0x13f   :  { %v394_v12 = vadd.f32 %v378_v44, %v294_v1  ;;  %v1133_v1 = vld [vmem:[%s5563_s28] sm:$0x3] }
 0x140   :  { %v355_v43 = vpop.permute.xlu1 %354  ;;  %v1138_v44 = vrot.slane %v1133_v1, %v4550_v46  ;;  %v1142_v10 = vrot.slane %v1133_v1, %v4547_v45 }
 0x141   :  { %v417_v60 = vadd.f32 %v4589_v9, %v394_v12  ;;  %v379_v22 = vmul.f32 %v4566_v54, %v355_v43  ;;  %v4147_v12 = vld [vmem:[%s5562_s10 + $0x20] sm:$0xff]  }
 0x142   :  { %v4151_v43 = vld [vmem:[%s5564_s5] sm:$0xff]  }
 0x143   :  { %v430_v25 = vpack.c.bf16 %v417_v60, %v416_v14  ;;  %v395_v26 = vadd.f32 %v379_v22, %v295_v15  ;;  %v4150_v14 = vld [vmem:[%s5562_s10 + $0x38] sm:$0xff]   ;;  %v4152_v60 = vld [vmem:[%s5564_s5 + $0x8] sm:$0xff]   ;;  %v4153_v22 = vld [vmem:[%s5564_s5 + $0x10] sm:$0xff]  }
 0x145   :  { %v418_v54 = vadd.f32 %v4589_v9, %v395_v26  ;;  %3747 = vmatprep.mubr.msk.bf16.mxu0 %vm451_vm0, %v430_v25  ;;  %v1365_v31 = vpop.permute.xlu1 %1364  ;;  %v1449_v9 = vrot.slane %v1440_v53, %v4547_v45  ;;  %v4160_v25 = vld [vmem:[%s5564_s5 + $0x38] sm:$0xff]   ;;  %v4161_v26 = vld [vmem:[%s5561_s29 + $0x10] sm:$0xff]  }
 0x146   :  { %v1386_v24 = vmul.f32 %v1381_v19, %v1365_v31  ;;  %v1387_v48 = vmul.f32 %v1385_v36, %v1365_v31  ;;  %3783 = vmatprep.subr.bf16.mxu1 %v4161_v26  ;;  %v1472_v19 = vld [vmem:[%s5563_s28 + $0x1] sm:$0x3]  ;;  %s5565_s28 = sld [smem:[#allocation15_spill]] }
 0x147   :  { %v431_v47 = vpack.c.bf16 %v419_v35, %v418_v54  ;;  %v1477_v36 = vrot.slane %v1472_v19, %v4550_v46  ;;  %v1481_v27 = vrot.slane %v1472_v19, %v4547_v45 }
 0x148   :  { %v1412_v40 = vadd.f32 %v1410_v34, %v1386_v24  ;;  %v1413_v57 = vadd.f32 %v1411_v20, %v1387_v48 }
 0x149   :  { %3748 = vmatmul.mubr.msk.bf16.gmra.mrb[12].mxu0 %vm451_vm0, %v431_v47 }
 0x14a   :  { %v1416_v55 = vpop.permute.xlu1 %1415 }
 0x14b   :  { %v1436_v58 = vmul.f32 %v1431_v38, %v1416_v55  ;;  %v1437_v37 = vmul.f32 %v1435_v39, %v1416_v55 }
 0x14d   :  { %v1438_v13 = vadd.f32 %v1436_v58, %v1412_v40  ;;  %v1439_v59 = vadd.f32 %v1437_v37, %v1413_v57  ;;  %v4162_v40 = vld [vmem:[%s5561_s29 + $0x18] sm:$0xff]  }
 0x14e   :  { %v834_v61 = vpop.permute.xlu1 %833 }
 0x14f   :  { %3779 = vmatprep.mubr.msk.bf16.mxu0 %vm864_vm1, %v834_v61  ;;  %v1453_v52 = vadd.f32 %v1449_v9, %v1439_v59  ;;  %v1452_v63 = vadd.f32 %v1445_v56, %v1438_v13  ;;  %v4163_v13 = vld [vmem:[%s5561_s29 + $0x20] sm:$0xff]   ;;  %v4164_v59 = vld [vmem:[%s5561_s29 + $0x28] sm:$0xff]  }
 0x151   :  { %3780 = vmatmul.mubr.msk.bf16.vlgmr.msra.gmra.mrb[16].mxu0 %vm864_vm1, %v836_v41  ;;  %v1471_v32 = vpack.c.bf16 %v1453_v52, %v1453_v52  ;;  %v1470_v0 = vpack.c.bf16 %v1452_v63, %v1452_v63 }
 0x152   :  { %3796 = vmatpush3.bf16.msra.mxu0 %v4143_v62  ;;  %3811 = vmatprep.mubr.msk.bf16.mxu0 %vm4255_vm2, %v4253_v17 }
 0x153   :  { %1486 = vrot.lane.b32.xlu0 %v1471_v32, %s4254_s6  ;;  %1484 = vrot.lane.b32.xlu1 %v1470_v0, %s4254_s6 }
 0x154   :  { %3797 = vmatprep.subr.bf16.mxu0 %v4253_v17 }
 0x156   :  { %3798 = vmatpush3.bf16.msra.mxu0 %v4144_v3 }
 0x157   :  { %3799 = vmatprep.subr.bf16.mxu0 %v4253_v17  ;;  %861 = vrot.lane.b32.xlu1 %v4791_v5, %s4252_s3 }
 0x158   :  { %1200 = vrot.lane.b32.xlu0 %v1138_v44, %s4254_s6 }
 0x15a   :  { %3800 = vmatpush3.bf16.msra.mxu0 %v4145_v6 }
 0x15b   :  { %3801 = vmatprep.subr.bf16.mxu0 %v4253_v17  ;;  %1202 = vrot.lane.b32.xlu1 %v1142_v10, %s4254_s6 }
 0x15c   :  { %1538 = vrot.lane.b32.xlu0 %v1477_v36, %s4254_s6 }
 0x15e   :  { %3802 = vmatpush3.bf16.msra.mxu0 %v4146_v11 }
 0x15f   :  { %3803 = vmatprep.subr.bf16.mxu0 %v4253_v17  ;;  %1540 = vrot.lane.b32.xlu1 %v1481_v27, %s4254_s6 }
 0x162   :  { %3804 = vmatpush3.bf16.msra.mxu0 %v4147_v12 }
 0x163   :  { %3805 = vmatprep.subr.bf16.mxu0 %v4253_v17 }
 0x166   :  { %3806 = vmatpush3.bf16.msra.mxu0 %v4148_v30 }
 0x167   :  { %3807 = vmatprep.subr.bf16.mxu0 %v4253_v17 }
 0x16a   :  { %3808 = vmatpush3.bf16.msra.mxu0 %v4149_v33 }
 0x16b   :  { %3809 = vmatprep.subr.bf16.mxu0 %v4253_v17 }
 0x16e   :  { %3810 = vmatpush3.bf16.msra.mxu0 %v4150_v14 }
 0x16f   :  { %3835 = vmatprep.subr.bf16.mxu0 %v4253_v17 }
 0x172   :  { %v1148_v51 = vpop.permute.xlu0 %1147  ;;  %v1146_v15 = vpop.permute.xlu1 %1145 }
 0x173   :  { %v1150_v16 = vsel %vm451_vm0, %v1146_v15, %v1148_v51 }
 0x174   :  { %3812 = vmatmul.mubr.bf16.vlgmr.msra.gmra.mrb[20].mxu0 %v1150_v16 }
 0x175   :  { %3836 = vmatpush3.bf16.msra.mxu0 %v4151_v43  ;;  %3851 = vmatprep.mubr.msk.bf16.mxu0 %vm4255_vm2, %v4253_v17 }
 0x176   :  { %3837 = vmatprep.subr.bf16.mxu0 %v4253_v17 }
 0x179   :  { %3838 = vmatpush3.bf16.msra.mxu0 %v4152_v60 }
 0x17a   :  { %3839 = vmatprep.subr.bf16.mxu0 %v4253_v17 }
 0x17d   :  { %3840 = vmatpush3.bf16.msra.mxu0 %v4153_v22 }
 0x17e   :  { %3841 = vmatprep.subr.bf16.mxu0 %v4253_v17 }
 0x181   :  { %3842 = vmatpush3.bf16.msra.mxu0 %v4154_v50 }
 0x182   :  { %3843 = vmatprep.subr.bf16.mxu0 %v4253_v17 }
 0x185   :  { %3844 = vmatpush3.bf16.msra.mxu0 %v4155_v18 }
 0x186   :  { %3845 = vmatprep.subr.bf16.mxu0 %v4253_v17 }
 0x189   :  { %3846 = vmatpush3.bf16.msra.mxu0 %v4156_v21 }
 0x18a   :  { %3847 = vmatprep.subr.bf16.mxu0 %v4253_v17 }
 0x18d   :  { %3848 = vmatpush3.bf16.msra.mxu0 %v4158_v23 }
 0x18e   :  { %3849 = vmatprep.subr.bf16.mxu0 %v4253_v17 }
 0x191   :  { %3850 = vmatpush3.bf16.msra.mxu0 %v4160_v25 }
 0x1bb   :  { %v3737_v35 = vpop.f32.mrb[0].mxu0 }
 0x1bc   :  { %v519_v54 = vadd.f32 %v3737_v35, %v4791_v5  ;;  %v510_v31 = vpop.f32.mrb[1].mxu0 }
 0x1bd   :  { %v511_v34 = vadd.f32 %v4791_v5, %v510_v31  ;;  %v3738_v38 = vpop.f32.mrb[2].mxu0 }
 0x1be   :  { %v522_v39 = vadd.f32 %v3738_v38, %v4791_v5  ;;  %v513_v20 = vpop.f32.mrb[3].mxu0  ;;  %v575_v24 = vmax.f32 %v519_v54, 0.0 }
 0x1bf   :  { %v514_v47 = vadd.f32 %v4791_v5, %v513_v20  ;;  %v573_v53 = vmax.f32 %v511_v34, 0.0  ;;  %v1702_v20 = vld [vmem:[%s5521_s13 + $0x8] sm:$0xff] }
 0x1c0   :  { %v576_v48 = vmax.f32 %v522_v39, 0.0  ;;  %1710 = vperm.xlu1 %4129, %v1702_v20  }
 0x1c1   :  { %v574_v55 = vmax.f32 %v514_v47, 0.0  ;;  %v1701_v47 = vld [vmem:[%s5521_s13] sm:$0xff] }
 0x1c2   :  { %v594_v9 = vpack.c.bf16 %v576_v48, %v575_v24  ;;  %1705 = vperm.xlu0 %4128, %v1701_v47  }
 0x1c3   :  { %v593_v56 = vpack.c.bf16 %v574_v55, %v573_v53 }
 0x1c5   :  { %3755 = vmatprep.mubr.msk.bf16.mxu1 %vm451_vm0, %v593_v56  ;;  %v1487_v57 = vpop.permute.xlu0 %1486  ;;  %v1485_v58 = vpop.permute.xlu1 %1484 }
 0x1c6   :  { %v1488_v37 = vsel %vm451_vm0, %v1485_v58, %v1487_v57  ;;  %3756 = vmatmul.mubr.msk.bf16.vlgmr.msra.gmra.mrb[0].mxu1 %vm451_vm0, %v594_v9 }
 0x1c7   :  { %3852 = vmatmul.mubr.bf16.vlgmr.msra.gmra.mrb[24].mxu0 %v1488_v37  ;;  %3784 = vmatpush3.bf16.msra.mxu1 %v4161_v26 }
 0x1c8   :  { %3785 = vmatprep.subr.bf16.mxu1 %v4162_v40 }
 0x1c9   :  { %v862_v53 = vpop.permute.xlu1 %861 }
 0x1cb   :  { %3786 = vmatpush3.bf16.msra.mxu1 %v4162_v40  ;;  %v1700_v40 = vld [vmem:[%s5522_s14 + $0x8] sm:$0xff] }
 0x1cc   :  { %3787 = vmatprep.subr.bf16.mxu1 %v4163_v13  ;;  %1726 = vperm.xlu0 %4128, %v1700_v40  }
 0x1cf   :  { %3788 = vmatpush3.bf16.msra.mxu1 %v4163_v13 }
 0x1d0   :  { %3789 = vmatprep.subr.bf16.mxu1 %v4164_v59  ;;  %4131 = vset.pattern.permute.xlu0 %v4249_v2 }
 0x1d1   :  { %1736 = vperm.xlu0 %4131, %v1702_v20  }
 0x1d3   :  { %3790 = vmatpush3.bf16.msra.mxu1 %v4164_v59 }
 0x1d4   :  { %3815 = vmatprep.subr.bf16.mxu1 %v4253_v17 }
 0x1d6   :  { %v3741_v61 = vpop.f32.mrb[4].mxu0 }
 0x1d7   :  { %v535_v62 = vadd.f32 %v3741_v61, %v4791_v5  ;;  %v526_v52 = vpop.f32.mrb[5].mxu0 }
 0x1d8   :  { %v527_v63 = vadd.f32 %v4791_v5, %v526_v52  ;;  %v3742_v41 = vpop.f32.mrb[6].mxu0 }
 0x1d9   :  { %v538_v32 = vadd.f32 %v3742_v41, %v4791_v5  ;;  %v529_v0 = vpop.f32.mrb[7].mxu0  ;;  %v579_v3 = vmax.f32 %v535_v62, 0.0 }
 0x1da   :  { %v530_v1 = vadd.f32 %v4791_v5, %v529_v0  ;;  %v577_v6 = vmax.f32 %v527_v63, 0.0 }
 0x1db   :  { %v580_v44 = vmax.f32 %v538_v32, 0.0 }
 0x1dc   :  { %v578_v10 = vmax.f32 %v530_v1, 0.0 }
 0x1dd   :  { %v596_v11 = vpack.c.bf16 %v580_v44, %v579_v3  ;;  %v4165_v3 = vld [vmem:[%s5561_s29 + $0x30] sm:$0xff]   ;;  %v4166_v44 = vld [vmem:[%s5561_s29 + $0x38] sm:$0xff]  }
 0x1de   :  { %v595_v12 = vpack.c.bf16 %v578_v10, %v577_v6  ;;  %v4167_v6 = vld [vmem:[%s5561_s29 + $0x40] sm:$0xff]   ;;  %v4169_v10 = vld [vmem:[%s5561_s29 + $0x50] sm:$0xff]  }
 0x1e0   :  { %3759 = vmatprep.mubr.msk.bf16.mxu1 %vm451_vm0, %v595_v12  ;;  %v1201_v12 = vpop.permute.xlu0 %1200 }
 0x1e1   :  { %3760 = vmatmul.mubr.msk.bf16.gmra.mrb[4].mxu1 %vm451_vm0, %v596_v11  ;;  %v4170_v11 = vld [vmem:[%s5561_s29 + $0x58] sm:$0xff]  }
 0x1fb   :  { %v3745_v30 = vpop.f32.mrb[8].mxu0 }
 0x1fc   :  { %v551_v33 = vadd.f32 %v3745_v30, %v4791_v5  ;;  %v542_v14 = vpop.f32.mrb[9].mxu0  ;;  %v1203_v30 = vpop.permute.xlu1 %1202 }
 0x1fd   :  { %v543_v43 = vadd.f32 %v4791_v5, %v542_v14  ;;  %v3746_v51 = vpop.f32.mrb[10].mxu0  ;;  %v1204_v14 = vsel %vm451_vm0, %v1201_v12, %v1203_v30 }
 0x1fe   :  { %v554_v15 = vadd.f32 %v3746_v51, %v4791_v5  ;;  %v545_v16 = vpop.f32.mrb[11].mxu0  ;;  %v583_v22 = vmax.f32 %v551_v33, 0.0  ;;  %v4171_v33 = vld [vmem:[%s5561_s29 + $0x60] sm:$0xff]  }
 0x1ff   :  { %v546_v60 = vadd.f32 %v4791_v5, %v545_v16  ;;  %v581_v18 = vmax.f32 %v543_v43, 0.0 }
 0x200   :  { %v584_v50 = vmax.f32 %v554_v15, 0.0  ;;  %v4172_v15 = vld [vmem:[%s5561_s29 + $0x68] sm:$0xff]  }
 0x201   :  { %v582_v21 = vmax.f32 %v546_v60, 0.0 }
 0x202   :  { %v598_v23 = vpack.c.bf16 %v584_v50, %v583_v22 }
 0x203   :  { %v597_v25 = vpack.c.bf16 %v582_v21, %v581_v18  ;;  %v4173_v18 = vld [vmem:[%s5561_s29 + $0x70] sm:$0xff]   ;;  %v4174_v21 = vld [vmem:[%s5561_s29 + $0x78] sm:$0xff]  }
 0x205   :  { %3763 = vmatprep.mubr.msk.bf16.mxu1 %vm451_vm0, %v597_v25  ;;  %v4176_v25 = vld [vmem:[%s5561_s29 + $0x88] sm:$0xff]  }
 0x206   :  { %3764 = vmatmul.mubr.msk.bf16.gmra.mrb[8].mxu1 %vm451_vm0, %v598_v23  ;;  %v4175_v23 = vld [vmem:[%s5561_s29 + $0x80] sm:$0xff]  }
 0x21c   :  { %v3749_v26 = vpop.f32.mrb[12].mxu0 }
 0x21d   :  { %v567_v19 = vadd.f32 %v3749_v26, %v4791_v5  ;;  %v558_v36 = vpop.f32.mrb[13].mxu0  ;;  %v4177_v26 = vld [vmem:[%s5561_s29 + $0x90] sm:$0xff]  }
 0x21e   :  { %v559_v27 = vadd.f32 %v4791_v5, %v558_v36  ;;  %v3750_v35 = vpop.f32.mrb[14].mxu0  ;;  %v4179_v36 = vld [vmem:[%s5561_s29 + $0xa0] sm:$0xff]  }
 0x21f   :  { %v570_v54 = vadd.f32 %v3750_v35, %v4791_v5  ;;  %v561_v31 = vpop.f32.mrb[15].mxu0  ;;  %v587_v38 = vmax.f32 %v567_v19, 0.0  ;;  %v4178_v19 = vld [vmem:[%s5561_s29 + $0x98] sm:$0xff]   ;;  %v1539_v35 = vpop.permute.xlu0 %1538 }
 0x220   :  { %v562_v34 = vadd.f32 %v4791_v5, %v561_v31  ;;  %v585_v24 = vmax.f32 %v559_v27, 0.0  ;;  %v1699_v5 = vld [vmem:[%s5522_s14] sm:$0xff]  ;;  %v4180_v27 = vld [vmem:[%s5561_s29 + $0xa8] sm:$0xff]  }
 0x221   :  { %v588_v39 = vmax.f32 %v570_v54, 0.0  ;;  %1721 = vperm.xlu1 %4129, %v1699_v5   ;;  %v1541_v54 = vpop.permute.xlu1 %1540  ;;  %v1830_v5 = vld [vmem:[%s5520_s12 + $0x30] sm:$0xff] }
 0x222   :  { %v586_v48 = vmax.f32 %v562_v34, 0.0  ;;  %v1542_v31 = vsel %vm451_vm0, %v1539_v35, %v1541_v54 }
 0x223   :  { %v600_v55 = vpack.c.bf16 %v588_v39, %v587_v38 }
 0x224   :  { %v599_v9 = vpack.c.bf16 %v586_v48, %v585_v24  ;;  %v3781_v56 = vpop.f32.mrb[16].mxu0 }
 0x225   :  { %v905_v57 = vpop.f32.mrb[17].mxu0  ;;  %v914_v58 = vadd.f32 %v3781_v56, %v862_v53  ;;  %4130 = vset.pattern.permute.xlu1 %v4249_v2  ;;  %v4256_v2 = vmov 3  }
 0x226   :  { %v906_v37 = vadd.f32 %v905_v57, %v862_v53  ;;  %3767 = vmatprep.mubr.msk.bf16.mxu1 %vm451_vm0, %v599_v9  ;;  %v3782_v13 = vpop.f32.mrb[18].mxu0  ;;  %1732 = vperm.xlu1 %4130, %v1701_v47  }
 0x227   :  { %v917_v59 = vadd.f32 %v3782_v13, %v862_v53  ;;  %3768 = vmatmul.mubr.msk.bf16.gmra.mrb[12].mxu1 %vm451_vm0, %v600_v55  ;;  %v908_v61 = vpop.f32.mrb[19].mxu0  ;;  %v922_v52 = vmax.f32 %v914_v58, 0.0  ;;  %4133 = vset.pattern.permute.xlu0 %v4256_v2  ;;  %v1828_v55 = vld [vmem:[%s5520_s12 + $0x20] sm:$0xff] }
 0x228   :  { %v909_v62 = vadd.f32 %v908_v61, %v862_v53  ;;  %v920_v41 = vmax.f32 %v906_v37, 0.0  ;;  %1764 = vperm.xlu0 %4133, %v1701_v47   ;;  %v1825_v53 = vld [vmem:[%s5520_s12 + $0x8] sm:$0xff]  ;;  %v5011_v58 = vld [vmem:[%s5519_s11] sm:$0xff]  }
 0x229   :  { %v923_v63 = vmax.f32 %v917_v59, 0.0 }
 0x22a   :  { %v921_v32 = vmax.f32 %v909_v62, 0.0  ;;  %4132 = vset.pattern.permute.xlu1 %v4250_v4  ;;  %v4168_v4 = vld [vmem:[%s5561_s29 + $0x48] sm:$0xff]   ;;  %v1824_v62 = vld [vmem:[%s5520_s12] sm:$0xff] }
 0x22b   :  { %v933_v0 = vpack.c.bf16 %v923_v63, %v922_v52  ;;  %1748 = vperm.xlu1 %4132, %v1701_v47   ;;  %v1826_v52 = vld [vmem:[%s5520_s12 + $0x10] sm:$0xff]  ;;  %v1827_v63 = vld [vmem:[%s5520_s12 + $0x18] sm:$0xff] }
 0x22c   :  { %v932_v1 = vpack.c.bf16 %v921_v32, %v920_v41  ;;  %4136 = vset.pattern.permute.xlu0 %v4251_v7  ;;  %v1829_v41 = vld [vmem:[%s5520_s12 + $0x28] sm:$0xff]  ;;  %v1831_v32 = vld [vmem:[%s5520_s12 + $0x38] sm:$0xff] }
 0x22d   :  { %1839 = vperm.xlu0 %4136, %v1825_v53  }
 0x22e   :  { %3791 = vmatprep.mubr.msk.bf16.mxu1 %vm864_vm1, %v932_v1 }
 0x22f   :  { %3792 = vmatmul.mubr.msk.bf16.vlgmr.msra.gmra.mrb[16].mxu1 %vm864_vm1, %v933_v0  ;;  %1752 = vperm.xlu1 %4132, %v1702_v20  }
 0x230   :  { %3816 = vmatpush3.bf16.msra.mxu1 %v4165_v3  ;;  %3831 = vmatprep.mubr.msk.bf16.mxu1 %vm4255_vm2, %v4253_v17 }
 0x231   :  { %3817 = vmatprep.subr.bf16.mxu1 %v4253_v17  ;;  %1854 = vperm.xlu0 %4136, %v1828_v55  }
 0x233   :  { %4134 = vset.pattern.permute.xlu1 %v4256_v2  ;;  %v3382_v2 = vld [vmem:[%s5565_s28 + $0x2] ss:$0 sm:$0xff] }
 0x234   :  { %3818 = vmatpush3.bf16.msra.mxu1 %v4166_v44  ;;  %1768 = vperm.xlu1 %4134, %v1702_v20  }
 0x235   :  { %3819 = vmatprep.subr.bf16.mxu1 %v4253_v17  ;;  %1864 = vperm.xlu0 %4136, %v1830_v5  }
 0x238   :  { %3820 = vmatpush3.bf16.msra.mxu1 %v4167_v6  ;;  %4135 = vset.pattern.permute.xlu1 %v4251_v7 }
 0x239   :  { %3821 = vmatprep.subr.bf16.mxu1 %v4253_v17  ;;  %1834 = vperm.xlu1 %4135, %v1824_v62  }
 0x23c   :  { %3822 = vmatpush3.bf16.msra.mxu1 %v4168_v4  ;;  %v3400_v4 = vld [vmem:[%s5565_s28 + $0x3] ss:$0 sm:$0xff] }
 0x23d   :  { %3823 = vmatprep.subr.bf16.mxu1 %v4253_v17  ;;  %1844 = vperm.xlu1 %4135, %v1826_v52  }
 0x23f   :  { %v1711_v0 = vpop.permute.xlu1 %1710 }
 0x240   :  { %3824 = vmatpush3.bf16.msra.mxu1 %v4169_v10 }
 0x241   :  { %3825 = vmatprep.subr.bf16.mxu1 %v4253_v17  ;;  %1849 = vperm.xlu1 %4135, %v1827_v63   ;;  %v1706_v44 = vpop.permute.xlu0 %1705 }
 0x244   :  { %3826 = vmatpush3.bf16.msra.mxu1 %v4170_v11 }
 0x245   :  { %3827 = vmatprep.subr.bf16.mxu1 %v4253_v17  ;;  %1859 = vperm.xlu1 %4135, %v1829_v41  }
 0x247   :  { %v1240_v43 = vpop.f32.mrb[20].mxu0 }
 0x248   :  { %v1241_v7 = vadd.f32 %v1240_v43, %v1204_v14  ;;  %3828 = vmatpush3.bf16.msra.mxu1 %v4171_v33  ;;  %v3813_v51 = vpop.f32.mrb[21].mxu0 }
 0x249   :  { %v1243_v16 = vpop.f32.mrb[22].mxu0  ;;  %3829 = vmatprep.subr.bf16.mxu1 %v4253_v17  ;;  %1869 = vperm.xlu1 %4135, %v1831_v32  }
 0x24a   :  { %v1246_v60 = vmax.f32 %v1241_v7, 0.0  ;;  %v3814_v22 = vpop.f32.mrb[23].mxu0 }
 0x24b   :  { %v1727_v12 = vpop.permute.xlu0 %1726  ;;  %v1805_v22 = vsub.s32 7, %v4539_v42 }
 0x24c   :  { %v1263_v50 = vpack.c.bf16 %v1246_v60, %v1246_v60  ;;  %3830 = vmatpush3.bf16.msra.mxu1 %v4172_v15  ;;  %v1773_v60 = vsub.s32 3, %v4539_v42 }
 0x24d   :  { %3855 = vmatprep.subr.bf16.mxu1 %v4253_v17 }
 0x24f   :  { %3832 = vmatmul.mubr.bf16.vlgmr.msra.gmra.mrb[20].mxu1 %v1263_v50 }
 0x250   :  { %3856 = vmatpush3.bf16.msra.mxu1 %v4173_v18  ;;  %3871 = vmatprep.mubr.msk.bf16.mxu1 %vm4255_vm2, %v4253_v17 }
 0x251   :  { %3857 = vmatprep.subr.bf16.mxu1 %v4253_v17 }
 0x254   :  { %3858 = vmatpush3.bf16.msra.mxu1 %v4174_v21 }
 0x255   :  { %3859 = vmatprep.subr.bf16.mxu1 %v4253_v17 }
 0x258   :  { %3860 = vmatpush3.bf16.msra.mxu1 %v4175_v23 }
 0x259   :  { %3861 = vmatprep.subr.bf16.mxu1 %v4253_v17 }
 0x25c   :  { %3862 = vmatpush3.bf16.msra.mxu1 %v4176_v25  ;;  %v1737_v25 = vpop.permute.xlu0 %1736 }
 0x25d   :  { %3863 = vmatprep.subr.bf16.mxu1 %v4253_v17 }
 0x260   :  { %3864 = vmatpush3.bf16.msra.mxu1 %v4177_v26 }
 0x261   :  { %3865 = vmatprep.subr.bf16.mxu1 %v4253_v17 }
 0x264   :  { %3866 = vmatpush3.bf16.msra.mxu1 %v4178_v19 }
 0x265   :  { %3867 = vmatprep.subr.bf16.mxu1 %v4253_v17 }
 0x268   :  { %3868 = vmatpush3.bf16.msra.mxu1 %v4179_v36 }
 0x269   :  { %3869 = vmatprep.subr.bf16.mxu1 %v4253_v17 }
 0x26c   :  { %3870 = vmatpush3.bf16.msra.mxu1 %v4180_v27 }
 0x29a   :  { %v1578_v34 = vpop.f32.mrb[24].mxu0 }
 0x29b   :  { %v1579_v38 = vadd.f32 %v1578_v34, %v1542_v31  ;;  %v3853_v39 = vpop.f32.mrb[25].mxu0 }
 0x29c   :  { %v1581_v20 = vpop.f32.mrb[26].mxu0 }
 0x29d   :  { %v1584_v47 = vmax.f32 %v1579_v38, 0.0  ;;  %v3854_v24 = vpop.f32.mrb[27].mxu0 }
 0x29f   :  { %v1601_v48 = vpack.c.bf16 %v1584_v47, %v1584_v47 }
 0x2a0   :  { %v1722_v1 = vpop.permute.xlu1 %1721 }
 0x2a1   :  { %3872 = vmatmul.mubr.bf16.vlgmr.msra.gmra.mrb[24].mxu1 %v1601_v48 }
 0x2a2   :  { %3877 = vmatprep.mubr.msk.bf16.mxu1 %vm1892_vm3, %v5011_v58 }
 0x2a5   :  { %v1733_v3 = vpop.permute.xlu1 %1732 }
 0x2aa   :  { %v1749_v6 = vpop.permute.xlu1 %1748 }
 0x2ae   :  { %v1753_v16 = vpop.permute.xlu1 %1752 }
 0x2b3   :  { %v1769_v20 = vpop.permute.xlu1 %1768 }
 0x302   :  { %v5000_v9 = vpop.f32.mrb[16].mxu1 }
 0x303   :  { %v5002_v56 = vpop.f32.mrb[17].mxu1 }
 0x304   :  { %v5004_v40 = vpop.f32.mrb[18].mxu1 }
 0x305   :  { %v5006_v57 = vpop.f32.mrb[19].mxu1 }
 0x322   :  { %v1354_v37 = vpop.f32.mrb[20].mxu1 }
 0x323   :  { %v3833_v13 = vpop.f32.mrb[21].mxu1  ;;  %v1355_v11 = vadd.f32 %v3382_v2, %v1354_v37  ;;  %v1765_v37 = vpop.permute.xlu0 %1764 }
 0x324   :  { %v1357_v59 = vpop.f32.mrb[22].mxu1 }
 0x325   :  { %v3834_v61 = vpop.f32.mrb[23].mxu1 }
 0x326   :  { %v3366_v61 = vld [vmem:[%s5565_s28 + $0x1] ss:$0 sm:$0xff] }
 0x327   :  { %v1018_v32 = vadd.f32 %v5004_v40, %v3366_v61 }
 0x374   :  { %v1692_v10 = vpop.f32.mrb[24].mxu1 }
 0x375   :  { %v5036_v30 = vadd.f32 %v3400_v4, %v1692_v10  ;;  %v3873_v33 = vpop.f32.mrb[25].mxu1 }
 0x376   :  { %v1695_v14 = vpop.f32.mrb[26].mxu1  ;;  %v1007_v33 = vadd.f32 %v3366_v61, %v5002_v56 }
 0x377   :  { %v1698_v43 = vadd.f32 %v5036_v30, %v1355_v11  ;;  %v5041_v7 = vpack.c.bf16 %v5036_v30, %v5036_v30  ;;  %v3874_v51 = vpop.f32.mrb[27].mxu1  ;;  %v3059_v15 = vsel %vm864_vm1, %v5036_v30, 0.0 }
 0x378   :  { %3060 = vadd.xlane.f32.xlu0 %v3059_v15 }
 0x379   :  { %2887 = vst.msk [vmem:[%s5531_s23 + $0x54] sm:$0xf] %vm2116_vm4, %v5041_v7  ;;  %v1716_v50 = vrot.slane %v1698_v43, %v4550_v46  ;;  %v1742_v18 = vrot.slane %v1698_v43, %v4547_v45  ;;  %v1782_v21 = vrot.slane %v1698_v43, %v4651_v28  ;;  %v1790_v23 = vrot.slane %v1698_v43, %v4654_v29 }
 0x37a   :  { %v1758_v36 = vrot.slane %v1698_v43, %v4556_v49  ;;  %v1798_v42 = vrot.slane %v1698_v43, %v4663_v8  ;;  %v1774_v27 = vrot.slane %v1698_v43, %v1773_v60  ;;  %v1806_v35 = vrot.slane %v1698_v43, %v1805_v22  ;;  %v4182_v22 = vld [vmem:[%s5519_s11 + $0x8] sm:$0xff]  }
 0x37b   :  { %v1718_v26 = vmul.f32 %v1716_v50, %v1711_v0  ;;  %v1784_v19 = vmul.f32 %v1782_v21, %v1711_v0  ;;  %v1744_v31 = vmul.f32 %v1742_v18, %v1737_v25  ;;  %v1792_v38 = vmul.f32 %v1790_v23, %v1737_v25  ;;  %v4187_v25 = vld [vmem:[%s5523_s15 + $0x10] sm:$0xff]  }
 0x37c   :  { %v1743_v46 = vmul.f32 %v1742_v18, %v1733_v3  ;;  %v1717_v39 = vmul.f32 %v1716_v50, %v1706_v44  ;;  %v1783_v45 = vmul.f32 %v1782_v21, %v1706_v44  ;;  %v1760_v29 = vmul.f32 %v1758_v36, %v1753_v16  ;;  %v4183_v50 = vld [vmem:[%s5519_s11 + $0x10] sm:$0xff]   ;;  %v4185_v18 = vld [vmem:[%s5523_s15] sm:$0xff]   ;;  %v4186_v21 = vld [vmem:[%s5523_s15 + $0x8] sm:$0xff]  }
 0x37d   :  { %v1730_v54 = vadd.f32 %v1727_v12, %v1718_v26  ;;  %v1786_v34 = vadd.f32 %v1784_v19, %v1727_v12  ;;  %v1800_v24 = vmul.f32 %v1798_v42, %v1753_v16  ;;  %v1791_v48 = vmul.f32 %v1790_v23, %v1733_v3  ;;  %3895 = vmatprep.subr.bf16.mxu0 %v4185_v18  ;;  %v4184_v23 = vld [vmem:[%s5519_s11 + $0x18] sm:$0xff]   ;;  %v1840_v19 = vpop.permute.xlu0 %1839 }
 0x37e   :  { %v1729_v53 = vadd.f32 %v1722_v1, %v1717_v39  ;;  %v1785_v55 = vadd.f32 %v1783_v45, %v1722_v1  ;;  %v5058_v49 = vpack.c.bf16 %v1698_v43, %v1698_v43  ;;  %v1776_v13 = vmul.f32 %v1774_v27, %v1769_v20  ;;  %3896 = vmatpush3.bf16.msra.mxu0 %v4185_v18  ;;  %v4188_v26 = vld [vmem:[%s5523_s15 + $0x18] sm:$0xff]  }
 0x37f   :  { %v1746_v28 = vadd.f32 %v1744_v31, %v1730_v54  ;;  %v1794_v47 = vadd.f32 %v1792_v38, %v1786_v34  ;;  %v1808_v59 = vmul.f32 %v1806_v35, %v1769_v20  ;;  %v1759_v62 = vmul.f32 %v1758_v36, %v1749_v6  ;;  %3897 = vmatprep.subr.bf16.mxu0 %v4186_v21  ;;  %v4189_v36 = vld [vmem:[%s5523_s15 + $0x20] sm:$0xff]  }
 0x380   :  { %v1799_v52 = vmul.f32 %v1798_v42, %v1749_v6  ;;  %v1745_v63 = vadd.f32 %v1743_v46, %v1729_v53  ;;  %v1793_v41 = vadd.f32 %v1791_v48, %v1785_v55  ;;  %2714 = vst.msk [vmem:[%s5531_s23 + $0x50] sm:$0xf] %vm2116_vm4, %v5058_v49  ;;  %v1010_v0 = vadd.f32 %v3366_v61, %v5006_v57  ;;  %v4193_v38 = vld [vmem:[%s5525_s17] sm:$0xff]   ;;  %v4194_v46 = vld [vmem:[%s5525_s17 + $0x8] sm:$0xff]  }
 0x381   :  { %v1762_v8 = vadd.f32 %v1760_v29, %v1746_v28  ;;  %v1802_v5 = vadd.f32 %v1800_v24, %v1794_v47  ;;  %v1775_v2 = vmul.f32 %v1774_v27, %v1765_v37  ;;  %v1807_v10 = vmul.f32 %v1806_v35, %v1765_v37  ;;  %v3348_v20 = vld [vmem:[%s5565_s28] ss:$0 sm:$0xff]  ;;  %s5566_s28 = sld [smem:[#allocation6_spill]] }
 0x382   :  { %v1761_v44 = vadd.f32 %v1759_v62, %v1745_v63  ;;  %v1801_v4 = vadd.f32 %v1799_v52, %v1793_v41  ;;  %v1015_v12 = vadd.f32 %v5000_v9, %v3366_v61  ;;  %3898 = vmatpush3.bf16.msra.mxu0 %v4186_v21  ;;  %v5143_v47 = vadd.f32 %v3348_v20, %v1840_v19  ;;  %v4192_v21 = vld [vmem:[%s5523_s15 + $0x38] sm:$0xff]  }
 0x383   :  { %v1778_v1 = vadd.f32 %v1776_v13, %v1762_v8  ;;  %v1810_v3 = vadd.f32 %v1808_v59, %v1802_v5  ;;  %3899 = vmatprep.subr.bf16.mxu0 %v4187_v25 }
 0x384   :  { %v1777_v14 = vadd.f32 %v1775_v2, %v1761_v44  ;;  %v1809_v43 = vadd.f32 %v1807_v10, %v1801_v4  ;;  %v4190_v44 = vld [vmem:[%s5523_s15 + $0x28] sm:$0xff]  }
 0x385   :  { %v1812_v11 = vadd.f32 %v1778_v1, %v1010_v0  ;;  %v1814_v6 = vadd.f32 %v1810_v3, %v1018_v32 }
 0x386   :  { %v1811_v16 = vadd.f32 %v1777_v14, %v1007_v33  ;;  %v1813_v40 = vadd.f32 %v1809_v43, %v1015_v12  ;;  %3900 = vmatpush3.bf16.msra.mxu0 %v4187_v25 }
 0x387   :  { %v3587_v51 = vpack.c.bf16 %v1812_v11, %v1812_v11  ;;  %v3589_v15 = vpack.c.bf16 %v1814_v6, %v1814_v6  ;;  %3901 = vmatprep.subr.bf16.mxu0 %v4188_v26 }
 0x388   :  { %v3586_v57 = vpack.c.bf16 %v1811_v16, %v1811_v16  ;;  %v3588_v9 = vpack.c.bf16 %v1813_v40, %v1813_v40  ;;  %v5080_v60 = vpack.c.bf16 %v1812_v11, %v1811_v16  ;;  %v5082_v56 = vpack.c.bf16 %v1814_v6, %v1813_v40  ;;  %v4191_v16 = vld [vmem:[%s5523_s15 + $0x30] sm:$0xff]  }
 0x389   :  { %2508 = vst.msk [vmem:[%s5531_s23 + $0x44] sm:$0xf] %vm2116_vm4, %v3587_v51  ;;  %2510 = vst.msk [vmem:[%s5531_s23 + $0x4c] sm:$0xf] %vm2116_vm4, %v3589_v15 }
 0x38a   :  { %2507 = vst.msk [vmem:[%s5531_s23 + $0x40] sm:$0xf] %vm2116_vm4, %v3586_v57  ;;  %2509 = vst.msk [vmem:[%s5531_s23 + $0x48] sm:$0xf] %vm2116_vm4, %v3588_v9  ;;  %3875 = vmatprep.subr.bf16.mxu1 %v5080_v60  ;;  %3902 = vmatpush3.bf16.msra.mxu0 %v4188_v26 }
 0x38b   :  { %3876 = vmatpush3.bf16.msra.mxu1 %v5080_v60  ;;  %3943 = vmatprep.subr.bf16.mxu0 %v4189_v36 }
 0x38c   :  { %3885 = vmatprep.subr.bf16.mxu1 %v5082_v56 }
 0x38e   :  { %3878 = vmatmul.mubr.msk.bf16.vlgmr.msra.gmra.mrb[0].mxu1 %vm1892_vm3, %v4182_v22 }
 0x38f   :  { %3886 = vmatpush3.bf16.msra.mxu1 %v5082_v56  ;;  %3881 = vmatprep.mubr.msk.bf16.mxu1 %vm1892_vm3, %v4183_v50 }
 0x390   :  { %3919 = vmatprep.subr.bf16.mxu1 %v4193_v38 }
 0x396   :  { %3882 = vmatmul.mubr.msk.bf16.gmra.mrb[4].mxu1 %vm1892_vm3, %v4184_v23 }
 0x397   :  { %3887 = vmatprep.mubr.msk.bf16.mxu1 %vm1892_vm3, %v5011_v58  ;;  %v1855_v58 = vpop.permute.xlu0 %1854 }
 0x398   :  { %v4042_v2 = vadd.f32 %v3348_v20, %v1855_v58 }
 0x39b   :  { %v1865_v42 = vpop.permute.xlu0 %1864 }
 0x39c   :  { %v4040_v3 = vadd.f32 %v3348_v20, %v1865_v42 }
 0x39e   :  { %3888 = vmatmul.mubr.msk.bf16.vlgmr.msra.gmra.mrb[8].mxu1 %vm1892_vm3, %v4182_v22 }
 0x39f   :  { %3891 = vmatprep.mubr.msk.bf16.mxu1 %vm1892_vm3, %v4183_v50  ;;  %3920 = vmatpush3.bf16.msra.mxu1 %v4193_v38 }
 0x3a0   :  { %3921 = vmatprep.subr.bf16.mxu1 %v4194_v46 }
 0x3a3   :  { %3922 = vmatpush3.bf16.msra.mxu1 %v4194_v46 }
 0x3a6   :  { %3892 = vmatmul.mubr.msk.bf16.gmra.mrb[12].mxu1 %vm1892_vm3, %v4184_v23 }
 0x405   :  { %v3061_v27 = vpop.xlane.xlu0 %3060 }
 0x406   :  { %v3063_v35 = vmul.f32 0.015625, %v3061_v27 }
 0x408   :  { %v5129_v54 = vsub.f32 %v5036_v30, %v3063_v35  ;;  %v1835_v30 = vpop.permute.xlu1 %1834 }
 0x409   :  { %v4034_v29 = vadd.f32 %v3348_v20, %v1835_v30 }
 0x40a   :  { %v3065_v31 = vmul.f32 %v5129_v54, %v5129_v54 }
 0x40c   :  { %v3066_v34 = vsel %vm864_vm1, %v3065_v31, 0.0  ;;  %v1845_v39 = vpop.permute.xlu1 %1844 }
 0x40d   :  { %3067 = vadd.xlane.f32.xlu1 %v3066_v34  ;;  %v4032_v28 = vadd.f32 %v3348_v20, %v1845_v39 }
 0x410   :  { %v1850_v45 = vpop.permute.xlu1 %1849 }
 0x411   :  { %v4036_v53 = vadd.f32 %v3348_v20, %v1850_v45 }
 0x414   :  { %v1860_v24 = vpop.permute.xlu1 %1859 }
 0x415   :  { %v4046_v12 = vadd.f32 %v3348_v20, %v1860_v24 }
 0x418   :  { %v1870_v32 = vpop.permute.xlu1 %1869 }
 0x419   :  { %v4044_v10 = vadd.f32 %v3348_v20, %v1870_v32  ;;  %v3560_v32 = vld [vmem:[%s5528_s20] ss:$0 sm:$0xff] }
 0x461   :  { %v3879_v48 = vpop.f32.mrb[0].mxu1 }
 0x462   :  { %v4033_v55 = vadd.f32 %v4032_v28, %v3879_v48  ;;  %v1939_v8 = vpop.f32.mrb[1].mxu1 }
 0x463   :  { %v4035_v5 = vadd.f32 %v4034_v29, %v1939_v8  ;;  %v3880_v37 = vpop.f32.mrb[2].mxu1 }
 0x464   :  { %v3572_v13 = vpack.c.bf16 %v4033_v55, %v4033_v55  ;;  %v4037_v59 = vadd.f32 %v4036_v53, %v3880_v37  ;;  %v1942_v61 = vpop.f32.mrb[3].mxu1 }
 0x465   :  { %v3570_v62 = vpack.c.bf16 %v4035_v5, %v4035_v5  ;;  %v4039_v52 = vadd.f32 %v5143_v47, %v1942_v61 }
 0x466   :  { %2119 = vst.msk [vmem:[%s5531_s23 + $0x8] sm:$0xf] %vm2116_vm4, %v3572_v13  ;;  %v2053_v63 = vpack.c.bf16 %v4037_v59, %v4033_v55  ;;  %v3573_v41 = vpack.c.bf16 %v4037_v59, %v4037_v59 }
 0x467   :  { %2117 = vst.msk [vmem:[%s5531_s23] sm:$0xf] %vm2116_vm4, %v3570_v62  ;;  %v2052_v0 = vpack.c.bf16 %v4039_v52, %v4035_v5  ;;  %v3571_v1 = vpack.c.bf16 %v4039_v52, %v4039_v52 }
 0x468   :  { %2120 = vst.msk [vmem:[%s5531_s23 + $0xc] sm:$0xf] %vm2116_vm4, %v3573_v41 }
 0x469   :  { %2118 = vst.msk [vmem:[%s5531_s23 + $0x4] sm:$0xf] %vm2116_vm4, %v3571_v1  ;;  %v3883_v4 = vpop.f32.mrb[4].mxu1  ;;  %3903 = vmatprep.mubr.msk.bf16.mxu0 %vm864_vm1, %v2052_v0 }
 0x46a   :  { %v4041_v11 = vadd.f32 %v4040_v3, %v3883_v4  ;;  %v1955_v6 = vpop.f32.mrb[5].mxu1  ;;  %3904 = vmatmul.mubr.msk.bf16.vlgmr.msra.gmra.mrb[28].mxu0 %vm864_vm1, %v2053_v63  ;;  %v3559_v63 = vld [vmem:[%s5527_s19] ss:$0 sm:$0xff]  ;;  %v4202_v4 = vld [vmem:[%s5525_s17 + $0x30] sm:$0xff]  }
 0x46b   :  { %v4043_v33 = vadd.f32 %v4042_v2, %v1955_v6  ;;  %v3884_v14 = vpop.f32.mrb[6].mxu1  ;;  %3944 = vmatpush3.bf16.msra.mxu0 %v4189_v36 }
 0x46c   :  { %v3576_v43 = vpack.c.bf16 %v4041_v11, %v4041_v11  ;;  %v4045_v51 = vadd.f32 %v4044_v10, %v3884_v14  ;;  %v1958_v15 = vpop.f32.mrb[7].mxu1  ;;  %3945 = vmatprep.subr.bf16.mxu0 %v4190_v44 }
 0x46d   :  { %v3574_v40 = vpack.c.bf16 %v4043_v33, %v4043_v33  ;;  %v4047_v57 = vadd.f32 %v4046_v12, %v1958_v15 }
 0x46e   :  { %2123 = vst.msk [vmem:[%s5531_s23 + $0x18] sm:$0xf] %vm2116_vm4, %v3576_v43  ;;  %v2055_v9 = vpack.c.bf16 %v4045_v51, %v4041_v11  ;;  %v3577_v22 = vpack.c.bf16 %v4045_v51, %v4045_v51  ;;  %v5267_v11 = vld [vmem:[%s5524_s16] ss:$0 sm:$0xff] }
 0x46f   :  { %2121 = vst.msk [vmem:[%s5531_s23 + $0x10] sm:$0xf] %vm2116_vm4, %v3574_v40  ;;  %v2054_v50 = vpack.c.bf16 %v4047_v57, %v4043_v33  ;;  %v3575_v18 = vpack.c.bf16 %v4047_v57, %v4047_v57  ;;  %3946 = vmatpush3.bf16.msra.mxu0 %v4190_v44  ;;  %v4199_v44 = vld [vmem:[%s5525_s17 + $0x20] sm:$0xff]  }
 0x470   :  { %2124 = vst.msk [vmem:[%s5531_s23 + $0x1c] sm:$0xf] %vm2116_vm4, %v3577_v22  ;;  %3947 = vmatprep.subr.bf16.mxu0 %v4191_v16 }
 0x471   :  { %2122 = vst.msk [vmem:[%s5531_s23 + $0x14] sm:$0xf] %vm2116_vm4, %v3575_v18  ;;  %v3889_v23 = vpop.f32.mrb[8].mxu1  ;;  %3907 = vmatprep.mubr.msk.bf16.mxu0 %vm864_vm1, %v2054_v50 }
 0x472   :  { %v4049_v25 = vadd.f32 %v4032_v28, %v3889_v23  ;;  %v2005_v26 = vpop.f32.mrb[9].mxu1  ;;  %3908 = vmatmul.mubr.msk.bf16.gmra.mrb[32].mxu0 %vm864_vm1, %v2055_v9  ;;  %v4197_v23 = vld [vmem:[%s5523_s15 + $0x40] sm:$0xff]  }
 0x473   :  { %v4051_v19 = vadd.f32 %v4034_v29, %v2005_v26  ;;  %v3890_v58 = vpop.f32.mrb[10].mxu1  ;;  %3948 = vmatpush3.bf16.msra.mxu0 %v4191_v16 }
 0x474   :  { %v3580_v36 = vpack.c.bf16 %v4049_v25, %v4049_v25  ;;  %v4053_v42 = vadd.f32 %v4036_v53, %v3890_v58  ;;  %v2008_v27 = vpop.f32.mrb[11].mxu1  ;;  %3949 = vmatprep.subr.bf16.mxu0 %v4192_v21 }
 0x475   :  { %v3578_v35 = vpack.c.bf16 %v4051_v19, %v4051_v19  ;;  %v4055_v31 = vadd.f32 %v5143_v47, %v2008_v27 }
 0x476   :  { %2127 = vst.msk [vmem:[%s5531_s23 + $0x28] sm:$0xf] %vm2116_vm4, %v3580_v36  ;;  %v2057_v34 = vpack.c.bf16 %v4053_v42, %v4049_v25  ;;  %v3581_v38 = vpack.c.bf16 %v4053_v42, %v4053_v42 }
 0x477   :  { %2125 = vst.msk [vmem:[%s5531_s23 + $0x20] sm:$0xf] %vm2116_vm4, %v3578_v35  ;;  %v2056_v46 = vpack.c.bf16 %v4055_v31, %v4051_v19  ;;  %v3579_v30 = vpack.c.bf16 %v4055_v31, %v4055_v31  ;;  %3950 = vmatpush3.bf16.msra.mxu0 %v4192_v21  ;;  %v4198_v35 = vld [vmem:[%s5523_s15 + $0x48] sm:$0xff]  }
 0x478   :  { %2128 = vst.msk [vmem:[%s5531_s23 + $0x2c] sm:$0xf] %vm2116_vm4, %v3581_v38  ;;  %3955 = vmatprep.subr.bf16.mxu0 %v4199_v44 }
 0x479   :  { %2126 = vst.msk [vmem:[%s5531_s23 + $0x24] sm:$0xf] %vm2116_vm4, %v3579_v30  ;;  %v3893_v39 = vpop.f32.mrb[12].mxu1  ;;  %3911 = vmatprep.mubr.msk.bf16.mxu0 %vm864_vm1, %v2056_v46 }
 0x47a   :  { %v4057_v45 = vadd.f32 %v4040_v3, %v3893_v39  ;;  %v2021_v20 = vpop.f32.mrb[13].mxu1  ;;  %3912 = vmatmul.mubr.msk.bf16.gmra.mrb[36].mxu0 %vm864_vm1, %v2057_v34  ;;  %v4195_v3 = vld [vmem:[%s5525_s17 + $0x10] sm:$0xff]  }
 0x47b   :  { %v4059_v28 = vadd.f32 %v4042_v2, %v2021_v20  ;;  %v3894_v47 = vpop.f32.mrb[14].mxu1  ;;  %3923 = vmatprep.subr.bf16.mxu1 %v4195_v3  ;;  %v4200_v2 = vld [vmem:[%s5525_s17 + $0x28] sm:$0xff]   ;;  %v4201_v20 = vld [vmem:[%s5523_s15 + $0x50] sm:$0xff]  }
 0x47c   :  { %v3584_v29 = vpack.c.bf16 %v4057_v45, %v4057_v45  ;;  %v4061_v24 = vadd.f32 %v4044_v10, %v3894_v47  ;;  %v2024_v48 = vpop.f32.mrb[15].mxu1  ;;  %3924 = vmatpush3.bf16.msra.mxu1 %v4195_v3  ;;  %v4203_v10 = vld [vmem:[%s5525_s17 + $0x38] sm:$0xff]  }
 0x47d   :  { %v3582_v53 = vpack.c.bf16 %v4059_v28, %v4059_v28  ;;  %v4063_v55 = vadd.f32 %v4046_v12, %v2024_v48 }
 0x47e   :  { %2131 = vst.msk [vmem:[%s5531_s23 + $0x38] sm:$0xf] %vm2116_vm4, %v3584_v29  ;;  %v2059_v8 = vpack.c.bf16 %v4061_v24, %v4057_v45  ;;  %v3585_v5 = vpack.c.bf16 %v4061_v24, %v4061_v24 }
 0x47f   :  { %2129 = vst.msk [vmem:[%s5531_s23 + $0x30] sm:$0xf] %vm2116_vm4, %v3582_v53  ;;  %v2058_v37 = vpack.c.bf16 %v4063_v55, %v4059_v28  ;;  %v3583_v13 = vpack.c.bf16 %v4063_v55, %v4063_v55 }
 0x480   :  { %2132 = vst.msk [vmem:[%s5531_s23 + $0x3c] sm:$0xf] %vm2116_vm4, %v3585_v5 }
 0x481   :  { %2130 = vst.msk [vmem:[%s5531_s23 + $0x34] sm:$0xf] %vm2116_vm4, %v3583_v13  ;;  %3915 = vmatprep.mubr.msk.bf16.mxu0 %vm864_vm1, %v2058_v37 }
 0x482   :  { %3916 = vmatmul.mubr.msk.bf16.gmra.mrb[40].mxu0 %vm864_vm1, %v2059_v8  ;;  %v4204_v8 = vld [vmem:[%s5523_s15 + $0x58] sm:$0xff]  }
 0x483   :  { %3951 = vmatprep.mubr.msk.bf16.mxu0 %vm864_vm1, %v5080_v60 }
 0x48a   :  { %3952 = vmatmul.mubr.msk.bf16.vlgmr.msra.gmra.mrb[44].mxu0 %vm864_vm1, %v5082_v56 }
 0x48b   :  { %3956 = vmatpush3.bf16.msra.mxu0 %v4199_v44 }
 0x48c   :  { %3957 = vmatprep.subr.bf16.mxu0 %v4200_v2 }
 0x48f   :  { %3958 = vmatpush3.bf16.msra.mxu0 %v4200_v2 }
 0x490   :  { %3959 = vmatprep.subr.bf16.mxu0 %v4202_v4 }
 0x493   :  { %3960 = vmatpush3.bf16.msra.mxu0 %v4202_v4 }
 0x494   :  { %3961 = vmatprep.subr.bf16.mxu0 %v4203_v10 }
 0x497   :  { %3962 = vmatpush3.bf16.msra.mxu0 %v4203_v10  ;;  %v3476_v10 = vld [vmem:[%s5524_s16 + $0x1] ss:$0 sm:$0xff] }
 0x498   :  { %3979 = vmatprep.subr.bf16.mxu0 %v4253_v17 }
 0x49a   :  { %v3068_v59 = vpop.xlane.xlu1 %3067 }
 0x49b   :  { %v3069_v61 = vmul.f32 0.015625, %v3068_v59 }
 0x49d   :  { %v3070_v62 = vadd.f32 1e-05, %v3069_v61 }
 0x49f   :  { %4221 = vrsqrt.f32 %v3070_v62 }
 0x4a9   :  { %v4222_v52 = vpop.eup %4221 }
 0x4aa   :  { %v3072_v41 = vmul.f32 %v4222_v52, %v5129_v54  ;;  %v4196_v54 = vld [vmem:[%s5525_s17 + $0x18] sm:$0xff]  }
 0x4ab   :  { %3925 = vmatprep.subr.bf16.mxu1 %v4196_v54 }
 0x4ac   :  { %v3080_v0 = vmul.f32 %v3559_v63, %v3072_v41  ;;  %3926 = vmatpush3.bf16.msra.mxu1 %v4196_v54 }
 0x4ad   :  { %3967 = vmatprep.subr.bf16.mxu1 %v4253_v17 }
 0x4ae   :  { %v5239_v60 = vadd.f32 %v3560_v32, %v3080_v0 }
 0x4b0   :  { %v3195_v56 = vmul.f32 %v5239_v60, %v5239_v60 }
 0x4b2   :  { %v3196_v1 = vsel %vm864_vm1, %v3195_v56, 0.0 }
 0x4b3   :  { %3197 = vadd.xlane.f32.xlu0 %v3196_v1 }
 0x53d   :  { %v3905_v6 = vpop.f32.mrb[28].mxu0 }
 0x53e   :  { %v2239_v12 = vadd.f32 %v3905_v6, %v5267_v11  ;;  %v2230_v33 = vpop.f32.mrb[29].mxu0 }
 0x53f   :  { %v2231_v14 = vadd.f32 %v5267_v11, %v2230_v33  ;;  %v3906_v43 = vpop.f32.mrb[30].mxu0 }
 0x540   :  { %v2242_v51 = vadd.f32 %v3906_v43, %v5267_v11  ;;  %v2233_v15 = vpop.f32.mrb[31].mxu0  ;;  %v2295_v40 = vmax.f32 %v2239_v12, 0.0 }
 0x541   :  { %v2234_v16 = vadd.f32 %v5267_v11, %v2233_v15  ;;  %v2293_v9 = vmax.f32 %v2231_v14, 0.0 }
 0x542   :  { %v2296_v57 = vmax.f32 %v2242_v51, 0.0 }
 0x543   :  { %v2294_v22 = vmax.f32 %v2234_v16, 0.0  ;;  %v3099_v16 = vrot.slane %v5239_v60, 4 }
 0x544   :  { %v2318_v50 = vpack.c.bf16 %v2296_v57, %v2295_v40 }
 0x545   :  { %v2317_v18 = vpack.c.bf16 %v2294_v22, %v2293_v9  ;;  %v3909_v21 = vpop.f32.mrb[32].mxu0 }
 0x546   :  { %v2255_v25 = vadd.f32 %v3909_v21, %v5267_v11  ;;  %v2246_v26 = vpop.f32.mrb[33].mxu0  ;;  %v3101_v21 = vsel %vm2116_vm4, %v3099_v16, 0.0 }
 0x547   :  { %v2247_v19 = vadd.f32 %v5267_v11, %v2246_v26  ;;  %v3910_v58 = vpop.f32.mrb[34].mxu0  ;;  %3927 = vmatprep.mubr.msk.bf16.mxu1 %vm864_vm1, %v2317_v18  ;;  %v4205_v26 = vld [vmem:[%s5523_s15 + $0x60] sm:$0xff]  }
 0x548   :  { %v2258_v36 = vadd.f32 %v3910_v58, %v5267_v11  ;;  %v2249_v42 = vpop.f32.mrb[35].mxu0  ;;  %3928 = vmatmul.mubr.msk.bf16.vlgmr.msra.gmra.mrb[28].mxu1 %vm864_vm1, %v2318_v50  ;;  %v2299_v31 = vmax.f32 %v2255_v25, 0.0  ;;  %v3102_v58 = vrot.slane %v3101_v21, 4 }
 0x549   :  { %v2250_v27 = vadd.f32 %v5267_v11, %v2249_v42  ;;  %3968 = vmatpush3.bf16.msra.mxu1 %v4197_v23  ;;  %v2297_v38 = vmax.f32 %v2247_v19, 0.0  ;;  %v3089_v19 = vsel %vm2116_vm4, %v5239_v60, 0.0  ;;  %v4206_v42 = vld [vmem:[%s5523_s15 + $0x68] sm:$0xff]  }
 0x54a   :  { %v2300_v34 = vmax.f32 %v2258_v36, 0.0  ;;  %3969 = vmatprep.subr.bf16.mxu1 %v4253_v17  ;;  %v3090_v36 = vrot.slane %v3089_v19, 4 }
 0x54b   :  { %v2298_v46 = vmax.f32 %v2250_v27, 0.0  ;;  %v3103_v27 = vadd.f32 %v3102_v58, %v3101_v21 }
 0x54c   :  { %v2320_v30 = vpack.c.bf16 %v2300_v34, %v2299_v31  ;;  %v4208_v34 = vld [vmem:[%s5523_s15 + $0x78] sm:$0xff]  }
 0x54d   :  { %v2319_v39 = vpack.c.bf16 %v2298_v46, %v2297_v38  ;;  %v3913_v45 = vpop.f32.mrb[36].mxu0  ;;  %3970 = vmatpush3.bf16.msra.mxu1 %v4198_v35  ;;  %v3091_v35 = vadd.f32 %v3090_v36, %v3089_v19  ;;  %v3104_v31 = vrot.slane %v3103_v27, 2  ;;  %v3508_v19 = vld [vmem:[%s5524_s16 + $0x2] ss:$0 sm:$0xff] }
 0x54e   :  { %v2271_v28 = vadd.f32 %v3913_v45, %v5267_v11  ;;  %v2262_v47 = vpop.f32.mrb[37].mxu0  ;;  %3971 = vmatprep.subr.bf16.mxu1 %v4253_v17 }
 0x54f   :  { %v2263_v29 = vadd.f32 %v5267_v11, %v2262_v47  ;;  %v3914_v24 = vpop.f32.mrb[38].mxu0  ;;  %3931 = vmatprep.mubr.msk.bf16.mxu1 %vm864_vm1, %v2319_v39  ;;  %v3092_v38 = vrot.slane %v3091_v35, 2  ;;  %v3105_v46 = vadd.f32 %v3104_v31, %v3103_v27 }
 0x550   :  { %v2274_v48 = vadd.f32 %v3914_v24, %v5267_v11  ;;  %v2265_v53 = vpop.f32.mrb[39].mxu0  ;;  %3932 = vmatmul.mubr.msk.bf16.gmra.mrb[32].mxu1 %vm864_vm1, %v2320_v30  ;;  %v2303_v5 = vmax.f32 %v2271_v28, 0.0  ;;  %v4209_v30 = vld [vmem:[%s5529_s21] sm:$0xff]  }
 0x551   :  { %v2266_v55 = vadd.f32 %v5267_v11, %v2265_v53  ;;  %3972 = vmatpush3.bf16.msra.mxu1 %v4201_v20  ;;  %v2301_v13 = vmax.f32 %v2263_v29, 0.0  ;;  %v3093_v39 = vadd.f32 %v3092_v38, %v3091_v35  ;;  %v3106_v45 = vrot.slane %v3105_v46, 1  ;;  %v4210_v20 = vld [vmem:[%s5529_s21 + $0x8] sm:$0xff]   ;;  %v4211_v29 = vld [vmem:[%s5529_s21 + $0x10] sm:$0xff]  }
 0x552   :  { %v2304_v37 = vmax.f32 %v2274_v48, 0.0  ;;  %3973 = vmatprep.subr.bf16.mxu1 %v4253_v17  ;;  %v4212_v48 = vld [vmem:[%s5529_s21 + $0x18] sm:$0xff]   ;;  %s4257_s21 = smov [#allocation2]  }
 0x553   :  { %v2302_v59 = vmax.f32 %v2266_v55, 0.0  ;;  %v3094_v28 = vrot.slane %v3093_v39, 1  ;;  %v3107_v47 = vadd.f32 %v3106_v45, %v3105_v46  ;;  %s3322_s7 = sshll.u32 %s4257_s21, 4  ;;  %s3323_s7 = int_to_ptr.vmem [resolvable:$true] %s3322_s7 }
 0x554   :  { %v2322_v61 = vpack.c.bf16 %v2304_v37, %v2303_v5  ;;  %v4213_v5 = vld [vmem:[%s5525_s17 + $0x40] sm:$0xff]   ;;  %v4214_v37 = vld [vmem:[%s5525_s17 + $0x48] sm:$0xff]   ;;  %s4225_s2 = scalar_lea.vmem %s3323_s7, 16  ;;  %s4229_s19 = scalar_lea.vmem %s3323_s7, 32 }
 0x555   :  { %v2321_v62 = vpack.c.bf16 %v2302_v59, %v2301_v13  ;;  %v3917_v52 = vpop.f32.mrb[40].mxu0  ;;  %3974 = vmatpush3.bf16.msra.mxu1 %v4204_v8  ;;  %v3095_v24 = vadd.f32 %v3094_v28, %v3093_v39  ;;  %v4215_v13 = vld [vmem:[%s5525_s17 + $0x50] sm:$0xff]   ;;  %v4216_v59 = vld [vmem:[%s5525_s17 + $0x58] sm:$0xff]   ;;  %v4217_v28 = vld [vmem:[%s5525_s17 + $0x60] sm:$0xff]   ;;  %p4226_p0 = scmp.ne.s32.totalorder %s3323_s7, %s4225_s2  ;;  %p4230_p1 = scmp.lt.s32.totalorder %s3323_s7, %s3323_s7 }
 0x556   :  { %v2287_v63 = vadd.f32 %v3917_v52, %v5267_v11  ;;  %v2278_v41 = vpop.f32.mrb[41].mxu0  ;;  %3991 = vmatprep.subr.bf16.mxu1 %v4253_v17  ;;  %p4231_p2 = scmp.lt.s32.totalorder %s4229_s19, %s4225_s2 }
 0x557   :  { %v2279_v32 = vadd.f32 %v5267_v11, %v2278_v41  ;;  %v3918_v0 = vpop.f32.mrb[42].mxu0  ;;  %3935 = vmatprep.mubr.msk.bf16.mxu1 %vm864_vm1, %v2321_v62  ;;  %v3097_v53 = vmul.f32 0.25, %v3095_v24  ;;  %v4218_v24 = vld [vmem:[%s5525_s17 + $0x68] sm:$0xff]  }
 0x558   :  { %v2290_v56 = vadd.f32 %v3918_v0, %v5267_v11  ;;  %v2281_v1 = vpop.f32.mrb[43].mxu0  ;;  %3936 = vmatmul.mubr.msk.bf16.gmra.mrb[36].mxu1 %vm864_vm1, %v2322_v61  ;;  %v2307_v54 = vmax.f32 %v2287_v63, 0.0  ;;  %v3450_v61 = vld [vmem:[%s5526_s18] ss:$0 sm:$0xff]  ;;  %p4232_p3 = por %p4231_p2, %p4230_p1 }
 0x559   :  { %v2282_v3 = vadd.f32 %v5267_v11, %v2281_v1  ;;  %v2305_v2 = vmax.f32 %v2279_v32, 0.0 }
 0x55a   :  { %v2308_v44 = vmax.f32 %v2290_v56, 0.0  ;;  %p4233_p4 = pnand %p4232_p3, %p4226_p0 }
 0x55b   :  { %v2306_v4 = vmax.f32 %v2282_v3, 0.0 }
 0x55c   :  { %v2324_v6 = vpack.c.bf16 %v2308_v44, %v2307_v54 }
 0x55d   :  { %v2323_v12 = vpack.c.bf16 %v2306_v4, %v2305_v2  ;;  %v3953_v33 = vpop.f32.mrb[44].mxu0 }
 0x55e   :  { %v2601_v14 = vadd.f32 %v3953_v33, %v3476_v10  ;;  %v2592_v43 = vpop.f32.mrb[45].mxu0 }
 0x55f   :  { %v2593_v51 = vadd.f32 %v3476_v10, %v2592_v43  ;;  %3939 = vmatprep.mubr.msk.bf16.mxu1 %vm864_vm1, %v2323_v12  ;;  %v3954_v15 = vpop.f32.mrb[46].mxu0 }
 0x560   :  { %v2604_v11 = vadd.f32 %v3954_v15, %v3476_v10  ;;  %3940 = vmatmul.mubr.msk.bf16.gmra.mrb[40].mxu1 %vm864_vm1, %v2324_v6  ;;  %v2595_v40 = vpop.f32.mrb[47].mxu0  ;;  %v2609_v9 = vmax.f32 %v2601_v14, 0.0 }
 0x561   :  { %v2596_v57 = vadd.f32 %v3476_v10, %v2595_v40  ;;  %3975 = vmatprep.mubr.msk.bf16.mxu1 %vm4255_vm2, %v4253_v17  ;;  %v2607_v50 = vmax.f32 %v2593_v51, 0.0 }
 0x562   :  { %v2610_v22 = vmax.f32 %v2604_v11, 0.0 }
 0x563   :  { %v2608_v18 = vmax.f32 %v2596_v57, 0.0 }
 0x564   :  { %v2621_v23 = vpack.c.bf16 %v2610_v22, %v2609_v9 }
 0x565   :  { %v2620_v25 = vpack.c.bf16 %v2608_v18, %v2607_v50 }
 0x567   :  { %3963 = vmatprep.mubr.msk.bf16.mxu0 %vm864_vm1, %v2620_v25 }
 0x568   :  { %3964 = vmatmul.mubr.msk.bf16.vlgmr.msra.gmra.mrb[48].mxu0 %vm864_vm1, %v2621_v23  ;;  %3976 = vmatmul.mubr.msk.bf16.vlgmr.msra.gmra.mrb[44].mxu1 %vm864_vm1, %v5058_v49  ;;  %v4207_v49 = vld [vmem:[%s5523_s15 + $0x70] sm:$0xff]  }
 0x569   :  { %3992 = vmatpush3.bf16.msra.mxu1 %v4205_v26  ;;  %3999 = vmatprep.mubr.msk.bf16.mxu1 %vm4255_vm2, %v4253_v17  ;;  %v3492_v26 = vld [vmem:[%s5526_s18 + $0x1] ss:$0 sm:$0xff] }
 0x56a   :  { %3993 = vmatprep.subr.bf16.mxu1 %v4253_v17  ;;  %3987 = vmatprep.mubr.msk.bf16.mxu0 %vm4255_vm2, %v4253_v17 }
 0x56b   :  { %3980 = vmatpush3.bf16.msra.mxu0 %v4213_v5 }
 0x56c   :  { %3981 = vmatprep.subr.bf16.mxu0 %v4253_v17 }
 0x56d   :  { %3994 = vmatpush3.bf16.msra.mxu1 %v4206_v42 }
 0x56e   :  { %3995 = vmatprep.subr.bf16.mxu1 %v4253_v17 }
 0x56f   :  { %3982 = vmatpush3.bf16.msra.mxu0 %v4214_v37 }
 0x570   :  { %3983 = vmatprep.subr.bf16.mxu0 %v4253_v17 }
 0x571   :  { %3996 = vmatpush3.bf16.msra.mxu1 %v4207_v49 }
 0x572   :  { %3997 = vmatprep.subr.bf16.mxu1 %v4253_v17 }
 0x573   :  { %3984 = vmatpush3.bf16.msra.mxu0 %v4215_v13 }
 0x574   :  { %3985 = vmatprep.subr.bf16.mxu0 %v4253_v17 }
 0x575   :  { %3998 = vmatpush3.bf16.msra.mxu1 %v4208_v34 }
 0x576   :  { %4015 = vmatprep.subr.bf16.mxu1 %v4253_v17 }
 0x577   :  { %3986 = vmatpush3.bf16.msra.mxu0 %v4216_v59 }
 0x578   :  { %4000 = vmatmul.mubr.msk.bf16.vlgmr.msra.gmra.mrb[48].mxu1 %vm864_vm1, %v5041_v7  ;;  %v3108_v7 = vmul.f32 0.25, %v3107_v47  ;;  %4003 = vmatprep.subr.bf16.mxu0 %v4253_v17 }
 0x579   :  { %4016 = vmatpush3.bf16.msra.mxu1 %v4209_v30  ;;  %4023 = vmatprep.mubr.msk.bf16.mxu1 %vm4255_vm2, %v4253_v17 }
 0x57a   :  { %4017 = vmatprep.subr.bf16.mxu1 %v4253_v17  ;;  %v3110_v55 = vsel %vm3109_vm5, %v3097_v53, %v3108_v7  ;;  %v3538_v53 = vld [vmem:[%s5524_s16 + $0x3] ss:$0 sm:$0xff] }
 0x57b   :  { %v3119_v8 = vpack.c.bf16 %v3110_v55, %v3110_v55 }
 0x57d   :  { %4018 = vmatpush3.bf16.msra.mxu1 %v4210_v20 }
 0x57e   :  { %4019 = vmatprep.subr.bf16.mxu1 %v4253_v17 }
 0x581   :  { %4020 = vmatpush3.bf16.msra.mxu1 %v4211_v29  ;;  %v3198_v29 = vpop.xlane.xlu0 %3197 }
 0x582   :  { %4021 = vmatprep.subr.bf16.mxu1 %v4253_v17  ;;  %v3199_v7 = vadd.f32 1e-24, %v3198_v29 }
 0x584   :  { %4223 = vrsqrt.f32 %v3199_v7 }
 0x585   :  { %4022 = vmatpush3.bf16.msra.mxu1 %v4212_v48  ;;  %v4219_v48 = vld [vmem:[%s5525_s17 + $0x70] sm:$0xff]  }
 0x588   :  { %4024 = vmatmul.mubr.msk.bf16.vlgmr.msra.gmra.mrb[52].mxu1 %vm864_vm1, %v3119_v8  ;;  %v4220_v8 = vld [vmem:[%s5525_s17 + $0x78] sm:$0xff]  }
 0x61b   :  { %v3929_v62 = vpop.f32.mrb[28].mxu1 }
 0x61c   :  { %v2423_v52 = vadd.f32 %v3929_v62, %v3450_v61  ;;  %v2414_v63 = vpop.f32.mrb[29].mxu1 }
 0x61d   :  { %v2415_v41 = vadd.f32 %v3450_v61, %v2414_v63  ;;  %v3930_v32 = vpop.f32.mrb[30].mxu1 }
 0x61e   :  { %2479 = vst [vmem:[%s5532_s24 + $0x10] sm:$0xff] %v2423_v52  ;;  %v2426_v0 = vadd.f32 %v3930_v32, %v3450_v61  ;;  %v2417_v56 = vpop.f32.mrb[31].mxu1  ;;  %v4224_v52 = vpop.eup %4223 }
 0x61f   :  { %2477 = vst [vmem:[%s5532_s24] sm:$0xff] %v2415_v41  ;;  %v2418_v1 = vadd.f32 %v3450_v61, %v2417_v56  ;;  %v3201_v63 = vmul.f32 %v4224_v52, %v5239_v60  ;;  %v3561_v41 = vld [vmem:[%s5530_s22] ss:$0 sm:$0xff] }
 0x620   :  { %2480 = vst [vmem:[%s5532_s24 + $0x18] sm:$0xff] %v2426_v0 }
 0x621   :  { %2478 = vst [vmem:[%s5532_s24 + $0x8] sm:$0xff] %v2418_v1 }
 0x623   :  { %v3933_v3 = vpop.f32.mrb[32].mxu1 }
 0x624   :  { %v2439_v54 = vadd.f32 %v3933_v3, %v3450_v61  ;;  %v2430_v44 = vpop.f32.mrb[33].mxu1 }
 0x625   :  { %v2431_v2 = vadd.f32 %v3450_v61, %v2430_v44  ;;  %v3934_v4 = vpop.f32.mrb[34].mxu1 }
 0x626   :  { %2483 = vst [vmem:[%s5532_s24 + $0x30] sm:$0xff] %v2439_v54  ;;  %v2442_v10 = vadd.f32 %v3934_v4, %v3450_v61  ;;  %v2433_v6 = vpop.f32.mrb[35].mxu1 }
 0x627   :  { %2481 = vst [vmem:[%s5532_s24 + $0x20] sm:$0xff] %v2431_v2  ;;  %v2434_v12 = vadd.f32 %v3450_v61, %v2433_v6 }
 0x628   :  { %2484 = vst [vmem:[%s5532_s24 + $0x38] sm:$0xff] %v2442_v10  ;;  %v3553_v10 = vld [vmem:[%s5526_s18 + $0x3] ss:$0 sm:$0xff] }
 0x629   :  { %2482 = vst [vmem:[%s5532_s24 + $0x28] sm:$0xff] %v2434_v12 }
 0x62b   :  { %v3937_v33 = vpop.f32.mrb[36].mxu1 }
 0x62c   :  { %v2455_v14 = vadd.f32 %v3937_v33, %v3450_v61  ;;  %v2446_v43 = vpop.f32.mrb[37].mxu1 }
 0x62d   :  { %v2447_v51 = vadd.f32 %v3450_v61, %v2446_v43  ;;  %v3938_v15 = vpop.f32.mrb[38].mxu1 }
 0x62e   :  { %2487 = vst [vmem:[%s5532_s24 + $0x50] sm:$0xff] %v2455_v14  ;;  %v2458_v16 = vadd.f32 %v3938_v15, %v3450_v61  ;;  %v2449_v11 = vpop.f32.mrb[39].mxu1 }
 0x62f   :  { %2485 = vst [vmem:[%s5532_s24 + $0x40] sm:$0xff] %v2447_v51  ;;  %v2450_v40 = vadd.f32 %v3450_v61, %v2449_v11  ;;  %v3275_v51 = vld [vmem:[%s5566_s28] sm:$0xff] }
 0x630   :  { %2488 = vst [vmem:[%s5532_s24 + $0x58] sm:$0xff] %v2458_v16 }
 0x631   :  { %2486 = vst [vmem:[%s5532_s24 + $0x48] sm:$0xff] %v2450_v40 }
 0x633   :  { %v3941_v57 = vpop.f32.mrb[40].mxu1 }
 0x634   :  { %v2471_v9 = vadd.f32 %v3941_v57, %v3450_v61  ;;  %v2462_v22 = vpop.f32.mrb[41].mxu1  ;;  %v3291_v57 = vsub.f32 1.0, %v3275_v51 }
 0x635   :  { %v2463_v50 = vadd.f32 %v3450_v61, %v2462_v22  ;;  %v3942_v18 = vpop.f32.mrb[42].mxu1 }
 0x636   :  { %2491 = vst [vmem:[%s5532_s24 + $0x70] sm:$0xff] %v2471_v9  ;;  %v2474_v21 = vadd.f32 %v3942_v18, %v3450_v61  ;;  %v2465_v23 = vpop.f32.mrb[43].mxu1 }
 0x637   :  { %2489 = vst [vmem:[%s5532_s24 + $0x60] sm:$0xff] %v2463_v50  ;;  %v2466_v25 = vadd.f32 %v3450_v61, %v2465_v23 }
 0x638   :  { %2492 = vst [vmem:[%s5532_s24 + $0x78] sm:$0xff] %v2474_v21 }
 0x639   :  { %2490 = vst [vmem:[%s5532_s24 + $0x68] sm:$0xff] %v2466_v25 }
 0x63b   :  { %v3965_v58 = vpop.f32.mrb[48].mxu0  ;;  %v2793_v36 = vpop.f32.mrb[44].mxu1 }
 0x63c   :  { %v2703_v42 = vadd.f32 %v3965_v58, %v3492_v26  ;;  %v2794_v27 = vadd.f32 %v3508_v19, %v2793_v36  ;;  %v2694_v35 = vpop.f32.mrb[49].mxu0  ;;  %v3977_v49 = vpop.f32.mrb[45].mxu1 }
 0x63d   :  { %v2695_v31 = vadd.f32 %v3492_v26, %v2694_v35  ;;  %v3966_v34 = vpop.f32.mrb[50].mxu0  ;;  %v2796_v38 = vpop.f32.mrb[46].mxu1 }
 0x63e   :  { %2711 = vst [vmem:[%s5532_s24 + $0x90] sm:$0xff] %v2703_v42  ;;  %v2799_v46 = vmax.f32 %v2794_v27, 0.0  ;;  %v2706_v30 = vadd.f32 %v3966_v34, %v3492_v26  ;;  %v2697_v39 = vpop.f32.mrb[51].mxu0  ;;  %v3978_v45 = vpop.f32.mrb[47].mxu1 }
 0x63f   :  { %2709 = vst [vmem:[%s5532_s24 + $0x80] sm:$0xff] %v2695_v31  ;;  %v2698_v20 = vadd.f32 %v3492_v26, %v2697_v39 }
 0x640   :  { %v2809_v47 = vpack.c.bf16 %v2799_v46, %v2799_v46  ;;  %2712 = vst [vmem:[%s5532_s24 + $0x98] sm:$0xff] %v2706_v30 }
 0x641   :  { %2710 = vst [vmem:[%s5532_s24 + $0x88] sm:$0xff] %v2698_v20 }
 0x642   :  { %3988 = vmatmul.mubr.msk.bf16.vlgmr.msra.gmra.mrb[52].mxu0 %vm864_vm1, %v2809_v47 }
 0x643   :  { %4004 = vmatpush3.bf16.msra.mxu0 %v4217_v28  ;;  %4011 = vmatprep.mubr.msk.bf16.mxu0 %vm4255_vm2, %v4253_v17 }
 0x644   :  { %4005 = vmatprep.subr.bf16.mxu0 %v4253_v17 }
 0x647   :  { %4006 = vmatpush3.bf16.msra.mxu0 %v4218_v24 }
 0x648   :  { %4007 = vmatprep.subr.bf16.mxu0 %v4253_v17 }
 0x64b   :  { %v2966_v55 = vpop.f32.mrb[48].mxu1  ;;  %4008 = vmatpush3.bf16.msra.mxu0 %v4219_v48 }
 0x64c   :  { %v2967_v5 = vadd.f32 %v3538_v53, %v2966_v55  ;;  %v4001_v37 = vpop.f32.mrb[49].mxu1  ;;  %4009 = vmatprep.subr.bf16.mxu0 %v4253_v17 }
 0x64d   :  { %v2969_v13 = vpop.f32.mrb[50].mxu1 }
 0x64e   :  { %v2972_v59 = vmax.f32 %v2967_v5, 0.0  ;;  %v4002_v61 = vpop.f32.mrb[51].mxu1 }
 0x64f   :  { %4010 = vmatpush3.bf16.msra.mxu0 %v4220_v8 }
 0x650   :  { %v2982_v62 = vpack.c.bf16 %v2972_v59, %v2972_v59  ;;  %4027 = vmatprep.subr.mxu0 %v4253_v17 }
 0x652   :  { %4012 = vmatmul.mubr.msk.bf16.vlgmr.msra.gmra.mrb[56].mxu0 %vm864_vm1, %v2982_v62 }
 0x653   :  { %4029 = vmatprep.mubr.msk.f32.mxu0 %vm4255_vm2, %v4253_v17  ;;  %v3523_v17 = vld [vmem:[%s5526_s18 + $0x2] ss:$0 sm:$0xff] }
 0x658   :  { %4028 = vmatpush3.xpose.msk.msra.mxu0 %vm864_vm1, %v3201_v63 }
 0x65b   :  { %v3188_v32 = vpop.f32.mrb[52].mxu1  ;;  %4030 = vmatmul.mubr.msk.f32.vlgmr.msra.gmra.mrb[60].mxu0 %vm864_vm1, %v3201_v63 }
 0x65c   :  { %v3189_v0 = vadd.f32 %v3561_v41, %v3188_v32  ;;  %v4025_v56 = vpop.f32.mrb[53].mxu1 }
 0x65d   :  { %v3191_v1 = vpop.f32.mrb[54].mxu1 }
 0x65e   :  { %3194 = vst [vmem:[%s5533_s25] sm:$0x3] %v3189_v0  ;;  %v4026_v3 = vpop.f32.mrb[55].mxu1 }
 0x715   :  { %v2879_v60 = vpop.f32.mrb[52].mxu0 }
 0x716   :  { %v2880_v54 = vadd.f32 %v3523_v17, %v2879_v60  ;;  %v3989_v44 = vpop.f32.mrb[53].mxu0 }
 0x717   :  { %v2882_v2 = vpop.f32.mrb[54].mxu0 }
 0x718   :  { %2885 = vst [vmem:[%s5532_s24 + $0xa0] sm:$0xff] %v2880_v54  ;;  %v3990_v4 = vpop.f32.mrb[55].mxu0 }
 0x725   :  { %v3052_v6 = vpop.f32.mrb[56].mxu0 }
 0x726   :  { %v3053_v12 = vadd.f32 %v3553_v10, %v3052_v6  ;;  %v4013_v33 = vpop.f32.mrb[57].mxu0 }
 0x727   :  { %v3055_v14 = vpop.f32.mrb[58].mxu0 }
 0x728   :  { %3058 = vst [vmem:[%s5532_s24 + $0xa8] sm:$0xff] %v3053_v12  ;;  %v4014_v43 = vpop.f32.mrb[59].mxu0 }
 0x72e   :  { %v3271_v15 = vpop.f32.mrb[60].mxu0 }
 0x72f   :  { %v3276_v16 = vsub.f32 1.0, %v3271_v15  ;;  %v3569_v11 = vadd.f32 -0.4, %v3271_v15  ;;  %v4031_v40 = vpop.f32.mrb[61].mxu0 }
 0x731   :  { %v3290_v9 = vmax.f32 %v3569_v11, 0.0  ;;  %v3277_v22 = vmul.f32 %v3276_v16, %v3275_v51 }
 0x733   :  { %v3279_v50 = vsel %vm3278_vm6, %v3277_v22, 0.0  ;;  %v3292_v18 = vmul.f32 %v3291_v57, %v3290_v9 }
 0x734   :  { %3280 = vadd.xlane.f32.xlu0 %v3279_v50 }
 0x735   :  { %v3293_v21 = vsel %vm3278_vm6, %v3292_v18, 0.0 }
 0x736   :  { %3294 = vadd.xlane.f32.xlu1 %v3293_v21 }
 0x7c1   :  { %v3281_v23 = vpop.xlane.xlu0 %3280 }
 0x7c2   :  { %v3282_v25 = vrot.slane %v3281_v23, 4 }
 0x7c3   :  { %v3295_v26 = vpop.xlane.xlu1 %3294 }
 0x7c4   :  { %v3283_v19 = vadd.f32 %v3282_v25, %v3281_v23  ;;  %v3296_v58 = vrot.slane %v3295_v26, 4 }
 0x7c6   :  { %v3284_v36 = vrot.slane %v3283_v19, 2  ;;  %v3297_v42 = vadd.f32 %v3296_v58, %v3295_v26 }
 0x7c8   :  { %v3298_v27 = vrot.slane %v3297_v42, 2  ;;  %v3285_v35 = vadd.f32 %v3284_v36, %v3283_v19 }
 0x7ca   :  { %v3299_v49 = vadd.f32 %v3298_v27, %v3297_v42  ;;  %v3286_v31 = vrot.slane %v3285_v35, 1 }
 0x7cc   :  { %v3287_v34 = vadd.f32 %v3286_v31, %v3285_v35  ;;  %v3300_v38 = vrot.slane %v3299_v49, 1 }
 0x7ce   :  { %4080 = vpush %v3287_v34  ;;  %v3301_v46 = vadd.f32 %v3300_v38, %v3299_v49 }
 0x7d0   :  { %4082 = vpush %v3301_v46 }
 0x7ff   :  { %s4081_s18 = spop %4080 }
 0x801   :  { %s4083_s24 = spop %4082 }
 0x802   :  { %s3303_s23 = sadd.f32 %s4083_s24, %s4081_s18 }
 0x804   :  { %s3306_s9 = smul.f32 0.015625, %s3303_s23 }
 0x806   :  { %v3307_v30 = vstv %s3306_s9 }
 0x807   :  { %3309 = vst.msk [vmem:[#allocation2] sm:$0x1] %vm3308_vm7, %v3307_v30 }
 0x808   :  { %4236 = shalt.err (!%p4233_p4)
}
 0x809   :  { %s4237_s1 = scalar_lea.hbm %s5534_s26, 16 }
 0x80a   :  { %p4238_p5 = scmp.ne.s32.totalorder %s5534_s26, %s4237_s1  ;;  %p4241_p6 = scmp.lt.u32.totalorder %s4237_s1, %s5534_s26 }
 0x80c   :  { %p4243_p7 = pnand %p4241_p6, %p4238_p5 }
 0x80e   :  { %4246 = shalt.err (!%p4243_p7)
}
 0x80f   :  { %3325 = dma.vmem_to_hbm [thread:$0]  %s3323_s7, 16, %s5534_s26, [#allocation3]  }
 0x810   :  { %4247 = dma.done.wait [#allocation3], 16  }
 0x811   :  { %4248 = vsyncadd [#allocation3], 4294967280 }
 0x812   :  { %3335 = vsyncpa [#allocation3], 1 }

// kernel: forward.3
= control target key start
LH: loop header
LB: loop body
LE: loop exit
PB: predicated region body
PF: predicated region fallthrough
CT: control target
= control target key end

     0   :  { %v4285_v0 = vmov 0.0   ;;  %vm4286_vm0 = vmmov 0   ;;  %v4287_v2 = vmov 0   ;;  %vm88_vm1 = vcmask 1045504   ;;  %s4291_s24 = smov 48   ;;  %s4292_s25 = smov 112   ;;  %s5072_s0 = inlined_call_operand.vmem [shape: bf16[2,44,64], index: 0, kind: input, shape index: {}]   ;;  %s5073_s2 = inlined_call_operand.vmem [shape: f32[7,1], index: 2, kind: input, shape index: {}]   ;;  %s5074_s1 = inlined_call_operand.vmem [shape: bf16[7,44], index: 1, kind: input, shape index: {}]   ;;  %s5075_s5 = inlined_call_operand.vmem [shape: bf16[64,192], index: 5, kind: input, shape index: {}]   ;;  %s5076_s3 = inlined_call_operand.vmem [shape: f32[1,64], index: 3, kind: input, shape index: {}]   ;;  %s5077_s4 = inlined_call_operand.vmem [shape: f32[1,64], index: 4, kind: input, shape index: {}]   ;;  %s5078_s6 = inlined_call_operand.vmem [shape: bf16[64,64], index: 6, kind: input, shape index: {}]   ;;  %s5079_s7 = inlined_call_operand.vmem [shape: f32[1,64], index: 7, kind: input, shape index: {}]   ;;  %s5080_s10 = inlined_call_operand.vmem [shape: bf16[64,256], index: 10, kind: input, shape index: {}]   ;;  %s5081_s8 = inlined_call_operand.vmem [shape: f32[1,64], index: 8, kind: input, shape index: {}]   ;;  %s5082_s9 = inlined_call_operand.vmem [shape: f32[1,64], index: 9, kind: input, shape index: {}]   ;;  %s5083_s12 = inlined_call_operand.vmem [shape: bf16[256,64], index: 12, kind: input, shape index: {}]   ;;  %s5084_s11 = inlined_call_operand.vmem [shape: f32[1,256], index: 11, kind: input, shape index: {}]   ;;  %s5085_s14 = inlined_call_operand.vmem [shape: bf16[64,128], index: 14, kind: input, shape index: {}]   ;;  %s5086_s13 = inlined_call_operand.vmem [shape: f32[1,64], index: 13, kind: input, shape index: {}]   ;;  %s5087_s15 = inlined_call_operand.vmem [shape: f32[1,128], index: 15, kind: input, shape index: {}]   ;;  %s5088_s16 = inlined_call_operand.vmem [shape: f32[2,128], index: 16, kind: output, shape index: {}]  }
   0x1   :  { %5090 = sst [smem:[#allocation2_spill]] %s5072_s0  ;;  %3898 = vmatprep.subr.bf16.mxu1 %v4285_v0  ;;  %3904 = vmatprep.mubr.msk.bf16.mxu1 %vm4286_vm0, %v4285_v0  ;;  %v61_v5 = vld [vmem:[%s5073_s2] sm:$0x7f]  ;;  %vm84_vm2 = vcmask 359424   ;;  %vm210_vm3 = vcmask 521216   ;;  %vm202_vm4 = vcmask 1046528  }
   0x2   :  { %s5091_s23 = sld [smem:[#allocation2_spill]]  ;;  %4120 = vset.pattern.permute.xlu0 %v4287_v2  ;;  %335 = vmatprep.mubr.bf16.mxu0 %v4287_v2  ;;  %v54_v7 = vld [vmem:[%s5074_s1] sm:$0xf]  ;;  %vm206_vm5 = vcmask 523264   ;;  %v4157_v37 = vld [vmem:[%s5075_s5 + $0x4] ss:$8 sps:$4 sm:$0xff]  }
   0x3   :  { %64 = vperm.xlu0 %4120, %v61_v5   ;;  %v4159_v38 = vld [vmem:[%s5075_s5] ss:$8 sps:$4 sm:$0xff]   ;;  %303 = vmatprep.subr.bf16.mxu0 %v4157_v37  ;;  %v4160_v39 = vld [vmem:[%s5075_s5 + $0x14] ss:$8 sps:$4 sm:$0xff]   ;;  %v4162_v40 = vld [vmem:[%s5075_s5 + $0x10] ss:$8 sps:$4 sm:$0xff]  }
   0x4   :  { %304 = vmatpush1.bf16.msra.mxu0 %v4159_v38  ;;  %v4163_v41 = vld [vmem:[%s5075_s5 + $0x24] ss:$8 sps:$4 sm:$0xff]   ;;  %v4165_v42 = vld [vmem:[%s5075_s5 + $0x20] ss:$8 sps:$4 sm:$0xff]   ;;  %v4166_v43 = vld [vmem:[%s5075_s5 + $0x34] ss:$8 sps:$4 sm:$0xff]  }
   0x5   :  { %305 = vmatprep.subr.bf16.mxu0 %v4160_v39  ;;  %v4168_v44 = vld [vmem:[%s5075_s5 + $0x30] ss:$8 sps:$4 sm:$0xff]   ;;  %v3679_v53 = vld [vmem:[%s5076_s3] ss:$0 sm:$0xff]  ;;  %s4289_s3 = smov 64   ;;  %vm1720_vm6 = vcmask 1040384  }
   0x6   :  { %v3680_v57 = vld [vmem:[%s5077_s4] ss:$0 sm:$0xff]  ;;  %s4290_s4 = smov 120   ;;  %vm351_vm7 = vcmask 64512   ;;  %vm427_vm8 = vcmask 55296   ;;  %s4293_s26 = smov 24  }
   0x7   :  { %s4294_s27 = smov 16   ;;  %s4295_s28 = smov 8   ;;  %vm439_vm9 = vcmask 56320   ;;  %vm1707_vm10 = vcmask 130048   ;;  %vm1709_vm11 = vcmask 195584   ;;  %vm1711_vm12 = vcmask 261120  }
   0x8   :  { %v4151_v1 = vld [vmem:[%s5091_s23] sm:$0xff]   ;;  %v4152_v3 = vld [vmem:[%s5091_s23 + $0x8] sm:$0xff]   ;;  %v4153_v4 = vld [vmem:[%s5091_s23 + $0x10] sm:$0x3f]   ;;  %306 = vmatpush1.bf16.msra.mxu0 %v4162_v40  ;;  %s4296_s29 = smov 104   ;;  %s4297_s30 = smov 96  }
   0x9   :  { %3899 = vmatpush3.bf16.msra.mxu1 %v4151_v1  ;;  %v90_v6 = vsel %vm88_vm1, %v4153_v4, 0  ;;  %v4154_v8 = vld [vmem:[%s5091_s23 + $0x18] sm:$0xff]   ;;  %v4155_v9 = vld [vmem:[%s5091_s23 + $0x20] sm:$0xff]   ;;  %v4156_v10 = vld [vmem:[%s5091_s23 + $0x28] sm:$0x3f]   ;;  %307 = vmatprep.subr.bf16.mxu0 %v4163_v41  ;;  %s4288_s23 = smov 56  }
   0xa   :  { %3900 = vmatprep.subr.bf16.mxu1 %v4285_v0  ;;  %v157_v11 = vsel %vm88_vm1, %v4156_v10, 0  ;;  %s4298_s0 = smov 88   ;;  %s4299_s17 = smov 80   ;;  %vm1713_vm13 = vcmask 326656   ;;  %vm1715_vm14 = vcmask 392192   ;;  %vm1717_vm15 = vcmask 457728  }
   0xb   :  { %s4300_s18 = smov 72   ;;  %s4301_s2 = smov 40  }
   0xc   :  { %308 = vmatpush1.bf16.msra.mxu0 %v4165_v42  ;;  %s4302_s19 = smov 32  }
   0xd   :  { %3901 = vmatpush3.bf16.msra.mxu1 %v4152_v3  ;;  %309 = vmatprep.subr.bf16.mxu0 %v4166_v43 }
   0xe   :  { %3902 = vmatprep.subr.bf16.mxu1 %v4285_v0 }
  0x10   :  { %310 = vmatpush1.bf16.msra.mxu0 %v4168_v44 }
  0x11   :  { %3903 = vmatpush3.bf16.msra.mxu1 %v90_v6  ;;  %3918 = vmatprep.subr.mxu0 %v4285_v0 }
  0x12   :  { %3908 = vmatprep.subr.bf16.mxu1 %v4285_v0 }
  0x14   :  { %3905 = vmatmul.mubr.msk.bf16.vlgmr.msra.gmra.mrb[0].mxu1 %vm84_vm2, %v54_v7 }
  0x15   :  { %3909 = vmatpush3.bf16.msra.mxu1 %v4154_v8  ;;  %3914 = vmatprep.mubr.msk.bf16.mxu1 %vm4286_vm0, %v4285_v0 }
  0x16   :  { %3910 = vmatprep.subr.bf16.mxu1 %v4285_v0 }
  0x19   :  { %3911 = vmatpush3.bf16.msra.mxu1 %v4155_v9 }
  0x1a   :  { %3912 = vmatprep.subr.bf16.mxu1 %v4285_v0 }
  0x1d   :  { %3913 = vmatpush3.bf16.msra.mxu1 %v157_v11 }
  0x1e   :  { %3923 = vmatprep.subr.mxu1 %v4285_v0 }
  0x20   :  { %3915 = vmatmul.mubr.msk.bf16.vlgmr.msra.gmra.mrb[4].mxu1 %vm84_vm2, %v54_v7 }
  0x21   :  { %3925 = vmatprep.mubr.msk.f32.mxu1 %vm4286_vm0, %v4285_v0 }
  0x82   :  { %v65_v16 = vpop.permute.xlu0 %64 }
  0xe7   :  { %v126_v12 = vpop.f32.mrb[0].mxu1 }
  0xe8   :  { %v3906_v13 = vpop.f32.mrb[1].mxu1  ;;  %v127_v21 = vadd.f32 %v126_v12, %v65_v16 }
  0xe9   :  { %v129_v14 = vpop.f32.mrb[2].mxu1 }
  0xea   :  { %v3907_v15 = vpop.f32.mrb[3].mxu1 }
  0xf3   :  { %v193_v17 = vpop.f32.mrb[4].mxu1 }
  0xf4   :  { %v194_v18 = vadd.f32 %v193_v17, %v65_v16  ;;  %v3916_v19 = vpop.f32.mrb[5].mxu1 }
  0xf5   :  { %v196_v20 = vpop.f32.mrb[6].mxu1 }
  0xf6   :  { %v4429_v22 = vrot.slane %v194_v18, 1  ;;  %v3917_v23 = vpop.f32.mrb[7].mxu1 }
  0xf8   :  { %v211_v24 = vsel %vm210_vm3, %v4429_v22, 0.0  ;;  %v4435_v25 = vsel %vm202_vm4, %v127_v21, %v4429_v22 }
  0xf9   :  { %212 = vadd.xlane.f32.xlu1 %v211_v24  ;;  %v207_v26 = vsel %vm206_vm5, %v4435_v25, 0.0 }
  0xfa   :  { %208 = vadd.xlane.f32.xlu0 %v207_v26 }
 0x186   :  { %v213_v27 = vpop.xlane.xlu1 %212 }
 0x187   :  { %v216_v28 = vmul.f32 0.015625, %v213_v27  ;;  %v209_v29 = vpop.xlane.xlu0 %208 }
 0x188   :  { %v215_v30 = vmul.f32 0.015625, %v209_v29 }
 0x189   :  { %v218_v31 = vsub.f32 %v4429_v22, %v216_v28 }
 0x18a   :  { %v217_v32 = vsub.f32 %v4435_v25, %v215_v30 }
 0x18b   :  { %v220_v35 = vmul.f32 %v218_v31, %v218_v31 }
 0x18c   :  { %v219_v33 = vmul.f32 %v217_v32, %v217_v32 }
 0x18d   :  { %v224_v36 = vsel %vm210_vm3, %v220_v35, 0.0 }
 0x18e   :  { %v221_v34 = vsel %vm206_vm5, %v219_v33, 0.0 }
 0x18f   :  { %222 = vadd.xlane.f32.xlu1 %v221_v34 }
 0x193   :  { %225 = vadd.xlane.f32.xlu1 %v224_v36 }
 0x21c   :  { %v223_v45 = vpop.xlane.xlu1 %222 }
 0x21d   :  { %v227_v46 = vmul.f32 0.015625, %v223_v45 }
 0x21f   :  { %v229_v47 = vadd.f32 1e-05, %v227_v46 }
 0x220   :  { %v226_v48 = vpop.xlane.xlu1 %225 }
 0x221   :  { %4205 = vrsqrt.f32 %v229_v47  ;;  %v228_v49 = vmul.f32 0.015625, %v226_v48 }
 0x223   :  { %v230_v50 = vadd.f32 1e-05, %v228_v49 }
 0x225   :  { %4207 = vrsqrt.f32 %v230_v50 }
 0x22b   :  { %v4206_v51 = vpop.eup %4205 }
 0x22c   :  { %v233_v52 = vmul.f32 %v4206_v51, %v217_v32 }
 0x22e   :  { %v241_v56 = vmul.f32 %v3679_v53, %v233_v52 }
 0x22f   :  { %v4208_v54 = vpop.eup %4207 }
 0x230   :  { %v234_v55 = vmul.f32 %v4208_v54, %v218_v31  ;;  %v249_v59 = vadd.f32 %v3680_v57, %v241_v56 }
 0x232   :  { %v242_v58 = vmul.f32 %v3679_v53, %v234_v55 }
 0x234   :  { %v250_v60 = vadd.f32 %v3680_v57, %v242_v58 }
 0x236   :  { %v259_v61 = vpack.c.bf16 %v250_v60, %v249_v59 }
 0x238   :  { %3689 = vmatmul.mubr.msk.bf16.vlgmr.msra.gmra.mrb[0].mxu0 %vm206_vm5, %v259_v61 }
 0x239   :  { %3920 = vmatprep.mubr.msk.f32.mxu0 %vm4286_vm0, %v4285_v0 }
 0x30b   :  { %v4477_v62 = vpop.f32.mrb[0].mxu0 }
 0x30c   :  { %518 = vrot.lane.b32.xlu0 %v4477_v62, %s4288_s23  ;;  %349 = vrot.lane.b32.xlu1 %v4477_v62, %s4289_s3  ;;  %v4483_v63 = vpop.f32.mrb[1].mxu0  ;;  %v4488_v3 = vmul.f32 0.35355338, %v4477_v62  ;;  %v1725_v4 = vrot.slane %v4477_v62, 7 }
 0x30d   :  { %v341_v1 = vpop.f32.mrb[2].mxu0  ;;  %3924 = vmatpush3.msk.msra.mxu1 %vm202_vm4, %v4483_v63  ;;  %v1816_v7 = vrot.slane %v4483_v63, 7 }
 0x30e   :  { %v1726_v5 = vrot.slane %v341_v1, 7  ;;  %v343_v6 = vpop.f32.mrb[3].mxu0  ;;  %3928 = vmatprep.subr.mxu1 %v4285_v0  ;;  %v347_v18 = vmul.f32 0.35355338, %v341_v1  ;;  %v1721_v20 = vrot.slane %v4488_v3, 7 }
 0x30f   :  { %v1817_v8 = vrot.slane %v343_v6, 7 }
 0x310   :  { %v4494_v9 = vsel %vm1720_vm6, %v1725_v4, %v1726_v5  ;;  %516 = vrot.lane.b32.xlu0 %v4488_v3, %s4290_s4  ;;  %v1722_v19 = vrot.slane %v347_v18, 7 }
 0x311   :  { %v4499_v10 = vsel %vm1720_vm6, %v1816_v7, %v1817_v8 }
 0x312   :  { %v4528_v21 = vsel %vm1720_vm6, %v1721_v20, %v1722_v19 }
 0x314   :  { %684 = vrot.lane.b32.xlu0 %v4477_v62, %s4291_s24 }
 0x37e   :  { %v4503_v11 = vpop.permute.xlu0 %518  ;;  %v350_v12 = vpop.permute.xlu1 %349 }
 0x37f   :  { %3919 = vmatpush3.xpose.msk.msra.mxu0 %vm351_vm7, %v350_v12 }
 0x380   :  { %3938 = vmatprep.subr.mxu0 %v4285_v0 }
 0x382   :  { %v4507_v13 = vpop.permute.xlu0 %516  ;;  %3921 = vmatmul.mubr.msk.f32.vlgmr.msra.gmra.mrb[4].mxu0 %vm351_vm7, %v4488_v3 }
 0x383   :  { %3940 = vmatprep.mubr.msk.f32.mxu0 %vm4286_vm0, %v4285_v0 }
 0x386   :  { %v685_v14 = vpop.permute.xlu0 %684 }
 0x387   :  { %3939 = vmatpush3.xpose.msk.msra.mxu0 %vm351_vm7, %v685_v14 }
 0x388   :  { %3948 = vmatprep.subr.mxu0 %v4285_v0 }
 0x455   :  { %v423_v15 = vpop.f32.mrb[4].mxu0 }
 0x456   :  { %v3922_v16 = vpop.f32.mrb[5].mxu0  ;;  %v428_v17 = vsel %vm427_vm8, %v423_v15, -inf }
 0x457   :  { %429 = vmax.xlane.f32.xlu1 %v428_v17 }
 0x468   :  { %682 = vrot.lane.b32.xlu1 %v4488_v3, %s4292_s25 }
 0x46c   :  { %1182 = vrot.lane.b32.xlu1 %v4477_v62, %s4293_s26 }
 0x470   :  { %1348 = vrot.lane.b32.xlu1 %v4477_v62, %s4294_s27 }
 0x474   :  { %1514 = vrot.lane.b32.xlu1 %v4477_v62, %s4295_s28 }
 0x478   :  { %1728 = vrot.lane.b32.xlu1 %v4494_v9, %s4289_s3 }
 0x47c   :  { %1894 = vrot.lane.b32.xlu1 %v4528_v21, %s4290_s4 }
 0x480   :  { %2060 = vrot.lane.b32.xlu1 %v4528_v21, %s4292_s25 }
 0x484   :  { %2226 = vrot.lane.b32.xlu1 %v4528_v21, %s4296_s29 }
 0x488   :  { %2392 = vrot.lane.b32.xlu1 %v4528_v21, %s4297_s30 }
 0x48c   :  { %2558 = vrot.lane.b32.xlu1 %v4528_v21, %s4298_s0 }
 0x490   :  { %2724 = vrot.lane.b32.xlu1 %v4528_v21, %s4299_s17 }
 0x494   :  { %2890 = vrot.lane.b32.xlu1 %v4528_v21, %s4300_s18 }
 0x4e4   :  { %v430_v23 = vpop.xlane.xlu1 %429 }
 0x4e5   :  { %v431_v24 = vsub.f32 %v423_v15, %v430_v23 }
 0x4e7   :  { %v432_v26 = vmul.f32 1.442695, %v431_v24 }
 0x4e8   :  { %v683_v27 = vpop.permute.xlu1 %682 }
 0x4e9   :  { %4209 = vpow2.f32 %v432_v26  ;;  %3941 = vmatmul.mubr.msk.f32.vlgmr.msra.gmra.mrb[6].mxu0 %vm351_vm7, %v683_v27 }
 0x4ea   :  { %3950 = vmatprep.mubr.msk.f32.mxu0 %vm4286_vm0, %v4285_v0 }
 0x4ec   :  { %v1183_v30 = vpop.permute.xlu1 %1182 }
 0x4f0   :  { %v1349_v33 = vpop.permute.xlu1 %1348 }
 0x4f3   :  { %v4210_v28 = vpop.eup %4209 }
 0x4f4   :  { %v434_v29 = vsel %vm427_vm8, %v4210_v28, 0.0  ;;  %v1515_v36 = vpop.permute.xlu1 %1514 }
 0x4f5   :  { %435 = vadd.xlane.f32.xlu0 %v434_v29 }
 0x4f8   :  { %v1729_v40 = vpop.permute.xlu1 %1728 }
 0x4fc   :  { %v1895_v42 = vpop.permute.xlu1 %1894 }
 0x500   :  { %v2061_v45 = vpop.permute.xlu1 %2060 }
 0x504   :  { %v2227_v47 = vpop.permute.xlu1 %2226 }
 0x508   :  { %v2393_v50 = vpop.permute.xlu1 %2392 }
 0x50b   :  { %850 = vrot.lane.b32.xlu0 %v4477_v62, %s4301_s2 }
 0x50c   :  { %v2559_v52 = vpop.permute.xlu1 %2558 }
 0x50f   :  { %848 = vrot.lane.b32.xlu0 %v4488_v3, %s4296_s29 }
 0x510   :  { %v2725_v55 = vpop.permute.xlu1 %2724 }
 0x513   :  { %1016 = vrot.lane.b32.xlu0 %v4477_v62, %s4302_s19 }
 0x514   :  { %v2891_v60 = vpop.permute.xlu1 %2890 }
 0x517   :  { %1014 = vrot.lane.b32.xlu0 %v4488_v3, %s4297_s30 }
 0x51b   :  { %1180 = vrot.lane.b32.xlu0 %v4488_v3, %s4298_s0 }
 0x51f   :  { %1346 = vrot.lane.b32.xlu0 %v4488_v3, %s4299_s17 }
 0x523   :  { %1512 = vrot.lane.b32.xlu0 %v4488_v3, %s4300_s18 }
 0x527   :  { %1896 = vrot.lane.b32.xlu0 %v4494_v9, %s4288_s23 }
 0x52b   :  { %2062 = vrot.lane.b32.xlu0 %v4494_v9, %s4291_s24 }
 0x52f   :  { %2228 = vrot.lane.b32.xlu0 %v4494_v9, %s4301_s2 }
 0x533   :  { %2394 = vrot.lane.b32.xlu0 %v4494_v9, %s4302_s19 }
 0x537   :  { %2560 = vrot.lane.b32.xlu0 %v4494_v9, %s4293_s26 }
 0x53b   :  { %2726 = vrot.lane.b32.xlu0 %v4494_v9, %s4294_s27 }
 0x53f   :  { %2892 = vrot.lane.b32.xlu0 %v4494_v9, %s4295_s28 }
 0x582   :  { %v436_v31 = vpop.xlane.xlu0 %435 }
 0x583   :  { %4211 = vrcp.f32 %v436_v31 }
 0x586   :  { %v851_v32 = vpop.permute.xlu0 %850 }
 0x587   :  { %3949 = vmatpush3.xpose.msk.msra.mxu0 %vm351_vm7, %v851_v32 }
 0x588   :  { %3958 = vmatprep.subr.mxu0 %v4285_v0 }
 0x58a   :  { %v849_v34 = vpop.permute.xlu0 %848 }
 0x58b   :  { %3951 = vmatmul.mubr.msk.f32.vlgmr.msra.gmra.mrb[8].mxu0 %vm351_vm7, %v849_v34 }
 0x58c   :  { %3960 = vmatprep.mubr.msk.f32.mxu0 %vm4286_vm0, %v4285_v0 }
 0x58d   :  { %v4212_v35 = vpop.eup %4211 }
 0x58e   :  { %v438_v37 = vmul.f32 %v4212_v35, %v4210_v28  ;;  %v1017_v38 = vpop.permute.xlu0 %1016 }
 0x58f   :  { %3959 = vmatpush3.xpose.msk.msra.mxu0 %vm351_vm7, %v1017_v38 }
 0x590   :  { %3926 = vmatmul.mubr.msk.f32.vlgmr.msra.gmra.mrb[8].mxu1 %vm439_vm9, %v438_v37  ;;  %3968 = vmatprep.subr.mxu0 %v4285_v0 }
 0x591   :  { %3929 = vmatpush3.xpose.msk.msra.mxu1 %vm351_vm7, %v4503_v11  ;;  %3930 = vmatprep.mubr.msk.f32.mxu1 %vm4286_vm0, %v4285_v0 }
 0x592   :  { %v1015_v39 = vpop.permute.xlu0 %1014  ;;  %3933 = vmatprep.subr.mxu1 %v4285_v0 }
 0x593   :  { %3961 = vmatmul.mubr.msk.f32.vlgmr.msra.gmra.mrb[10].mxu0 %vm351_vm7, %v1015_v39 }
 0x594   :  { %3969 = vmatpush3.xpose.msk.msra.mxu0 %vm351_vm7, %v1183_v30  ;;  %3931 = vmatmul.mubr.msk.f32.vlgmr.msra.gmra.mrb[10].mxu1 %vm351_vm7, %v4507_v13 }
 0x595   :  { %3970 = vmatprep.mubr.msk.f32.mxu0 %vm4286_vm0, %v4285_v0  ;;  %3978 = vmatprep.subr.mxu0 %v4285_v0 }
 0x596   :  { %v1181_v41 = vpop.permute.xlu0 %1180  ;;  %3935 = vmatprep.mubr.msk.f32.mxu1 %vm4286_vm0, %v4285_v0 }
 0x597   :  { %3971 = vmatmul.mubr.msk.f32.vlgmr.msra.gmra.mrb[12].mxu0 %vm351_vm7, %v1181_v41 }
 0x598   :  { %3979 = vmatpush3.xpose.msk.msra.mxu0 %vm351_vm7, %v1349_v33  ;;  %3980 = vmatprep.mubr.msk.f32.mxu0 %vm4286_vm0, %v4285_v0 }
 0x599   :  { %3988 = vmatprep.subr.mxu0 %v4285_v0 }
 0x59a   :  { %v1347_v43 = vpop.permute.xlu0 %1346 }
 0x59b   :  { %3981 = vmatmul.mubr.msk.f32.vlgmr.msra.gmra.mrb[14].mxu0 %vm351_vm7, %v1347_v43 }
 0x59c   :  { %3989 = vmatpush3.xpose.msk.msra.mxu0 %vm351_vm7, %v1515_v36  ;;  %3990 = vmatprep.mubr.msk.f32.mxu0 %vm4286_vm0, %v4285_v0 }
 0x59d   :  { %3998 = vmatprep.subr.mxu0 %v4285_v0 }
 0x59e   :  { %v1513_v44 = vpop.permute.xlu0 %1512 }
 0x59f   :  { %3991 = vmatmul.mubr.msk.f32.vlgmr.msra.gmra.mrb[16].mxu0 %vm351_vm7, %v1513_v44 }
 0x5a0   :  { %3999 = vmatpush3.xpose.msk.msra.mxu0 %vm351_vm7, %v1729_v40  ;;  %4000 = vmatprep.mubr.msk.f32.mxu0 %vm4286_vm0, %v4285_v0 }
 0x5a1   :  { %4008 = vmatprep.subr.mxu0 %v4285_v0 }
 0x5a2   :  { %v1897_v46 = vpop.permute.xlu0 %1896 }
 0x5a3   :  { %4001 = vmatmul.mubr.msk.f32.vlgmr.msra.gmra.mrb[18].mxu0 %vm351_vm7, %v4528_v21 }
 0x5a4   :  { %4009 = vmatpush3.xpose.msk.msra.mxu0 %vm351_vm7, %v1897_v46  ;;  %4010 = vmatprep.mubr.msk.f32.mxu0 %vm4286_vm0, %v4285_v0 }
 0x5a5   :  { %4018 = vmatprep.subr.mxu0 %v4285_v0 }
 0x5a6   :  { %v2063_v48 = vpop.permute.xlu0 %2062 }
 0x5a7   :  { %4011 = vmatmul.mubr.msk.f32.vlgmr.msra.gmra.mrb[20].mxu0 %vm351_vm7, %v1895_v42 }
 0x5a8   :  { %4019 = vmatpush3.xpose.msk.msra.mxu0 %vm351_vm7, %v2063_v48  ;;  %4020 = vmatprep.mubr.msk.f32.mxu0 %vm4286_vm0, %v4285_v0 }
 0x5a9   :  { %4028 = vmatprep.subr.mxu0 %v4285_v0 }
 0x5aa   :  { %v2229_v49 = vpop.permute.xlu0 %2228 }
 0x5ab   :  { %4021 = vmatmul.mubr.msk.f32.vlgmr.msra.gmra.mrb[22].mxu0 %vm351_vm7, %v2061_v45 }
 0x5ac   :  { %4029 = vmatpush3.xpose.msk.msra.mxu0 %vm351_vm7, %v2229_v49  ;;  %4030 = vmatprep.mubr.msk.f32.mxu0 %vm4286_vm0, %v4285_v0 }
 0x5ad   :  { %4038 = vmatprep.subr.mxu0 %v4285_v0 }
 0x5ae   :  { %v2395_v51 = vpop.permute.xlu0 %2394 }
 0x5af   :  { %4031 = vmatmul.mubr.msk.f32.vlgmr.msra.gmra.mrb[24].mxu0 %vm351_vm7, %v2227_v47 }
 0x5b0   :  { %4039 = vmatpush3.xpose.msk.msra.mxu0 %vm351_vm7, %v2395_v51  ;;  %4040 = vmatprep.mubr.msk.f32.mxu0 %vm4286_vm0, %v4285_v0 }
 0x5b1   :  { %4048 = vmatprep.subr.mxu0 %v4285_v0 }
 0x5b2   :  { %v2561_v53 = vpop.permute.xlu0 %2560 }
 0x5b3   :  { %4041 = vmatmul.mubr.msk.f32.vlgmr.msra.gmra.mrb[26].mxu0 %vm351_vm7, %v2393_v50 }
 0x5b4   :  { %4049 = vmatpush3.xpose.msk.msra.mxu0 %vm351_vm7, %v2561_v53  ;;  %4050 = vmatprep.mubr.msk.f32.mxu0 %vm4286_vm0, %v4285_v0 }
 0x5b5   :  { %4058 = vmatprep.subr.mxu0 %v4285_v0 }
 0x5b6   :  { %v2727_v54 = vpop.permute.xlu0 %2726 }
 0x5b7   :  { %4051 = vmatmul.mubr.msk.f32.vlgmr.msra.gmra.mrb[28].mxu0 %vm351_vm7, %v2559_v52 }
 0x5b8   :  { %4059 = vmatpush3.xpose.msk.msra.mxu0 %vm351_vm7, %v2727_v54  ;;  %4060 = vmatprep.mubr.msk.f32.mxu0 %vm4286_vm0, %v4285_v0 }
 0x5b9   :  { %4068 = vmatprep.subr.mxu0 %v4285_v0 }
 0x5ba   :  { %v2893_v56 = vpop.permute.xlu0 %2892 }
 0x5bb   :  { %4061 = vmatmul.mubr.msk.f32.vlgmr.msra.gmra.mrb[30].mxu0 %vm351_vm7, %v2725_v55 }
 0x5bc   :  { %4069 = vmatpush3.xpose.msk.msra.mxu0 %vm351_vm7, %v2893_v56  ;;  %v4646_v57 = vpop.f32.mrb[6].mxu0  ;;  %4070 = vmatprep.mubr.msk.f32.mxu0 %vm4286_vm0, %v4285_v0 }
 0x5bd   :  { %v3942_v58 = vpop.f32.mrb[7].mxu0  ;;  %v760_v59 = vsel %vm427_vm8, %v4646_v57, -inf  ;;  %4078 = vmatprep.subr.bf16.mxu0 %v4285_v0 }
 0x5be   :  { %761 = vmax.xlane.f32.xlu1 %v760_v59 }
 0x5bf   :  { %4071 = vmatmul.mubr.msk.f32.vlgmr.msra.gmra.mrb[32].mxu0 %vm351_vm7, %v2891_v60 }
 0x5c0   :  { %4086 = vmatprep.mubr.msk.bf16.mxu0 %vm4286_vm0, %v4285_v0 }
 0x64b   :  { %v762_v46 = vpop.xlane.xlu1 %761 }
 0x64c   :  { %v763_v47 = vsub.f32 %v4646_v57, %v762_v46 }
 0x64e   :  { %v764_v48 = vmul.f32 1.442695, %v763_v47 }
 0x650   :  { %4213 = vpow2.f32 %v764_v48 }
 0x65a   :  { %v4719_v49 = vpop.eup %4213 }
 0x65b   :  { %v766_v50 = vsel %vm427_vm8, %v4719_v49, 0.0 }
 0x65e   :  { %v4656_v61 = vpop.f32.mrb[8].mxu0 }
 0x65f   :  { %v3952_v62 = vpop.f32.mrb[9].mxu0  ;;  %v926_v1 = vsel %vm427_vm8, %v4656_v61, -inf }
 0x660   :  { %927 = vmax.xlane.f32.xlu0 %v926_v1 }
 0x663   :  { %v4660_v3 = vpop.f32.mrb[8].mxu1 }
 0x664   :  { %v3927_v4 = vpop.f32.mrb[9].mxu1 }
 0x666   :  { %v4662_v5 = vpop.f32.mrb[10].mxu0 }
 0x667   :  { %v4664_v6 = vpop.f32.mrb[10].mxu1  ;;  %v3962_v7 = vpop.f32.mrb[11].mxu0  ;;  %v1092_v8 = vsel %vm427_vm8, %v4662_v5, -inf }
 0x668   :  { %1093 = vmax.xlane.f32.xlu0 %v1092_v8  ;;  %v3932_v9 = vpop.f32.mrb[11].mxu1 }
 0x66a   :  { %v4668_v11 = vpop.f32.mrb[12].mxu0 }
 0x66b   :  { %v3972_v12 = vpop.f32.mrb[13].mxu0  ;;  %v1258_v13 = vsel %vm427_vm8, %v4668_v11, -inf }
 0x66c   :  { %1259 = vmax.xlane.f32.xlu1 %v1258_v13 }
 0x66e   :  { %v4672_v14 = vpop.f32.mrb[14].mxu0 }
 0x66f   :  { %v3982_v15 = vpop.f32.mrb[15].mxu0  ;;  %v1424_v16 = vsel %vm427_vm8, %v4672_v14, -inf }
 0x670   :  { %1425 = vmax.xlane.f32.xlu0 %v1424_v16 }
 0x672   :  { %v4676_v17 = vpop.f32.mrb[16].mxu0 }
 0x673   :  { %v3992_v18 = vpop.f32.mrb[17].mxu0  ;;  %v1590_v19 = vsel %vm427_vm8, %v4676_v17, -inf }
 0x674   :  { %1591 = vmax.xlane.f32.xlu1 %v1590_v19 }
 0x676   :  { %v4680_v20 = vpop.f32.mrb[18].mxu0 }
 0x677   :  { %v4002_v21 = vpop.f32.mrb[19].mxu0  ;;  %v1804_v23 = vsel %vm427_vm8, %v4680_v20, -inf }
 0x678   :  { %1805 = vmax.xlane.f32.xlu0 %v1804_v23 }
 0x67a   :  { %v4684_v24 = vpop.f32.mrb[20].mxu0 }
 0x67b   :  { %v4012_v26 = vpop.f32.mrb[21].mxu0  ;;  %v1972_v27 = vsel %vm427_vm8, %v4684_v24, -inf }
 0x67c   :  { %1973 = vmax.xlane.f32.xlu1 %v1972_v27 }
 0x67e   :  { %v4688_v28 = vpop.f32.mrb[22].mxu0 }
 0x67f   :  { %v4022_v29 = vpop.f32.mrb[23].mxu0  ;;  %v2138_v30 = vsel %vm427_vm8, %v4688_v28, -inf }
 0x680   :  { %2139 = vmax.xlane.f32.xlu0 %v2138_v30 }
 0x682   :  { %v4692_v31 = vpop.f32.mrb[24].mxu0 }
 0x683   :  { %v4032_v32 = vpop.f32.mrb[25].mxu0  ;;  %v2304_v33 = vsel %vm427_vm8, %v4692_v31, -inf }
 0x684   :  { %2305 = vmax.xlane.f32.xlu1 %v2304_v33 }
 0x686   :  { %v4696_v34 = vpop.f32.mrb[26].mxu0 }
 0x687   :  { %v4042_v35 = vpop.f32.mrb[27].mxu0  ;;  %v2470_v36 = vsel %vm427_vm8, %v4696_v34, -inf }
 0x688   :  { %2471 = vmax.xlane.f32.xlu0 %v2470_v36 }
 0x68a   :  { %v4700_v37 = vpop.f32.mrb[28].mxu0 }
 0x68b   :  { %v4052_v38 = vpop.f32.mrb[29].mxu0  ;;  %v2636_v39 = vsel %vm427_vm8, %v4700_v37, -inf }
 0x68c   :  { %2637 = vmax.xlane.f32.xlu1 %v2636_v39 }
 0x68e   :  { %v4704_v40 = vpop.f32.mrb[30].mxu0 }
 0x68f   :  { %v4062_v41 = vpop.f32.mrb[31].mxu0  ;;  %v2802_v42 = vsel %vm427_vm8, %v4704_v40, -inf }
 0x690   :  { %2803 = vmax.xlane.f32.xlu0 %v2802_v42  ;;  %v594_v41 = vsel %vm427_vm8, %v4664_v6, -inf }
 0x692   :  { %v4708_v43 = vpop.f32.mrb[32].mxu0 }
 0x693   :  { %v4072_v44 = vpop.f32.mrb[33].mxu0  ;;  %v2968_v45 = vsel %vm427_vm8, %v4708_v43, -inf }
 0x694   :  { %2969 = vmax.xlane.f32.xlu1 %v2968_v45 }
 0x6a5   :  { %605 = vrot.lane.b32.xlu1 %v4483_v63, %s4290_s4 }
 0x6a6   :  { %771 = vrot.lane.b32.xlu0 %v4483_v63, %s4292_s25 }
 0x6aa   :  { %937 = vrot.lane.b32.xlu0 %v4483_v63, %s4296_s29 }
 0x6c9   :  { %767 = vadd.xlane.f32.xlu1 %v766_v50 }
 0x6ed   :  { %v928_v51 = vpop.xlane.xlu0 %927 }
 0x6ee   :  { %v929_v52 = vsub.f32 %v4656_v61, %v928_v51 }
 0x6f0   :  { %v930_v53 = vmul.f32 1.442695, %v929_v52 }
 0x6f2   :  { %4215 = vpow2.f32 %v930_v53 }
 0x6f5   :  { %v1094_v54 = vpop.xlane.xlu0 %1093 }
 0x6f6   :  { %v1095_v55 = vsub.f32 %v4662_v5, %v1094_v54 }
 0x6f8   :  { %v1096_v56 = vmul.f32 1.442695, %v1095_v55 }
 0x6f9   :  { %v1260_v58 = vpop.xlane.xlu1 %1259 }
 0x6fa   :  { %4217 = vpow2.f32 %v1096_v56  ;;  %v1261_v57 = vsub.f32 %v4668_v11, %v1260_v58 }
 0x6fc   :  { %v4726_v59 = vpop.eup %4215  ;;  %v1262_v60 = vmul.f32 1.442695, %v1261_v57 }
 0x6fd   :  { %v1426_v62 = vpop.xlane.xlu0 %1425  ;;  %v932_v1 = vsel %vm427_vm8, %v4726_v59, 0.0 }
 0x6fe   :  { %4219 = vpow2.f32 %v1262_v60  ;;  %v1427_v61 = vsub.f32 %v4672_v14, %v1426_v62  ;;  %933 = vadd.xlane.f32.xlu0 %v932_v1 }
 0x700   :  { %v1428_v4 = vmul.f32 1.442695, %v1427_v61 }
 0x701   :  { %v1592_v7 = vpop.xlane.xlu1 %1591 }
 0x702   :  { %4221 = vpow2.f32 %v1428_v4  ;;  %v1593_v5 = vsub.f32 %v4676_v17, %v1592_v7 }
 0x704   :  { %v4732_v8 = vpop.eup %4217  ;;  %v1594_v9 = vmul.f32 1.442695, %v1593_v5 }
 0x705   :  { %v1806_v11 = vpop.xlane.xlu0 %1805  ;;  %v1098_v12 = vsel %vm427_vm8, %v4732_v8, 0.0 }
 0x706   :  { %4223 = vpow2.f32 %v1594_v9  ;;  %v1807_v13 = vsub.f32 %v4680_v20, %v1806_v11  ;;  %1099 = vadd.xlane.f32.xlu1 %v1098_v12 }
 0x708   :  { %v4737_v15 = vpop.eup %4219  ;;  %v1808_v14 = vmul.f32 1.442695, %v1807_v13 }
 0x709   :  { %v1974_v16 = vpop.xlane.xlu1 %1973  ;;  %v1264_v18 = vsel %vm427_vm8, %v4737_v15, 0.0 }
 0x70a   :  { %4225 = vpow2.f32 %v1808_v14  ;;  %v1975_v17 = vsub.f32 %v4684_v24, %v1974_v16  ;;  %1265 = vadd.xlane.f32.xlu0 %v1264_v18 }
 0x70c   :  { %v4742_v19 = vpop.eup %4221  ;;  %v1976_v21 = vmul.f32 1.442695, %v1975_v17 }
 0x70d   :  { %v2140_v23 = vpop.xlane.xlu0 %2139  ;;  %v1430_v26 = vsel %vm427_vm8, %v4742_v19, 0.0 }
 0x70e   :  { %4227 = vpow2.f32 %v1976_v21  ;;  %v2141_v20 = vsub.f32 %v4688_v28, %v2140_v23  ;;  %1431 = vadd.xlane.f32.xlu1 %v1430_v26 }
 0x710   :  { %v4747_v27 = vpop.eup %4223  ;;  %v2142_v29 = vmul.f32 1.442695, %v2141_v20 }
 0x711   :  { %v2306_v30 = vpop.xlane.xlu1 %2305  ;;  %v1596_v32 = vsel %vm427_vm8, %v4747_v27, 0.0 }
 0x712   :  { %4229 = vpow2.f32 %v2142_v29  ;;  %v2307_v24 = vsub.f32 %v4692_v31, %v2306_v30  ;;  %1597 = vadd.xlane.f32.xlu0 %v1596_v32 }
 0x714   :  { %v4752_v33 = vpop.eup %4225  ;;  %v2308_v35 = vmul.f32 1.442695, %v2307_v24 }
 0x715   :  { %v1810_v36 = vsel %vm427_vm8, %v4752_v33, 0.0 }
 0x716   :  { %4231 = vpow2.f32 %v2308_v35  ;;  %1811 = vadd.xlane.f32.xlu0 %v1810_v36 }
 0x718   :  { %v4756_v28 = vpop.eup %4227 }
 0x719   :  { %v2638_v38 = vpop.xlane.xlu1 %2637  ;;  %v1978_v39 = vsel %vm427_vm8, %v4756_v28, 0.0 }
 0x71a   :  { %v2639_v31 = vsub.f32 %v4700_v37, %v2638_v38  ;;  %1979 = vadd.xlane.f32.xlu1 %v1978_v39  ;;  %595 = vmax.xlane.f32.xlu0 %v594_v41  ;;  %v2472_v37 = vpop.xlane.xlu0 %2471 }
 0x71b   :  { %v2473_v51 = vsub.f32 %v4696_v34, %v2472_v37 }
 0x71c   :  { %v4763_v42 = vpop.eup %4229  ;;  %v2640_v12 = vmul.f32 1.442695, %v2639_v31 }
 0x71d   :  { %v2144_v44 = vsel %vm427_vm8, %v4763_v42, 0.0  ;;  %v2474_v52 = vmul.f32 1.442695, %v2473_v51 }
 0x71e   :  { %2145 = vadd.xlane.f32.xlu0 %v2144_v44  ;;  %v2804_v54 = vpop.xlane.xlu0 %2803 }
 0x71f   :  { %4233 = vpow2.f32 %v2474_v52  ;;  %v2805_v55 = vsub.f32 %v4704_v40, %v2804_v54 }
 0x720   :  { %v4767_v45 = vpop.eup %4231 }
 0x721   :  { %v2970_v46 = vpop.xlane.xlu1 %2969  ;;  %v2310_v47 = vsel %vm427_vm8, %v4767_v45, 0.0  ;;  %v2806_v56 = vmul.f32 1.442695, %v2805_v55 }
 0x722   :  { %v2971_v48 = vsub.f32 %v4708_v43, %v2970_v46  ;;  %2311 = vadd.xlane.f32.xlu0 %v2310_v47  ;;  %v772_v57 = vpop.permute.xlu0 %771 }
 0x723   :  { %4235 = vpow2.f32 %v2806_v56 }
 0x724   :  { %v2972_v13 = vmul.f32 1.442695, %v2971_v48 }
 0x725   :  { %v606_v50 = vpop.permute.xlu1 %605 }
 0x726   :  { %3934 = vmatpush3.msk.msra.mxu1 %vm202_vm4, %v606_v50  ;;  %v938_v60 = vpop.permute.xlu0 %937 }
 0x727   :  { %3943 = vmatprep.subr.mxu1 %v4285_v0 }
 0x729   :  { %v4779_v53 = vpop.eup %4233 }
 0x72a   :  { %v2476_v43 = vsel %vm427_vm8, %v4779_v53, 0.0 }
 0x72b   :  { %1103 = vrot.lane.b32.xlu1 %v4483_v63, %s4297_s30 }
 0x72d   :  { %v4786_v58 = vpop.eup %4235 }
 0x72e   :  { %v2808_v34 = vsel %vm427_vm8, %v4786_v58, 0.0 }
 0x738   :  { %1269 = vrot.lane.b32.xlu0 %v4483_v63, %s4298_s0 }
 0x74f   :  { %2477 = vadd.xlane.f32.xlu1 %v2476_v43 }
 0x756   :  { %v768_v23 = vpop.xlane.xlu1 %767 }
 0x760   :  { %1601 = vrot.lane.b32.xlu1 %v4483_v63, %s4300_s18 }
 0x784   :  { %2809 = vadd.xlane.f32.xlu1 %v2808_v34 }
 0x78b   :  { %v934_v62 = vpop.xlane.xlu0 %933 }
 0x793   :  { %v1100_v20 = vpop.xlane.xlu1 %1099 }
 0x795   :  { %2647 = vrot.lane.b32.xlu1 %v4499_v10, %s4298_s0 }
 0x797   :  { %v1266_v1 = vpop.xlane.xlu0 %1265 }
 0x79b   :  { %v1432_v30 = vpop.xlane.xlu1 %1431 }
 0x79f   :  { %v1598_v61 = vpop.xlane.xlu0 %1597 }
 0x7a3   :  { %v4792_v4 = vpop.xlane.xlu0 %1811 }
 0x7a7   :  { %v596_v7 = vpop.xlane.xlu0 %595  ;;  %v1980_v36 = vpop.xlane.xlu1 %1979 }
 0x7a8   :  { %v597_v40 = vsub.f32 %v4664_v6, %v596_v7 }
 0x7aa   :  { %v598_v5 = vmul.f32 1.442695, %v597_v40 }
 0x7ab   :  { %v1104_v31 = vpop.permute.xlu1 %1103 }
 0x7ac   :  { %4237 = vpow2.f32 %v598_v5 }
 0x7ad   :  { %4239 = vpow2.f32 %v2640_v12 }
 0x7ae   :  { %4241 = vpow2.f32 %v2972_v13 }
 0x7b6   :  { %v4238_v9 = vpop.eup %4237 }
 0x7b7   :  { %v600_v11 = vsel %vm427_vm8, %v4238_v9, 0.0  ;;  %v4798_v14 = vpop.eup %4239 }
 0x7b8   :  { %601 = vadd.xlane.f32.xlu0 %v600_v11  ;;  %v2642_v16 = vsel %vm427_vm8, %v4798_v14, 0.0  ;;  %v4802_v18 = vpop.eup %4241 }
 0x7b9   :  { %v2974_v6 = vsel %vm427_vm8, %v4802_v18, 0.0 }
 0x7ce   :  { %1435 = vrot.lane.b32.xlu0 %v4483_v63, %s4299_s17  ;;  %v4818_v63 = vpop.xlane.xlu0 %2145 }
 0x7d2   :  { %v4820_v17 = vpop.xlane.xlu0 %2311 }
 0x7d6   :  { %v1270_v21 = vpop.permute.xlu0 %1269 }
 0x7dc   :  { %v2478_v46 = vpop.xlane.xlu1 %2477 }
 0x7e0   :  { %v1602_v37 = vpop.permute.xlu1 %1601 }
 0x7ed   :  { %2643 = vadd.xlane.f32.xlu0 %v2642_v16 }
 0x7f1   :  { %2975 = vadd.xlane.f32.xlu0 %v2974_v6 }
 0x807   :  { %1983 = vrot.lane.b32.xlu0 %v4499_v10, %s4290_s4 }
 0x80b   :  { %2149 = vrot.lane.b32.xlu0 %v4499_v10, %s4292_s25 }
 0x80f   :  { %2315 = vrot.lane.b32.xlu0 %v4499_v10, %s4296_s29 }
 0x811   :  { %v2810_v56 = vpop.xlane.xlu1 %2809 }
 0x813   :  { %2481 = vrot.lane.b32.xlu0 %v4499_v10, %s4297_s30 }
 0x817   :  { %2813 = vrot.lane.b32.xlu0 %v4499_v10, %s4299_s17 }
 0x81b   :  { %2979 = vrot.lane.b32.xlu0 %v4499_v10, %s4300_s18 }
 0x845   :  { %v602_v26 = vpop.xlane.xlu0 %601 }
 0x846   :  { %4243 = vrcp.f32 %v602_v26 }
 0x847   :  { %4245 = vrcp.f32 %v768_v23 }
 0x848   :  { %4247 = vrcp.f32 %v934_v62 }
 0x849   :  { %4249 = vrcp.f32 %v1100_v20  ;;  %v1436_v48 = vpop.permute.xlu0 %1435 }
 0x84a   :  { %4251 = vrcp.f32 %v1266_v1 }
 0x84b   :  { %4253 = vrcp.f32 %v1432_v30 }
 0x84c   :  { %4255 = vrcp.f32 %v1598_v61 }
 0x84d   :  { %4257 = vrcp.f32 %v4792_v4  ;;  %v2648_v4 = vpop.permute.xlu1 %2647 }
 0x84e   :  { %4259 = vrcp.f32 %v1980_v36 }
 0x84f   :  { %4261 = vrcp.f32 %v4818_v63 }
 0x850   :  { %v4244_v29 = vpop.eup %4243  ;;  %4263 = vrcp.f32 %v4820_v17 }
 0x851   :  { %v604_v32 = vmul.f32 %v4244_v29, %v4238_v9  ;;  %v4246_v24 = vpop.eup %4245  ;;  %4265 = vrcp.f32 %v2478_v46  ;;  %v4171_v46 = vld [vmem:[%s5078_s6 + $0x10] sm:$0xff]  }
 0x852   :  { %v770_v35 = vmul.f32 %v4246_v24, %v4719_v49  ;;  %v4248_v38 = vpop.eup %4247 }
 0x853   :  { %3936 = vmatmul.mubr.msk.f32.vlgmr.msra.gmra.mrb[12].mxu1 %vm439_vm9, %v604_v32  ;;  %v936_v39 = vmul.f32 %v4248_v38, %v4726_v59  ;;  %v4250_v41 = vpop.eup %4249 }
 0x854   :  { %3944 = vmatpush3.msk.msra.mxu1 %vm202_vm4, %v772_v57  ;;  %3945 = vmatprep.mubr.msk.f32.mxu1 %vm4286_vm0, %v4285_v0  ;;  %v1102_v49 = vmul.f32 %v4250_v41, %v4732_v8  ;;  %v4252_v44 = vpop.eup %4251 }
 0x855   :  { %3953 = vmatprep.subr.mxu1 %v4285_v0  ;;  %v1268_v59 = vmul.f32 %v4252_v44, %v4737_v15  ;;  %v4254_v47 = vpop.eup %4253 }
 0x856   :  { %v1434_v8 = vmul.f32 %v4254_v47, %v4742_v19  ;;  %v4256_v50 = vpop.eup %4255 }
 0x857   :  { %3946 = vmatmul.mubr.msk.f32.vlgmr.msra.gmra.mrb[14].mxu1 %vm439_vm9, %v770_v35  ;;  %v1600_v15 = vmul.f32 %v4256_v50, %v4747_v27  ;;  %v4258_v51 = vpop.eup %4257  ;;  %v4172_v50 = vld [vmem:[%s5078_s6 + $0x18] sm:$0xff]  }
 0x858   :  { %3954 = vmatpush3.msk.msra.mxu1 %vm202_vm4, %v938_v60  ;;  %3955 = vmatprep.mubr.msk.f32.mxu1 %vm4286_vm0, %v4285_v0  ;;  %v1814_v19 = vmul.f32 %v4258_v51, %v4752_v33 }
 0x859   :  { %3963 = vmatprep.subr.mxu1 %v4285_v0 }
 0x85b   :  { %3956 = vmatmul.mubr.msk.f32.vlgmr.msra.gmra.mrb[16].mxu1 %vm439_vm9, %v936_v39 }
 0x85c   :  { %3964 = vmatpush3.msk.msra.mxu1 %vm202_vm4, %v1104_v31  ;;  %3965 = vmatprep.mubr.msk.f32.mxu1 %vm4286_vm0, %v4285_v0  ;;  %v4170_v31 = vld [vmem:[%s5078_s6 + $0x8] sm:$0xff]  }
 0x85d   :  { %3973 = vmatprep.subr.mxu1 %v4285_v0 }
 0x85f   :  { %3966 = vmatmul.mubr.msk.f32.vlgmr.msra.gmra.mrb[18].mxu1 %vm439_vm9, %v1102_v49 }
 0x860   :  { %3974 = vmatpush3.msk.msra.mxu1 %vm202_vm4, %v1270_v21  ;;  %3975 = vmatprep.mubr.msk.f32.mxu1 %vm4286_vm0, %v4285_v0 }
 0x861   :  { %3983 = vmatprep.subr.mxu1 %v4285_v0 }
 0x863   :  { %3976 = vmatmul.mubr.msk.f32.vlgmr.msra.gmra.mrb[20].mxu1 %vm439_vm9, %v1268_v59 }
 0x864   :  { %3984 = vmatpush3.msk.msra.mxu1 %vm202_vm4, %v1436_v48  ;;  %3985 = vmatprep.mubr.msk.f32.mxu1 %vm4286_vm0, %v4285_v0 }
 0x865   :  { %3993 = vmatprep.subr.mxu1 %v4285_v0 }
 0x867   :  { %3986 = vmatmul.mubr.msk.f32.vlgmr.msra.gmra.mrb[22].mxu1 %vm439_vm9, %v1434_v8 }
 0x868   :  { %3994 = vmatpush3.msk.msra.mxu1 %vm202_vm4, %v1602_v37  ;;  %3995 = vmatprep.mubr.msk.f32.mxu1 %vm4286_vm0, %v4285_v0 }
 0x869   :  { %4003 = vmatprep.subr.mxu1 %v4285_v0 }
 0x86b   :  { %3996 = vmatmul.mubr.msk.f32.vlgmr.msra.gmra.mrb[24].mxu1 %vm439_vm9, %v1600_v15 }
 0x86c   :  { %4004 = vmatpush3.msk.msra.mxu1 %vm202_vm4, %v4499_v10  ;;  %4005 = vmatprep.mubr.msk.f32.mxu1 %vm4286_vm0, %v4285_v0  ;;  %v4260_v10 = vpop.eup %4259 }
 0x86d   :  { %4013 = vmatprep.subr.mxu1 %v4285_v0  ;;  %v1982_v43 = vmul.f32 %v4260_v10, %v4756_v28  ;;  %v4262_v33 = vpop.eup %4261 }
 0x86e   :  { %v2148_v55 = vmul.f32 %v4262_v33, %v4763_v42  ;;  %v4264_v57 = vpop.eup %4263 }
 0x86f   :  { %4006 = vmatmul.mubr.msk.f32.vlgmr.msra.gmra.mrb[26].mxu1 %vm439_vm9, %v1814_v19  ;;  %v2314_v28 = vmul.f32 %v4264_v57, %v4767_v45  ;;  %v4266_v62 = vpop.eup %4265 }
 0x870   :  { %4015 = vmatprep.mubr.msk.f32.mxu1 %vm4286_vm0, %v4285_v0  ;;  %v2480_v42 = vmul.f32 %v4266_v62, %v4779_v53 }
 0x87a   :  { %v2644_v27 = vpop.xlane.xlu0 %2643 }
 0x87b   :  { %4267 = vrcp.f32 %v2644_v27 }
 0x87c   :  { %4269 = vrcp.f32 %v2810_v56 }
 0x87e   :  { %v2976_v52 = vpop.xlane.xlu0 %2975 }
 0x87f   :  { %4271 = vrcp.f32 %v2976_v52 }
 0x882   :  { %v1984_v54 = vpop.permute.xlu0 %1983 }
 0x883   :  { %4014 = vmatpush3.msk.msra.mxu1 %vm202_vm4, %v1984_v54 }
 0x884   :  { %4016 = vmatmul.mubr.msk.f32.vlgmr.msra.gmra.mrb[28].mxu1 %vm439_vm9, %v1982_v43  ;;  %4023 = vmatprep.subr.mxu1 %v4285_v0 }
 0x885   :  { %4025 = vmatprep.mubr.msk.f32.mxu1 %vm4286_vm0, %v4285_v0  ;;  %v4268_v61 = vpop.eup %4267 }
 0x886   :  { %v2150_v34 = vpop.permute.xlu0 %2149  ;;  %v2646_v45 = vmul.f32 %v4268_v61, %v4798_v14  ;;  %v4270_v53 = vpop.eup %4269 }
 0x887   :  { %4024 = vmatpush3.msk.msra.mxu1 %vm202_vm4, %v2150_v34  ;;  %v2812_v40 = vmul.f32 %v4270_v53, %v4786_v58 }
 0x888   :  { %4026 = vmatmul.mubr.msk.f32.vlgmr.msra.gmra.mrb[30].mxu1 %vm439_vm9, %v2148_v55  ;;  %4033 = vmatprep.subr.mxu1 %v4285_v0 }
 0x889   :  { %4035 = vmatprep.mubr.msk.f32.mxu1 %vm4286_vm0, %v4285_v0  ;;  %v4272_v9 = vpop.eup %4271 }
 0x88a   :  { %v2316_v60 = vpop.permute.xlu0 %2315  ;;  %v2978_v11 = vmul.f32 %v4272_v9, %v4802_v18 }
 0x88b   :  { %4034 = vmatpush3.msk.msra.mxu1 %vm202_vm4, %v2316_v60 }
 0x88c   :  { %4036 = vmatmul.mubr.msk.f32.vlgmr.msra.gmra.mrb[32].mxu1 %vm439_vm9, %v2314_v28  ;;  %4043 = vmatprep.subr.mxu1 %v4285_v0 }
 0x88d   :  { %4045 = vmatprep.mubr.msk.f32.mxu1 %vm4286_vm0, %v4285_v0 }
 0x88e   :  { %v2482_v1 = vpop.permute.xlu0 %2481 }
 0x88f   :  { %4044 = vmatpush3.msk.msra.mxu1 %vm202_vm4, %v2482_v1 }
 0x890   :  { %4046 = vmatmul.mubr.msk.f32.vlgmr.msra.gmra.mrb[34].mxu1 %vm439_vm9, %v2480_v42  ;;  %4053 = vmatprep.subr.mxu1 %v4285_v0 }
 0x891   :  { %4054 = vmatpush3.msk.msra.mxu1 %vm202_vm4, %v2648_v4  ;;  %4055 = vmatprep.mubr.msk.f32.mxu1 %vm4286_vm0, %v4285_v0 }
 0x892   :  { %v2814_v7 = vpop.permute.xlu0 %2813  ;;  %4063 = vmatprep.subr.mxu1 %v4285_v0 }
 0x894   :  { %4056 = vmatmul.mubr.msk.f32.vlgmr.msra.gmra.mrb[36].mxu1 %vm439_vm9, %v2646_v45 }
 0x895   :  { %4064 = vmatpush3.msk.msra.mxu1 %vm202_vm4, %v2814_v7  ;;  %4065 = vmatprep.mubr.msk.f32.mxu1 %vm4286_vm0, %v4285_v0 }
 0x896   :  { %v2980_v5 = vpop.permute.xlu0 %2979  ;;  %4073 = vmatprep.subr.mxu1 %v4285_v0 }
 0x898   :  { %4066 = vmatmul.mubr.msk.f32.vlgmr.msra.gmra.mrb[38].mxu1 %vm439_vm9, %v2812_v40 }
 0x899   :  { %4074 = vmatpush3.msk.msra.mxu1 %vm202_vm4, %v2980_v5  ;;  %4075 = vmatprep.mubr.msk.f32.mxu1 %vm4286_vm0, %v4285_v0 }
 0x89c   :  { %4076 = vmatmul.mubr.msk.f32.vlgmr.msra.gmra.mrb[40].mxu1 %vm439_vm9, %v2978_v11 }
 0x89d   :  { %3323 = vmatprep.mubr.bf16.mxu1 %v4287_v2  ;;  %v4169_v2 = vld [vmem:[%s5078_s6] sm:$0xff]  }
 0x89e   :  { %4079 = vmatpush3.bf16.msra.mxu0 %v4169_v2 }
 0x89f   :  { %4080 = vmatprep.subr.bf16.mxu0 %v4285_v0 }
 0x8a2   :  { %4081 = vmatpush3.bf16.msra.mxu0 %v4170_v31 }
 0x8a3   :  { %4082 = vmatprep.subr.bf16.mxu0 %v4285_v0 }
 0x8a6   :  { %4083 = vmatpush3.bf16.msra.mxu0 %v4171_v46 }
 0x8a7   :  { %4084 = vmatprep.subr.bf16.mxu0 %v4285_v0 }
 0x8aa   :  { %4085 = vmatpush3.bf16.msra.mxu0 %v4172_v50 }
 0x926   :  { %v678_v12 = vpop.f32.mrb[12].mxu1 }
 0x927   :  { %v3937_v13 = vpop.f32.mrb[13].mxu1 }
 0x92a   :  { %v844_v58 = vpop.f32.mrb[14].mxu1 }
 0x92b   :  { %v3947_v14 = vpop.f32.mrb[15].mxu1 }
 0x92e   :  { %v1010_v16 = vpop.f32.mrb[16].mxu1 }
 0x92f   :  { %v3957_v6 = vpop.f32.mrb[17].mxu1 }
 0x932   :  { %v1176_v63 = vpop.f32.mrb[18].mxu1 }
 0x933   :  { %v3967_v17 = vpop.f32.mrb[19].mxu1 }
 0x936   :  { %v1342_v21 = vpop.f32.mrb[20].mxu1 }
 0x937   :  { %v3977_v23 = vpop.f32.mrb[21].mxu1 }
 0x93a   :  { %v1508_v26 = vpop.f32.mrb[22].mxu1 }
 0x93b   :  { %v3987_v20 = vpop.f32.mrb[23].mxu1 }
 0x93e   :  { %v1674_v29 = vpop.f32.mrb[24].mxu1 }
 0x93f   :  { %v3997_v30 = vpop.f32.mrb[25].mxu1 }
 0x942   :  { %v1890_v32 = vpop.f32.mrb[26].mxu1 }
 0x943   :  { %v4007_v18 = vpop.f32.mrb[27].mxu1 }
 0x957   :  { %v2056_v24 = vpop.f32.mrb[28].mxu1 }
 0x958   :  { %v4121_v35 = vpack.i.bf16 %v678_v12, %v2056_v24  ;;  %v4017_v36 = vpop.f32.mrb[29].mxu1 }
 0x95a   :  { %4122 = vrot.lane.b32.xlu0 %v4121_v35, %s4295_s28  ;;  %v3759_v35 = vld [vmem:[%s5079_s7] ss:$0 sm:$0xff] }
 0x95b   :  { %v2222_v38 = vpop.f32.mrb[30].mxu1 }
 0x95c   :  { %v4126_v39 = vpack.i.bf16 %v844_v58, %v2222_v38  ;;  %v4027_v41 = vpop.f32.mrb[31].mxu1 }
 0x95e   :  { %4127 = vrot.lane.b32.xlu0 %v4126_v39, %s4294_s27 }
 0x95f   :  { %v2388_v49 = vpop.f32.mrb[32].mxu1 }
 0x960   :  { %v4131_v44 = vpack.i.bf16 %v1010_v16, %v2388_v49  ;;  %v4037_v59 = vpop.f32.mrb[33].mxu1 }
 0x962   :  { %4132 = vrot.lane.b32.xlu1 %v4131_v44, %s4293_s26 }
 0x963   :  { %v2554_v47 = vpop.f32.mrb[34].mxu1 }
 0x964   :  { %v4136_v48 = vpack.i.bf16 %v1176_v63, %v2554_v47  ;;  %v4047_v8 = vpop.f32.mrb[35].mxu1 }
 0x966   :  { %4137 = vrot.lane.b32.xlu0 %v4136_v48, %s4302_s19 }
 0x967   :  { %v2720_v37 = vpop.f32.mrb[36].mxu1 }
 0x968   :  { %v4141_v15 = vpack.i.bf16 %v1342_v21, %v2720_v37  ;;  %v4057_v51 = vpop.f32.mrb[37].mxu1 }
 0x96a   :  { %4142 = vrot.lane.b32.xlu1 %v4141_v15, %s4301_s2 }
 0x96b   :  { %v2886_v19 = vpop.f32.mrb[38].mxu1 }
 0x96c   :  { %v4146_v27 = vpack.i.bf16 %v1508_v26, %v2886_v19  ;;  %v4067_v52 = vpop.f32.mrb[39].mxu1  ;;  %v4175_v19 = vld [vmem:[%s5080_s10 + $0x4] ss:$8 sps:$4 sm:$0xff]  }
 0x96d   :  { %3291 = vmatprep.subr.bf16.mxu1 %v4175_v19  ;;  %v4178_v52 = vld [vmem:[%s5080_s10 + $0x14] ss:$8 sps:$4 sm:$0xff]  }
 0x96e   :  { %4147 = vrot.lane.b32.xlu0 %v4146_v27, %s4291_s24  ;;  %v4173_v27 = vld [vmem:[%s5080_s10] ss:$8 sps:$4 sm:$0xff]  }
 0x96f   :  { %v3052_v10 = vpop.f32.mrb[40].mxu1  ;;  %3292 = vmatpush1.bf16.msra.mxu1 %v4173_v27 }
 0x970   :  { %3081 = vrot.lane.b32.xlu1 %v3052_v10, %s4288_s23  ;;  %v4077_v43 = vpop.f32.mrb[41].mxu1  ;;  %v4176_v10 = vld [vmem:[%s5080_s10 + $0x10] ss:$8 sps:$4 sm:$0xff]   ;;  %3293 = vmatprep.subr.bf16.mxu1 %v4178_v52 }
 0x971   :  { %v4181_v43 = vld [vmem:[%s5080_s10 + $0x24] ss:$8 sps:$4 sm:$0xff]  }
 0x972   :  { %1703 = vrot.lane.b32.xlu0 %v1674_v29, %s4288_s23 }
 0x973   :  { %3294 = vmatpush1.bf16.msra.mxu1 %v4176_v10 }
 0x974   :  { %3295 = vmatprep.subr.bf16.mxu1 %v4181_v43 }
 0x9cc   :  { %v4123_v54 = vpop.permute.xlu0 %4122 }
 0x9cd   :  { %v4125_v56 = vunpack.i.h.bf16 %v4123_v54  ;;  %v4124_v34 = vunpack.i.l.bf16 %v4123_v54  ;;  %v4179_v54 = vld [vmem:[%s5080_s10 + $0x20] ss:$8 sps:$4 sm:$0xff]  }
 0x9ce   :  { %3296 = vmatpush1.bf16.msra.mxu1 %v4179_v54 }
 0x9cf   :  { %v1706_v45 = vsel %vm351_vm7, %v4660_v3, %v4125_v56  ;;  %v3084_v7 = vsel %vm351_vm7, %v1890_v32, %v4124_v34 }
 0x9d0   :  { %v4128_v33 = vpop.permute.xlu0 %4127 }
 0x9d1   :  { %v4130_v28 = vunpack.i.h.bf16 %v4128_v33  ;;  %v4129_v60 = vunpack.i.l.bf16 %v4128_v33  ;;  %v4182_v33 = vld [vmem:[%s5080_s10 + $0x30] ss:$8 sps:$4 sm:$0xff]  }
 0x9d3   :  { %v1708_v5 = vsel %vm1707_vm10, %v1706_v45, %v4130_v28  ;;  %v3085_v9 = vsel %vm1707_vm10, %v3084_v7, %v4129_v60 }
 0x9d4   :  { %v4133_v55 = vpop.permute.xlu1 %4132 }
 0x9d5   :  { %v4135_v62 = vunpack.i.h.bf16 %v4133_v55  ;;  %v4134_v42 = vunpack.i.l.bf16 %v4133_v55  ;;  %v4184_v55 = vld [vmem:[%s5080_s10 + $0x34] ss:$8 sps:$4 sm:$0xff]  }
 0x9d6   :  { %3297 = vmatprep.subr.bf16.mxu1 %v4184_v55 }
 0x9d7   :  { %v1710_v11 = vsel %vm1709_vm11, %v1708_v5, %v4135_v62  ;;  %v3086_v12 = vsel %vm1709_vm11, %v3085_v9, %v4134_v42  ;;  %3298 = vmatpush1.bf16.msra.mxu1 %v4182_v33 }
 0x9d8   :  { %v4138_v57 = vpop.permute.xlu0 %4137  ;;  %4090 = vmatprep.subr.bf16.mxu1 %v4285_v0 }
 0x9d9   :  { %v4140_v61 = vunpack.i.h.bf16 %v4138_v57  ;;  %v4139_v4 = vunpack.i.l.bf16 %v4138_v57 }
 0x9db   :  { %v1712_v58 = vsel %vm1711_vm12, %v1710_v11, %v4140_v61  ;;  %v3087_v14 = vsel %vm1711_vm12, %v3086_v12, %v4139_v4  ;;  %v4185_v12 = vld [vmem:[%s5083_s12 + $0x40] sm:$0xff]  }
 0x9dc   :  { %v4143_v1 = vpop.permute.xlu1 %4142  ;;  %3871 = vmatprep.subr.bf16.mxu0 %v4185_v12 }
 0x9dd   :  { %v4145_v53 = vunpack.i.h.bf16 %v4143_v1  ;;  %v4144_v40 = vunpack.i.l.bf16 %v4143_v1  ;;  %v3760_v1 = vld [vmem:[%s5081_s8] ss:$0 sm:$0xff] }
 0x9df   :  { %v3088_v63 = vsel %vm1713_vm13, %v3087_v14, %v4144_v40  ;;  %v1714_v17 = vsel %vm1713_vm13, %v1712_v58, %v4145_v53  ;;  %v3761_v53 = vld [vmem:[%s5082_s9] ss:$0 sm:$0xff]  ;;  %v4187_v58 = vld [vmem:[%s5083_s12 + $0x48] sm:$0xff]  }
 0x9e0   :  { %v4148_v13 = vpop.permute.xlu0 %4147  ;;  %v4188_v14 = vld [vmem:[%s5083_s12 + $0x8] sm:$0xff]  }
 0x9e1   :  { %v4150_v16 = vunpack.i.h.bf16 %v4148_v13  ;;  %v4149_v6 = vunpack.i.l.bf16 %v4148_v13  ;;  %v4186_v13 = vld [vmem:[%s5083_s12] sm:$0xff]  }
 0x9e2   :  { %v3082_v3 = vpop.permute.xlu1 %3081 }
 0x9e3   :  { %v3089_v21 = vsel %vm1715_vm14, %v3088_v63, %v4149_v6  ;;  %v1716_v23 = vsel %vm1715_vm14, %v1714_v17, %v4150_v16  ;;  %v4189_v16 = vld [vmem:[%s5083_s12 + $0x50] sm:$0xff]   ;;  %v4191_v63 = vld [vmem:[%s5083_s12 + $0x58] sm:$0xff]   ;;  %v4193_v17 = vld [vmem:[%s5083_s12 + $0x60] sm:$0xff]  }
 0x9e4   :  { %v3090_v26 = vsel %vm1717_vm15, %v3089_v21, %v3082_v3  ;;  %v1704_v20 = vpop.permute.xlu0 %1703  ;;  %v4190_v6 = vld [vmem:[%s5083_s12 + $0x10] sm:$0xff]   ;;  %v4192_v3 = vld [vmem:[%s5083_s12 + $0x18] sm:$0xff]   ;;  %v4194_v21 = vld [vmem:[%s5083_s12 + $0x20] sm:$0xff]  }
 0x9e5   :  { %v3092_v29 = vrot.slane %v3090_v26, 1  ;;  %v1718_v30 = vsel %vm1717_vm15, %v1716_v23, %v1704_v20  ;;  %v4195_v23 = vld [vmem:[%s5083_s12 + $0x68] sm:$0xff]   ;;  %v4197_v20 = vld [vmem:[%s5083_s12 + $0x70] sm:$0xff]  }
 0x9e6   :  { %v4196_v26 = vld [vmem:[%s5083_s12 + $0x28] sm:$0xff]  }
 0x9e7   :  { %v3094_v32 = vsel %vm202_vm4, %v1718_v30, %v3092_v29  ;;  %v4199_v30 = vld [vmem:[%s5083_s12 + $0x78] sm:$0xff]  }
 0x9e8   :  { %v3103_v18 = vpack.c.bf16 %v3092_v29, %v3094_v32  ;;  %v4198_v29 = vld [vmem:[%s5083_s12 + $0x30] sm:$0xff]   ;;  %v4200_v32 = vld [vmem:[%s5083_s12 + $0x38] sm:$0xff]  }
 0x9ea   :  { %4087 = vmatmul.mubr.msk.bf16.vlgmr.msra.gmra.mrb[36].mxu0 %vm206_vm5, %v3103_v18  ;;  %v3238_v18 = vlaneseq }
 0x9eb   :  { %3872 = vmatpush3.bf16.msra.mxu0 %v4186_v13 }
 0x9ec   :  { %3873 = vmatprep.subr.bf16.mxu0 %v4187_v58 }
 0x9ef   :  { %3874 = vmatpush3.bf16.msra.mxu0 %v4188_v14 }
 0x9f0   :  { %3875 = vmatprep.subr.bf16.mxu0 %v4189_v16 }
 0x9f3   :  { %3876 = vmatpush3.bf16.msra.mxu0 %v4190_v6 }
 0x9f4   :  { %3877 = vmatprep.subr.bf16.mxu0 %v4191_v63 }
 0x9f7   :  { %3878 = vmatpush3.bf16.msra.mxu0 %v4192_v3 }
 0x9f8   :  { %3879 = vmatprep.subr.bf16.mxu0 %v4193_v17  ;;  %v4201_v17 = vld [vmem:[%s5085_s14] sm:$0xff]  }
 0x9fb   :  { %3880 = vmatpush3.bf16.msra.mxu0 %v4194_v21  ;;  %v4202_v21 = vld [vmem:[%s5085_s14 + $0x8] sm:$0xff]  }
 0x9fc   :  { %3881 = vmatprep.subr.bf16.mxu0 %v4195_v23  ;;  %v4203_v23 = vld [vmem:[%s5085_s14 + $0x10] sm:$0xff]  }
 0x9ff   :  { %3882 = vmatpush3.bf16.msra.mxu0 %v4196_v26  ;;  %v4204_v26 = vld [vmem:[%s5085_s14 + $0x18] sm:$0xff]  }
 0xa00   :  { %3883 = vmatprep.subr.bf16.mxu0 %v4197_v20 }
 0xa03   :  { %3884 = vmatpush3.bf16.msra.mxu0 %v4198_v29 }
 0xa04   :  { %3885 = vmatprep.subr.bf16.mxu0 %v4199_v30 }
 0xa07   :  { %3886 = vmatpush3.bf16.msra.mxu0 %v4200_v32 }
 0xabd   :  { %v3165_v24 = vpop.f32.mrb[36].mxu0 }
 0xabe   :  { %v3172_v36 = vadd.f32 %v3165_v24, %v4435_v25  ;;  %v4088_v2 = vpop.f32.mrb[37].mxu0  ;;  %v3239_v24 = vshrl.u32 %v3238_v18, 7  ;;  %v3787_v18 = vld [vmem:[%s5086_s13] ss:$0 sm:$0xff] }
 0xabf   :  { %v3168_v38 = vpop.f32.mrb[38].mxu0 }
 0xac0   :  { %v4945_v39 = vadd.f32 %v3759_v35, %v3172_v36  ;;  %v3173_v41 = vadd.f32 %v3168_v38, %v4429_v22  ;;  %v4089_v31 = vpop.f32.mrb[39].mxu0  ;;  %v3236_v36 = vld [vmem:[%s5084_s11] sm:$0x3]  ;;  %v3244_v2 = vsub.s32 1, %v3239_v24 }
 0xac2   :  { %v4948_v49 = vadd.f32 %v3759_v35, %v3173_v41  ;;  %v3185_v44 = vsel %vm206_vm5, %v4945_v39, 0.0  ;;  %v3240_v35 = vsub.s32 0, %v3239_v24  ;;  %v3245_v41 = vrot.slane %v3236_v36, %v3244_v2 }
 0xac3   :  { %3186 = vadd.xlane.f32.xlu1 %v3185_v44 }
 0xac4   :  { %v3188_v59 = vsel %vm210_vm3, %v4948_v49, 0.0  ;;  %v3241_v38 = vrot.slane %v3236_v36, %v3240_v35 }
 0xac5   :  { %3189 = vadd.xlane.f32.xlu0 %v3188_v59 }
 0xb50   :  { %v3187_v46 = vpop.xlane.xlu1 %3186 }
 0xb51   :  { %v3191_v47 = vmul.f32 0.015625, %v3187_v46 }
 0xb52   :  { %v3190_v25 = vpop.xlane.xlu0 %3189 }
 0xb53   :  { %v3193_v48 = vsub.f32 %v4945_v39, %v3191_v47  ;;  %v3192_v8 = vmul.f32 0.015625, %v3190_v25 }
 0xb55   :  { %v3194_v50 = vsub.f32 %v4948_v49, %v3192_v8  ;;  %v3195_v22 = vmul.f32 %v3193_v48, %v3193_v48 }
 0xb57   :  { %v3197_v37 = vsel %vm206_vm5, %v3195_v22, 0.0  ;;  %v3196_v15 = vmul.f32 %v3194_v50, %v3194_v50 }
 0xb58   :  { %3198 = vadd.xlane.f32.xlu0 %v3197_v37 }
 0xb59   :  { %v3200_v51 = vsel %vm210_vm3, %v3196_v15, 0.0 }
 0xb5a   :  { %3201 = vadd.xlane.f32.xlu1 %v3200_v51 }
 0xbe5   :  { %v3199_v56 = vpop.xlane.xlu0 %3198 }
 0xbe6   :  { %v3203_v34 = vmul.f32 0.015625, %v3199_v56 }
 0xbe7   :  { %v3202_v57 = vpop.xlane.xlu1 %3201 }
 0xbe8   :  { %v3205_v28 = vadd.f32 1e-05, %v3203_v34  ;;  %v3204_v60 = vmul.f32 0.015625, %v3202_v57 }
 0xbea   :  { %4273 = vrsqrt.f32 %v3205_v28  ;;  %v3206_v62 = vadd.f32 1e-05, %v3204_v60 }
 0xbec   :  { %4275 = vrsqrt.f32 %v3206_v62 }
 0xbf4   :  { %v4274_v42 = vpop.eup %4273 }
 0xbf5   :  { %v3209_v61 = vmul.f32 %v4274_v42, %v3193_v48 }
 0xbf6   :  { %v4276_v4 = vpop.eup %4275 }
 0xbf7   :  { %v3217_v45 = vmul.f32 %v3760_v1, %v3209_v61  ;;  %v3210_v7 = vmul.f32 %v4276_v4, %v3194_v50 }
 0xbf9   :  { %v3218_v40 = vmul.f32 %v3760_v1, %v3210_v7  ;;  %v3225_v5 = vadd.f32 %v3761_v53, %v3217_v45 }
 0xbfb   :  { %v3226_v9 = vadd.f32 %v3761_v53, %v3218_v40 }
 0xbfd   :  { %v3235_v11 = vpack.c.bf16 %v3226_v9, %v3225_v5 }
 0xbff   :  { %3770 = vmatmul.mubr.msk.bf16.vlgmr.msra.gmra.mrb[44].mxu1 %vm206_vm5, %v3235_v11 }
 0xc00   :  { %4098 = vmatprep.mubr.msk.bf16.mxu1 %vm4286_vm0, %v4285_v0  ;;  %4091 = vmatpush3.bf16.msra.mxu1 %v4201_v17  ;;  %vm3552_vm0 = vcmask 522240  }
 0xc01   :  { %4092 = vmatprep.subr.bf16.mxu1 %v4285_v0 }
 0xc04   :  { %4093 = vmatpush3.bf16.msra.mxu1 %v4202_v21 }
 0xc05   :  { %4094 = vmatprep.subr.bf16.mxu1 %v4285_v0 }
 0xc08   :  { %4095 = vmatpush3.bf16.msra.mxu1 %v4203_v23 }
 0xc09   :  { %4096 = vmatprep.subr.bf16.mxu1 %v4285_v0 }
 0xc0c   :  { %4097 = vmatpush3.bf16.msra.mxu1 %v4204_v26 }
 0xcd2   :  { %v3325_v31 = vpop.f32.mrb[44].mxu1 }
 0xcd3   :  { %v3326_v44 = vadd.f32 %v3325_v31, %v3241_v38  ;;  %v3327_v59 = vpop.f32.mrb[45].mxu1 }
 0xcd4   :  { %v3328_v46 = vadd.f32 %v3327_v59, %v3245_v41  ;;  %v3329_v47 = vpop.f32.mrb[46].mxu1 }
 0xcd5   :  { %v3338_v25 = vmul.f32 0.044715, %v3326_v44  ;;  %v3330_v48 = vadd.f32 %v3329_v47, %v3241_v38  ;;  %v3331_v8 = vpop.f32.mrb[47].mxu1  ;;  %v3334_v40 = vmul.f32 0.5, %v3326_v44 }
 0xcd6   :  { %v3339_v50 = vmul.f32 0.044715, %v3328_v46  ;;  %v3332_v22 = vadd.f32 %v3331_v8, %v3245_v41  ;;  %v3335_v11 = vmul.f32 0.5, %v3328_v46 }
 0xcd7   :  { %v3342_v37 = vmul.f32 %v3338_v25, %v3326_v44  ;;  %v3340_v15 = vmul.f32 0.044715, %v3330_v48  ;;  %v3336_v5 = vmul.f32 0.5, %v3330_v48 }
 0xcd8   :  { %v3343_v51 = vmul.f32 %v3339_v50, %v3328_v46  ;;  %v3341_v19 = vmul.f32 0.044715, %v3332_v22  ;;  %v3337_v12 = vmul.f32 0.5, %v3332_v22 }
 0xcd9   :  { %v3346_v27 = vmul.f32 %v3342_v37, %v3326_v44  ;;  %v3344_v52 = vmul.f32 %v3340_v15, %v3330_v48 }
 0xcda   :  { %v3347_v10 = vmul.f32 %v3343_v51, %v3328_v46  ;;  %v3345_v43 = vmul.f32 %v3341_v19, %v3332_v22 }
 0xcdb   :  { %v3350_v54 = vadd.f32 %v3346_v27, %v3326_v44  ;;  %v3348_v33 = vmul.f32 %v3344_v52, %v3330_v48 }
 0xcdc   :  { %v3349_v55 = vmul.f32 %v3345_v43, %v3332_v22  ;;  %v3351_v56 = vadd.f32 %v3347_v10, %v3328_v46 }
 0xcdd   :  { %v3354_v34 = vmul.f32 0.7978846, %v3350_v54  ;;  %v3352_v57 = vadd.f32 %v3348_v33, %v3330_v48  ;;  %v3788_v54 = vld [vmem:[%s5087_s15] ss:$0 sm:$0xff] }
 0xcde   :  { %v3353_v28 = vadd.f32 %v3349_v55, %v3332_v22  ;;  %v3355_v60 = vmul.f32 0.7978846, %v3351_v56 }
 0xcdf   :  { %4277 = vtanh.f32 %v3354_v34  ;;  %v3356_v62 = vmul.f32 0.7978846, %v3352_v57 }
 0xce0   :  { %v3357_v42 = vmul.f32 0.7978846, %v3353_v28  ;;  %4279 = vtanh.f32 %v3355_v60 }
 0xce1   :  { %4281 = vtanh.f32 %v3356_v62 }
 0xce2   :  { %4283 = vtanh.f32 %v3357_v42 }
 0xce9   :  { %v4278_v1 = vpop.eup %4277 }
 0xcea   :  { %v4280_v61 = vpop.eup %4279  ;;  %v3362_v4 = vadd.f32 1.0, %v4278_v1 }
 0xceb   :  { %v4282_v45 = vpop.eup %4281  ;;  %v3363_v7 = vadd.f32 1.0, %v4280_v61 }
 0xcec   :  { %v4284_v53 = vpop.eup %4283  ;;  %v3364_v9 = vadd.f32 1.0, %v4282_v45  ;;  %v3366_v58 = vmul.f32 %v3362_v4, %v3334_v40 }
 0xced   :  { %v3365_v13 = vadd.f32 1.0, %v4284_v53  ;;  %v3367_v16 = vmul.f32 %v3363_v7, %v3335_v11 }
 0xcee   :  { %v3368_v14 = vmul.f32 %v3364_v9, %v3336_v5 }
 0xcef   :  { %v3369_v6 = vmul.f32 %v3365_v13, %v3337_v12 }
 0xcf0   :  { %v3402_v63 = vpack.c.bf16 %v3368_v14, %v3366_v58 }
 0xcf1   :  { %v3403_v3 = vpack.c.bf16 %v3369_v6, %v3367_v16 }
 0xcf3   :  { %3532 = vmatprep.mubr.bf16.mxu0 %v3403_v3 }
 0xcf4   :  { %3533 = vmatmul.mubr.bf16.vlgmr.msra.gmra.mrb[40].mxu0 %v3402_v63 }
 0xdc7   :  { %v3887_v20 = vpop.f32.mrb[40].mxu0 }
 0xdc8   :  { %v3888_v29 = vpop.f32.mrb[41].mxu0 }
 0xdc9   :  { %v3889_v30 = vadd.f32 %v3888_v29, %v3887_v20  ;;  %v3890_v32 = vpop.f32.mrb[42].mxu0 }
 0xdca   :  { %v3891_v24 = vpop.f32.mrb[43].mxu0 }
 0xdcb   :  { %v3541_v35 = vadd.f32 %v3889_v30, %v4945_v39  ;;  %v3892_v36 = vadd.f32 %v3891_v24, %v3890_v32 }
 0xdcd   :  { %v3550_v2 = vadd.f32 %v3787_v18, %v3541_v35  ;;  %v3542_v0 = vadd.f32 %v3892_v36, %v4948_v49 }
 0xdcf   :  { %v3553_v38 = vsel %vm3552_vm0, %v3550_v2, 0.0  ;;  %v3551_v41 = vadd.f32 %v3787_v18, %v3542_v0  ;;  %v3564_v44 = vrot.slane %v3550_v2, 7 }
 0xdd0   :  { %v3554_v31 = vrot.slane %v3553_v38, 4 }
 0xdd1   :  { %v3565_v59 = vrot.slane %v3551_v41, 7 }
 0xdd2   :  { %v3555_v46 = vadd.f32 %v3554_v31, %v3553_v38 }
 0xdd3   :  { %v3566_v47 = vsel %vm1720_vm6, %v3564_v44, %v3565_v59 }
 0xdd4   :  { %v3556_v25 = vrot.slane %v3555_v46, 2  ;;  %v3568_v48 = vsel %vm3552_vm0, %v3566_v47, 0.0 }
 0xdd5   :  { %v3569_v8 = vrot.slane %v3568_v48, 4 }
 0xdd6   :  { %v3557_v50 = vadd.f32 %v3556_v25, %v3555_v46 }
 0xdd7   :  { %v3570_v22 = vadd.f32 %v3569_v8, %v3568_v48 }
 0xdd8   :  { %v3558_v37 = vrot.slane %v3557_v50, 1 }
 0xdd9   :  { %v3571_v39 = vrot.slane %v3570_v22, 2 }
 0xdda   :  { %v3559_v51 = vadd.f32 %v3558_v37, %v3557_v50 }
 0xddb   :  { %v3572_v15 = vadd.f32 %v3571_v39, %v3570_v22 }
 0xddc   :  { %v3561_v49 = vmul.f32 0.14285715, %v3559_v51 }
 0xddd   :  { %v3573_v19 = vrot.slane %v3572_v15, 1 }
 0xddf   :  { %v3574_v27 = vadd.f32 %v3573_v19, %v3572_v15 }
 0xde1   :  { %v3575_v52 = vmul.f32 0.14285715, %v3574_v27 }
 0xde3   :  { %v3576_v10 = vsel %vm1720_vm6, %v3561_v49, %v3575_v52 }
 0xde4   :  { %v3585_v43 = vpack.c.bf16 %v3576_v10, %v3576_v10 }
 0xde6   :  { %4099 = vmatmul.mubr.msk.bf16.vlgmr.msra.gmra.mrb[48].mxu1 %vm206_vm5, %v3585_v43 }
 0xeb9   :  { %v3654_v33 = vpop.f32.mrb[48].mxu1 }
 0xeba   :  { %v3655_v55 = vadd.f32 %v3788_v54, %v3654_v33  ;;  %v4100_v56 = vpop.f32.mrb[49].mxu1 }
 0xebb   :  { %v3657_v34 = vpop.f32.mrb[50].mxu1 }
 0xebc   :  { %3660 = vst [vmem:[%s5088_s16] sm:$0x3] %v3655_v55  ;;  %v4101_v57 = vpop.f32.mrb[51].mxu1 }

</bundles_post_ra>
